<compile_context>
chip_gen: v5e
topology: v5e:2x2
jax: 0.10.0
libtpu: 0.0.40
codegen_flags: <defaults>
</compile_context>

<pallas_src>
import jax
import jax.numpy as jnp
import numpy as np
from jax.experimental import pallas as pl
from jax.experimental.pallas import tpu as pltpu

CP = 128                              # packed head-slab width (lane aligned)
NHEAD = 5                             # classifier_1 .. classifier_5
FEAT = 512                            # backbone feature width
OFFSETS = (0, 102, 204, 306, 409)     # feature slice start per head
IN_DIMS = (512, 410, 308, 206, 103)   # classifier input widths
NEG_INF = -1e30


def _col_starts(ncs):
    # classifier_5 packed at lane 0 (l5 logits = leading lane slice), then 4..1
    return tuple(int(sum(ncs[h + 1:])) for h in range(NHEAD))


# ----------------------------------------------------------------------------
# Fused kernel: feature projection + packed 5-head matmul + masked CE + top-1
# ----------------------------------------------------------------------------
def _make_kernel(tb, ncs, col_starts):
    def kernel(bsz_ref, x_ref, wf_ref, bf_ref, wh_ref, bh_ref, tgt_ref,
               l5_ref, stats_ref):
        # ---- feature projection (stand-in for the external backbone)
        # TODO(synk): features_2 is an externally supplied WideResNet not
        # defined in this module; replaced by relu(x_flat @ W + b) -> 512.
        feats = jnp.dot(x_ref[...], wf_ref[...],
                        preferred_element_type=jnp.float32) + bf_ref[...]
        feats = jnp.maximum(feats, 0.0)                       # [TB, 512] f32

        # ---- all 5 heads as ONE packed [512, 128] matmul (zero rows emulate
        # x[:, OFFSETS[h]:512]; heads occupy disjoint lane segments)
        logits = jnp.dot(feats.astype(jnp.bfloat16), wh_ref[...],
                         preferred_element_type=jnp.float32) + bh_ref[...]
        # classifier_5 lives at lanes [0:nc5]; wrapper slices [:, :nc5]
        l5_ref[...] = logits

        lane = jax.lax.broadcasted_iota(jnp.int32, (tb, CP), 1)
        tgt = tgt_ref[...]                        # [TB, 8] absolute target lanes
        row = (pl.program_id(0) * tb
               + jax.lax.broadcasted_iota(jnp.int32, (tb, 1), 0))
        rowv = row < bsz_ref[0]                   # valid (non-padded) batch rows

        srow = jax.lax.broadcasted_iota(jnp.int32, (8, CP), 0)
        scol = jax.lax.broadcasted_iota(jnp.int32, (8, CP), 1)
        stats = jnp.zeros((8, CP), jnp.float32)
        for h in range(NHEAD):                    # static unroll (5 heads)
            cs, nc = col_starts[h], ncs[h]
            seg = (lane >= cs) & (lane < cs + nc)             # static segment
            lg = jnp.where(seg, logits, NEG_INF)              # mask other heads
            tl = jnp.sum(jnp.where(lane == tgt[:, h:h + 1], logits, 0.0),
                         axis=-1, keepdims=True)              # target logit
            m = jnp.max(lg, axis=-1, keepdims=True)
            lse = m + jnp.log(jnp.sum(jnp.exp(lg - m), axis=-1, keepdims=True))
            loss = jnp.where(rowv, lse - tl, 0.0)
            # NOTE: ties count as correct; torch.argmax picks the first max
            # index (measure-zero difference for float logits).
            corr = jnp.where(rowv & (tl >= m), 1.0, 0.0)
            stats = jnp.where((srow == 0) & (scol == h), jnp.sum(loss), stats)
            stats = jnp.where((srow == 1) & (scol == h), jnp.sum(corr), stats)
        stats_ref[...] = stats                    # one lane-dense store / tile

    return kernel


def _run_fused(x_pad, w_feat, b_feat, w_heads, b_heads, tgt_pad, bsz, tb,
               ncs, col_starts):
    bp, in_features = x_pad.shape
    nt = bp // tb
    kernel = _make_kernel(tb, ncs, col_starts)
    grid_spec = pltpu.PrefetchScalarGridSpec(
        num_scalar_prefetch=1,                    # bsz lives in SMEM
        grid=(nt,),
        in_specs=[
            pl.BlockSpec((tb, in_features), lambda i, bsz_ref: (i, 0)),
            pl.BlockSpec((in_features, FEAT), lambda i, bsz_ref: (0, 0)),
            pl.BlockSpec((1, FEAT), lambda i, bsz_ref: (0, 0)),
            pl.BlockSpec((FEAT, CP), lambda i, bsz_ref: (0, 0)),
            pl.BlockSpec((1, CP), lambda i, bsz_ref: (0, 0)),
            pl.BlockSpec((tb, 8), lambda i, bsz_ref: (i, 0)),
        ],
        out_specs=(
            pl.BlockSpec((tb, CP), lambda i, bsz_ref: (i, 0)),
            pl.BlockSpec((None, 8, CP), lambda i, bsz_ref: (i, 0, 0)),
        ),
    )
    return pl.pallas_call(
        kernel,
        grid_spec=grid_spec,
        out_shape=(
            jax.ShapeDtypeStruct((bp, CP), jnp.float32),     # classifier_5 logits
            jax.ShapeDtypeStruct((nt, 8, CP), jnp.float32),  # per-tile loss/acc
        ),
        compiler_params=pltpu.CompilerParams(
            dimension_semantics=("parallel",)),              # megacore on v7x
    )(jnp.array([bsz], jnp.int32), x_pad, w_feat, b_feat, w_heads, b_heads,
      tgt_pad)


# ----------------------------------------------------------------------------
# Wrapper (module forward semantics)
# ----------------------------------------------------------------------------
def get_targets(targets, num_classes):
    # TODO(synk): get_targets() is undefined in the source repo; use a
    # deterministic modulo mapping to the coarser label spaces.
    return (targets % num_classes[4], targets % num_classes[3],
            targets % num_classes[2], targets % num_classes[1])


def forward(x, targets, params, num_classes):
    bsz = x.shape[0]
    x_flat = x.reshape(bsz, -1).astype(jnp.bfloat16)
    in_features = x_flat.shape[1]

    ncs = (num_classes[4], num_classes[3], num_classes[2],
           num_classes[1], num_classes[0])        # classifier_1..5 widths
    assert sum(ncs) <= CP, "packed-head layout needs sum(classes) <= 128"
    col_starts = _col_starts(ncs)

    # batch tiling: pad rows up to a multiple of the batch tile (masked in-kernel)
    bp8 = max(8, ((bsz + 7) // 8) * 8)
    tb = min(128, bp8)
    bp = ((bsz + tb - 1) // tb) * tb
    x_pad = (x_flat if bp == bsz else
             jnp.zeros((bp, in_features), jnp.bfloat16).at[:bsz].set(x_flat))

    l1_t, l2_t, l3_t, l4_t = get_targets(targets, num_classes)
    # clamp every target into its head's valid class range, then convert to the
    # ABSOLUTE lane inside the packed 128-lane slab.
    tgts = [l1_t % ncs[0], l2_t % ncs[1], l3_t % ncs[2], l4_t % ncs[3],
            targets % ncs[4]]
    tgt_abs = jnp.stack(
        [tgts[h].astype(jnp.int32) + col_starts[h] for h in range(NHEAD)],
        axis=1)                                              # [B, 5]
    tgt_pad = jnp.zeros((bp, 8), jnp.int32).at[:bsz, :NHEAD].set(tgt_abs)

    l5_pad, stats = _run_fused(x_pad, params["w_feat"], params["b_feat"],
                               params["w_heads"], params["b_heads"],
                               tgt_pad, bsz, tb, ncs, col_starts)

    stats = jnp.sum(stats, axis=0)                # reduce per-tile partials
    ce_losses = stats[0, :NHEAD] / bsz            # mean CE per head (cls_1..5)
    accs = stats[1, :NHEAD] / bsz * 100.0         # top-1 accuracy (%) per head
    total_loss = jnp.sum(ce_losses)               # self.loss
    l5_out = l5_pad[:bsz, :num_classes[0]]        # the module's return value
    return l5_out, total_loss, ce_losses, accs


# ----------------------------------------------------------------------------
# Deterministic parameter construction (synthetic, shapes from __init__)
# ----------------------------------------------------------------------------
def init_params(key, in_features, num_classes):
    ncs = (num_classes[4], num_classes[3], num_classes[2],
           num_classes[1], num_classes[0])
    col_starts = _col_starts(ncs)
    keys = jax.random.split(key, 12)
    w_feat = 0.02 * jax.random.normal(keys[0], (in_features, FEAT), jnp.float32)
    b_feat = 0.01 * jax.random.normal(keys[1], (1, FEAT), jnp.float32)

    w_heads = jnp.zeros((FEAT, CP), jnp.float32)
    b_heads = jnp.zeros((1, CP), jnp.float32)
    for h in range(NHEAD):
        fan_in = IN_DIMS[h]
        bound = 1.0 / np.sqrt(fan_in)
        wk = jax.random.uniform(keys[2 + 2 * h], (fan_in, ncs[h]),
                                jnp.float32, -bound, bound)
        bk = jax.random.uniform(keys[3 + 2 * h], (ncs[h],),
                                jnp.float32, -bound, bound)
        cs = col_starts[h]
        # leading zero rows emulate x[:, OFFSETS[h]:512]; heads occupy
        # disjoint lane segments of the single 128-lane slab.
        w_heads = w_heads.at[OFFSETS[h]:, cs:cs + ncs[h]].set(wk)
        b_heads = b_heads.at[0, cs:cs + ncs[h]].set(bk)

    return {"w_feat": w_feat.astype(jnp.bfloat16), "b_feat": b_feat,
            "w_heads": w_heads.astype(jnp.bfloat16), "b_heads": b_heads}


def reference(x, targets, params, num_classes):
    """Plain-JAX (f32, HIGHEST precision) reference of the same forward."""
    hp = jax.lax.Precision.HIGHEST
    bsz = x.shape[0]
    ncs = (num_classes[4], num_classes[3], num_classes[2],
           num_classes[1], num_classes[0])
    col_starts = _col_starts(ncs)
    w_feat = params["w_feat"].astype(jnp.float32)
    w_heads = params["w_heads"].astype(jnp.float32)
    feats = jnp.maximum(
        jnp.dot(x.reshape(bsz, -1), w_feat, precision=hp) + params["b_feat"],
        0.0)
    l1_t, l2_t, l3_t, l4_t = get_targets(targets, num_classes)
    tgts = [l1_t % ncs[0], l2_t % ncs[1], l3_t % ncs[2], l4_t % ncs[3],
            targets % ncs[4]]
    losses, l5_out = [], None
    for h in range(NHEAD):
        cs, nc = col_starts[h], ncs[h]
        logit = (jnp.dot(feats, w_heads[:, cs:cs + nc], precision=hp)
                 + params["b_heads"][:, cs:cs + nc])
        lse = jax.scipy.special.logsumexp(logit, axis=-1)
        losses.append(jnp.mean(lse - logit[jnp.arange(bsz), tgts[h]]))
        if h == NHEAD - 1:
            l5_out = logit
    return l5_out, sum(losses)


if __name__ == "__main__":
    # num_classes as indexed by the module: [l5, l4, l3, l2, l1] head widths.
    num_classes = (10, 15, 20, 25, 30)
    B, C, H, W = 2, 4, 16, 16

    key = jax.random.PRNGKey(0)
    kx, kt, kp = jax.random.split(key, 3)
    x = jax.random.normal(kx, (B, C, H, W), jnp.float32)
    targets = jax.random.randint(kt, (B,), 0, num_classes[0], jnp.int32)
    params = init_params(kp, C * H * W, num_classes)

    l5_out, total_loss, ce_losses, accs = forward(x, targets, params, num_classes)
    jax.block_until_ready((l5_out, total_loss, ce_losses, accs))

    ref_l5, ref_loss = reference(x, targets, params, num_classes)
    # bf16 matmul operands (f32 accumulation) vs f32/HIGHEST reference.
    assert np.allclose(np.asarray(l5_out), np.asarray(ref_l5),
                       rtol=2e-2, atol=2e-2), "l5_out mismatch"
    assert np.allclose(float(total_loss), float(ref_loss),
                       rtol=2e-2, atol=2e-2), "loss mismatch"

    print("KERNEL_OK")
</pallas_src>

<mosaic_0001>
module attributes {stable_mosaic.version = 11 : i64} {
  func.func @kernel(%arg0: i32, %arg1: memref<1xi32, #tpu.memory_space<smem>>, %arg2: memref<8x1024xbf16, #tpu.memory_space<vmem>>, %arg3: memref<1024x512xbf16, #tpu.memory_space<vmem>>, %arg4: memref<1x512xf32, #tpu.memory_space<vmem>>, %arg5: memref<512x128xbf16, #tpu.memory_space<vmem>>, %arg6: memref<1x128xf32, #tpu.memory_space<vmem>>, %arg7: memref<8x8xi32, #tpu.memory_space<vmem>>, %arg8: memref<8x128xf32, #tpu.memory_space<vmem>>, %arg9: memref<1x8x128xf32, #tpu.memory_space<vmem>>) attributes {dimension_semantics = [#tpu.dimension_semantics<parallel>], iteration_bounds = array<i64: 1>, scalar_prefetch = 1 : i64, scratch_operands = 0 : i64, tpu.core_type = #tpu.core_type<tc>, window_params = [{transform_indices = @transform_0, window_bounds = array<i64: 8, 1024>}, {pipeline_mode = #tpu.pipeline_mode<synchronous>, transform_indices = @transform_1, window_bounds = array<i64: 1024, 512>}, {pipeline_mode = #tpu.pipeline_mode<synchronous>, transform_indices = @transform_2, window_bounds = array<i64: 1, 512>}, {pipeline_mode = #tpu.pipeline_mode<synchronous>, transform_indices = @transform_3, window_bounds = array<i64: 512, 128>}, {pipeline_mode = #tpu.pipeline_mode<synchronous>, transform_indices = @transform_4, window_bounds = array<i64: 1, 128>}, {transform_indices = @transform_5, window_bounds = array<i64: 8, 8>}, {transform_indices = @transform_6, window_bounds = array<i64: 8, 128>}, {transform_indices = @transform_7, window_bounds = array<i64: 1, 8, 128>}]} {
    %c0 = arith.constant 0 : index
    %c0_0 = arith.constant 0 : index
    %0 = vector.load %arg2[%c0, %c0_0] : memref<8x1024xbf16, #tpu.memory_space<vmem>>, vector<8x1024xbf16>
    %c0_1 = arith.constant 0 : index
    %c0_2 = arith.constant 0 : index
    %1 = vector.load %arg3[%c0_1, %c0_2] : memref<1024x512xbf16, #tpu.memory_space<vmem>>, vector<1024x512xbf16>
    %cst = arith.constant dense<0.000000e+00> : vector<8x512xf32>
    %2 = tpu.matmul %0, %1, %cst {dimension_numbers = #tpu.dot_dimension_numbers<[1], [0], [0], [1], [0, 0, 1, 1], [], []>} : vector<8x1024xbf16>, vector<1024x512xbf16>, vector<8x512xf32> -> vector<8x512xf32>
    %c0_3 = arith.constant 0 : index
    %c0_4 = arith.constant 0 : index
    %3 = vector.load %arg4[%c0_3, %c0_4] : memref<1x512xf32, #tpu.memory_space<vmem>>, vector<1x512xf32>
    %4 = vector.broadcast %3 : vector<1x512xf32> to vector<8x512xf32>
    %5 = arith.addf %2, %4 : vector<8x512xf32>
    %cst_5 = arith.constant 0.000000e+00 : f32
    %6 = vector.broadcast %cst_5 : f32 to vector<8x512xf32>
    %7 = arith.maximumf %5, %6 : vector<8x512xf32>
    %8 = arith.truncf %7 : vector<8x512xf32> to vector<8x512xbf16>
    %c0_6 = arith.constant 0 : index
    %c0_7 = arith.constant 0 : index
    %9 = vector.load %arg5[%c0_6, %c0_7] : memref<512x128xbf16, #tpu.memory_space<vmem>>, vector<512x128xbf16>
    %cst_8 = arith.constant dense<0.000000e+00> : vector<8x128xf32>
    %10 = tpu.matmul %8, %9, %cst_8 {dimension_numbers = #tpu.dot_dimension_numbers<[1], [0], [0], [1], [0, 0, 1, 1], [], []>} : vector<8x512xbf16>, vector<512x128xbf16>, vector<8x128xf32> -> vector<8x128xf32>
    %c0_9 = arith.constant 0 : index
    %c0_10 = arith.constant 0 : index
    %11 = vector.load %arg6[%c0_9, %c0_10] : memref<1x128xf32, #tpu.memory_space<vmem>>, vector<1x128xf32>
    %12 = vector.broadcast %11 : vector<1x128xf32> to vector<8x128xf32>
    %13 = arith.addf %10, %12 : vector<8x128xf32>
    %c0_11 = arith.constant 0 : index
    %c0_12 = arith.constant 0 : index
    %14 = vector.load %arg8[%c0_11, %c0_12] : memref<8x128xf32, #tpu.memory_space<vmem>>, vector<8x128xf32>
    tpu.vector_store %arg8[%c0_11, %c0_12], %13 {strides = array<i32>} : memref<8x128xf32, #tpu.memory_space<vmem>>, vector<8x128xf32>,
    %15 = tpu.iota {dimensions = array<i32: 1>} : vector<8x128xi32>
    %c0_13 = arith.constant 0 : index
    %c0_14 = arith.constant 0 : index
    %16 = vector.load %arg7[%c0_13, %c0_14] : memref<8x8xi32, #tpu.memory_space<vmem>>, vector<8x8xi32>
    %c8_i32 = arith.constant 8 : i32
    %17 = arith.muli %arg0, %c8_i32 : i32
    %18 = tpu.iota {dimensions = array<i32: 0>} : vector<8x1xi32>
    %19 = vector.broadcast %17 : i32 to vector<8x1xi32>
    %20 = arith.addi %19, %18 : vector<8x1xi32>
    %c0_15 = arith.constant 0 : index
    %21 = memref.load %arg1[%c0_15] : memref<1xi32, #tpu.memory_space<smem>>
    %22 = vector.broadcast %21 : i32 to vector<8x1xi32>
    %23 = arith.cmpi slt, %20, %22 : vector<8x1xi32>
    %24 = tpu.iota {dimensions = array<i32: 0>} : vector<8x128xi32>
    %25 = tpu.iota {dimensions = array<i32: 1>} : vector<8x128xi32>
    %cst_16 = arith.constant 0.000000e+00 : f32
    %26 = vector.broadcast %cst_16 : f32 to vector<8x128xf32>
    %c70_i32 = arith.constant 70 : i32
    %27 = vector.broadcast %c70_i32 : i32 to vector<8x128xi32>
    %28 = arith.cmpi sge, %15, %27 : vector<8x128xi32>
    %c100_i32 = arith.constant 100 : i32
    %29 = vector.broadcast %c100_i32 : i32 to vector<8x128xi32>
    %30 = arith.cmpi slt, %15, %29 : vector<8x128xi32>
    %31 = arith.andi %28, %30 : vector<8x128xi1>
    %cst_17 = arith.constant -1.000000e+30 : f32
    %32 = vector.broadcast %cst_17 : f32 to vector<8x128xf32>
    %33 = arith.select %31, %13, %32 : vector<8x128xi1>, vector<8x128xf32>
    %34 = vector.extract_strided_slice %16 {offsets = [0, 0], sizes = [8, 1], strides = [1, 1]} : vector<8x8xi32> to vector<8x1xi32>
    %35 = vector.broadcast %34 : vector<8x1xi32> to vector<8x128xi32>
    %36 = arith.cmpi eq, %15, %35 : vector<8x128xi32>
    %cst_18 = arith.constant 0.000000e+00 : f32
    %37 = vector.broadcast %cst_18 : f32 to vector<8x128xf32>
    %38 = arith.select %36, %13, %37 : vector<8x128xi1>, vector<8x128xf32>
    %cst_19 = arith.constant dense<0.000000e+00> : vector<8xf32>
    %39 = vector.multi_reduction <add>, %38, %cst_19 [1] : vector<8x128xf32> to vector<8xf32>
    %40 = vector.shape_cast %39 : vector<8xf32> to vector<8x1xf32>
    %cst_20 = arith.constant dense<0xFF800000> : vector<8xf32>
    %41 = vector.multi_reduction <maximumf>, %33, %cst_20 [1] : vector<8x128xf32> to vector<8xf32>
    %42 = vector.shape_cast %41 : vector<8xf32> to vector<8x1xf32>
    %43 = vector.broadcast %42 : vector<8x1xf32> to vector<8x128xf32>
    %44 = arith.subf %33, %43 : vector<8x128xf32>
    %45 = math.exp %44 : vector<8x128xf32>
    %cst_21 = arith.constant dense<0.000000e+00> : vector<8xf32>
    %46 = vector.multi_reduction <add>, %45, %cst_21 [1] : vector<8x128xf32> to vector<8xf32>
    %47 = vector.shape_cast %46 : vector<8xf32> to vector<8x1xf32>
    %48 = math.log %47 : vector<8x1xf32>
    %49 = arith.addf %42, %48 : vector<8x1xf32>
    %50 = arith.subf %49, %40 : vector<8x1xf32>
    %cst_22 = arith.constant 0.000000e+00 : f32
    %51 = vector.broadcast %cst_22 : f32 to vector<8x1xf32>
    %52 = arith.select %23, %50, %51 : vector<8x1xi1>, vector<8x1xf32>
    %53 = arith.cmpf oge, %40, %42 : vector<8x1xf32>
    %54 = arith.andi %23, %53 : vector<8x1xi1>
    %cst_23 = arith.constant 1.000000e+00 : f32
    %cst_24 = arith.constant 0.000000e+00 : f32
    %55 = vector.broadcast %cst_23 : f32 to vector<8x1xf32>
    %56 = vector.broadcast %cst_24 : f32 to vector<8x1xf32>
    %57 = arith.select %54, %55, %56 : vector<8x1xi1>, vector<8x1xf32>
    %c0_i32 = arith.constant 0 : i32
    %58 = vector.broadcast %c0_i32 : i32 to vector<8x128xi32>
    %59 = arith.cmpi eq, %24, %58 : vector<8x128xi32>
    %c0_i32_25 = arith.constant 0 : i32
    %60 = vector.broadcast %c0_i32_25 : i32 to vector<8x128xi32>
    %61 = arith.cmpi eq, %25, %60 : vector<8x128xi32>
    %62 = arith.andi %59, %61 : vector<8x128xi1>
    %63 = vector.shape_cast %52 : vector<8x1xf32> to vector<1x8x1xf32>
    %cst_26 = arith.constant dense<0.000000e+00> : vector<1xf32>
    %64 = vector.multi_reduction <add>, %63, %cst_26 [1, 2] : vector<1x8x1xf32> to vector<1xf32>
    %65 = vector.shape_cast %64 : vector<1xf32> to vector<1x1x1xf32>
    %66 = vector.extract %65[0, 0, 0] : f32 from vector<1x1x1xf32>
    %67 = vector.broadcast %66 : f32 to vector<8x128xf32>
    %68 = arith.select %62, %67, %26 : vector<8x128xi1>, vector<8x128xf32>
    %c1_i32 = arith.constant 1 : i32
    %69 = vector.broadcast %c1_i32 : i32 to vector<8x128xi32>
    %70 = arith.cmpi eq, %24, %69 : vector<8x128xi32>
    %c0_i32_27 = arith.constant 0 : i32
    %71 = vector.broadcast %c0_i32_27 : i32 to vector<8x128xi32>
    %72 = arith.cmpi eq, %25, %71 : vector<8x128xi32>
    %73 = arith.andi %70, %72 : vector<8x128xi1>
    %74 = vector.shape_cast %57 : vector<8x1xf32> to vector<1x8x1xf32>
    %cst_28 = arith.constant dense<0.000000e+00> : vector<1xf32>
    %75 = vector.multi_reduction <add>, %74, %cst_28 [1, 2] : vector<1x8x1xf32> to vector<1xf32>
    %76 = vector.shape_cast %75 : vector<1xf32> to vector<1x1x1xf32>
    %77 = vector.extract %76[0, 0, 0] : f32 from vector<1x1x1xf32>
    %78 = vector.broadcast %77 : f32 to vector<8x128xf32>
    %79 = arith.select %73, %78, %68 : vector<8x128xi1>, vector<8x128xf32>
    %c45_i32 = arith.constant 45 : i32
    %80 = vector.broadcast %c45_i32 : i32 to vector<8x128xi32>
    %81 = arith.cmpi sge, %15, %80 : vector<8x128xi32>
    %c70_i32_29 = arith.constant 70 : i32
    %82 = vector.broadcast %c70_i32_29 : i32 to vector<8x128xi32>
    %83 = arith.cmpi slt, %15, %82 : vector<8x128xi32>
    %84 = arith.andi %81, %83 : vector<8x128xi1>
    %cst_30 = arith.constant -1.000000e+30 : f32
    %85 = vector.broadcast %cst_30 : f32 to vector<8x128xf32>
    %86 = arith.select %84, %13, %85 : vector<8x128xi1>, vector<8x128xf32>
    %87 = vector.extract_strided_slice %16 {offsets = [0, 1], sizes = [8, 1], strides = [1, 1]} : vector<8x8xi32> to vector<8x1xi32>
    %88 = vector.broadcast %87 : vector<8x1xi32> to vector<8x128xi32>
    %89 = arith.cmpi eq, %15, %88 : vector<8x128xi32>
    %cst_31 = arith.constant 0.000000e+00 : f32
    %90 = vector.broadcast %cst_31 : f32 to vector<8x128xf32>
    %91 = arith.select %89, %13, %90 : vector<8x128xi1>, vector<8x128xf32>
    %cst_32 = arith.constant dense<0.000000e+00> : vector<8xf32>
    %92 = vector.multi_reduction <add>, %91, %cst_32 [1] : vector<8x128xf32> to vector<8xf32>
    %93 = vector.shape_cast %92 : vector<8xf32> to vector<8x1xf32>
    %cst_33 = arith.constant dense<0xFF800000> : vector<8xf32>
    %94 = vector.multi_reduction <maximumf>, %86, %cst_33 [1] : vector<8x128xf32> to vector<8xf32>
    %95 = vector.shape_cast %94 : vector<8xf32> to vector<8x1xf32>
    %96 = vector.broadcast %95 : vector<8x1xf32> to vector<8x128xf32>
    %97 = arith.subf %86, %96 : vector<8x128xf32>
    %98 = math.exp %97 : vector<8x128xf32>
    %cst_34 = arith.constant dense<0.000000e+00> : vector<8xf32>
    %99 = vector.multi_reduction <add>, %98, %cst_34 [1] : vector<8x128xf32> to vector<8xf32>
    %100 = vector.shape_cast %99 : vector<8xf32> to vector<8x1xf32>
    %101 = math.log %100 : vector<8x1xf32>
    %102 = arith.addf %95, %101 : vector<8x1xf32>
    %103 = arith.subf %102, %93 : vector<8x1xf32>
    %cst_35 = arith.constant 0.000000e+00 : f32
    %104 = vector.broadcast %cst_35 : f32 to vector<8x1xf32>
    %105 = arith.select %23, %103, %104 : vector<8x1xi1>, vector<8x1xf32>
    %106 = arith.cmpf oge, %93, %95 : vector<8x1xf32>
    %107 = arith.andi %23, %106 : vector<8x1xi1>
    %cst_36 = arith.constant 1.000000e+00 : f32
    %cst_37 = arith.constant 0.000000e+00 : f32
    %108 = vector.broadcast %cst_36 : f32 to vector<8x1xf32>
    %109 = vector.broadcast %cst_37 : f32 to vector<8x1xf32>
    %110 = arith.select %107, %108, %109 : vector<8x1xi1>, vector<8x1xf32>
    %c0_i32_38 = arith.constant 0 : i32
    %111 = vector.broadcast %c0_i32_38 : i32 to vector<8x128xi32>
    %112 = arith.cmpi eq, %24, %111 : vector<8x128xi32>
    %c1_i32_39 = arith.constant 1 : i32
    %113 = vector.broadcast %c1_i32_39 : i32 to vector<8x128xi32>
    %114 = arith.cmpi eq, %25, %113 : vector<8x128xi32>
    %115 = arith.andi %112, %114 : vector<8x128xi1>
    %116 = vector.shape_cast %105 : vector<8x1xf32> to vector<1x8x1xf32>
    %cst_40 = arith.constant dense<0.000000e+00> : vector<1xf32>
    %117 = vector.multi_reduction <add>, %116, %cst_40 [1, 2] : vector<1x8x1xf32> to vector<1xf32>
    %118 = vector.shape_cast %117 : vector<1xf32> to vector<1x1x1xf32>
    %119 = vector.extract %118[0, 0, 0] : f32 from vector<1x1x1xf32>
    %120 = vector.broadcast %119 : f32 to vector<8x128xf32>
    %121 = arith.select %115, %120, %79 : vector<8x128xi1>, vector<8x128xf32>
    %c1_i32_41 = arith.constant 1 : i32
    %122 = vector.broadcast %c1_i32_41 : i32 to vector<8x128xi32>
    %123 = arith.cmpi eq, %24, %122 : vector<8x128xi32>
    %c1_i32_42 = arith.constant 1 : i32
    %124 = vector.broadcast %c1_i32_42 : i32 to vector<8x128xi32>
    %125 = arith.cmpi eq, %25, %124 : vector<8x128xi32>
    %126 = arith.andi %123, %125 : vector<8x128xi1>
    %127 = vector.shape_cast %110 : vector<8x1xf32> to vector<1x8x1xf32>
    %cst_43 = arith.constant dense<0.000000e+00> : vector<1xf32>
    %128 = vector.multi_reduction <add>, %127, %cst_43 [1, 2] : vector<1x8x1xf32> to vector<1xf32>
    %129 = vector.shape_cast %128 : vector<1xf32> to vector<1x1x1xf32>
    %130 = vector.extract %129[0, 0, 0] : f32 from vector<1x1x1xf32>
    %131 = vector.broadcast %130 : f32 to vector<8x128xf32>
    %132 = arith.select %126, %131, %121 : vector<8x128xi1>, vector<8x128xf32>
    %c25_i32 = arith.constant 25 : i32
    %133 = vector.broadcast %c25_i32 : i32 to vector<8x128xi32>
    %134 = arith.cmpi sge, %15, %133 : vector<8x128xi32>
    %c45_i32_44 = arith.constant 45 : i32
    %135 = vector.broadcast %c45_i32_44 : i32 to vector<8x128xi32>
    %136 = arith.cmpi slt, %15, %135 : vector<8x128xi32>
    %137 = arith.andi %134, %136 : vector<8x128xi1>
    %cst_45 = arith.constant -1.000000e+30 : f32
    %138 = vector.broadcast %cst_45 : f32 to vector<8x128xf32>
    %139 = arith.select %137, %13, %138 : vector<8x128xi1>, vector<8x128xf32>
    %140 = vector.extract_strided_slice %16 {offsets = [0, 2], sizes = [8, 1], strides = [1, 1]} : vector<8x8xi32> to vector<8x1xi32>
    %141 = vector.broadcast %140 : vector<8x1xi32> to vector<8x128xi32>
    %142 = arith.cmpi eq, %15, %141 : vector<8x128xi32>
    %cst_46 = arith.constant 0.000000e+00 : f32
    %143 = vector.broadcast %cst_46 : f32 to vector<8x128xf32>
    %144 = arith.select %142, %13, %143 : vector<8x128xi1>, vector<8x128xf32>
    %cst_47 = arith.constant dense<0.000000e+00> : vector<8xf32>
    %145 = vector.multi_reduction <add>, %144, %cst_47 [1] : vector<8x128xf32> to vector<8xf32>
    %146 = vector.shape_cast %145 : vector<8xf32> to vector<8x1xf32>
    %cst_48 = arith.constant dense<0xFF800000> : vector<8xf32>
    %147 = vector.multi_reduction <maximumf>, %139, %cst_48 [1] : vector<8x128xf32> to vector<8xf32>
    %148 = vector.shape_cast %147 : vector<8xf32> to vector<8x1xf32>
    %149 = vector.broadcast %148 : vector<8x1xf32> to vector<8x128xf32>
    %150 = arith.subf %139, %149 : vector<8x128xf32>
    %151 = math.exp %150 : vector<8x128xf32>
    %cst_49 = arith.constant dense<0.000000e+00> : vector<8xf32>
    %152 = vector.multi_reduction <add>, %151, %cst_49 [1] : vector<8x128xf32> to vector<8xf32>
    %153 = vector.shape_cast %152 : vector<8xf32> to vector<8x1xf32>
    %154 = math.log %153 : vector<8x1xf32>
    %155 = arith.addf %148, %154 : vector<8x1xf32>
    %156 = arith.subf %155, %146 : vector<8x1xf32>
    %cst_50 = arith.constant 0.000000e+00 : f32
    %157 = vector.broadcast %cst_50 : f32 to vector<8x1xf32>
    %158 = arith.select %23, %156, %157 : vector<8x1xi1>, vector<8x1xf32>
    %159 = arith.cmpf oge, %146, %148 : vector<8x1xf32>
    %160 = arith.andi %23, %159 : vector<8x1xi1>
    %cst_51 = arith.constant 1.000000e+00 : f32
    %cst_52 = arith.constant 0.000000e+00 : f32
    %161 = vector.broadcast %cst_51 : f32 to vector<8x1xf32>
    %162 = vector.broadcast %cst_52 : f32 to vector<8x1xf32>
    %163 = arith.select %160, %161, %162 : vector<8x1xi1>, vector<8x1xf32>
    %c0_i32_53 = arith.constant 0 : i32
    %164 = vector.broadcast %c0_i32_53 : i32 to vector<8x128xi32>
    %165 = arith.cmpi eq, %24, %164 : vector<8x128xi32>
    %c2_i32 = arith.constant 2 : i32
    %166 = vector.broadcast %c2_i32 : i32 to vector<8x128xi32>
    %167 = arith.cmpi eq, %25, %166 : vector<8x128xi32>
    %168 = arith.andi %165, %167 : vector<8x128xi1>
    %169 = vector.shape_cast %158 : vector<8x1xf32> to vector<1x8x1xf32>
    %cst_54 = arith.constant dense<0.000000e+00> : vector<1xf32>
    %170 = vector.multi_reduction <add>, %169, %cst_54 [1, 2] : vector<1x8x1xf32> to vector<1xf32>
    %171 = vector.shape_cast %170 : vector<1xf32> to vector<1x1x1xf32>
    %172 = vector.extract %171[0, 0, 0] : f32 from vector<1x1x1xf32>
    %173 = vector.broadcast %172 : f32 to vector<8x128xf32>
    %174 = arith.select %168, %173, %132 : vector<8x128xi1>, vector<8x128xf32>
    %c1_i32_55 = arith.constant 1 : i32
    %175 = vector.broadcast %c1_i32_55 : i32 to vector<8x128xi32>
    %176 = arith.cmpi eq, %24, %175 : vector<8x128xi32>
    %c2_i32_56 = arith.constant 2 : i32
    %177 = vector.broadcast %c2_i32_56 : i32 to vector<8x128xi32>
    %178 = arith.cmpi eq, %25, %177 : vector<8x128xi32>
    %179 = arith.andi %176, %178 : vector<8x128xi1>
    %180 = vector.shape_cast %163 : vector<8x1xf32> to vector<1x8x1xf32>
    %cst_57 = arith.constant dense<0.000000e+00> : vector<1xf32>
    %181 = vector.multi_reduction <add>, %180, %cst_57 [1, 2] : vector<1x8x1xf32> to vector<1xf32>
    %182 = vector.shape_cast %181 : vector<1xf32> to vector<1x1x1xf32>
    %183 = vector.extract %182[0, 0, 0] : f32 from vector<1x1x1xf32>
    %184 = vector.broadcast %183 : f32 to vector<8x128xf32>
    %185 = arith.select %179, %184, %174 : vector<8x128xi1>, vector<8x128xf32>
    %c10_i32 = arith.constant 10 : i32
    %186 = vector.broadcast %c10_i32 : i32 to vector<8x128xi32>
    %187 = arith.cmpi sge, %15, %186 : vector<8x128xi32>
    %c25_i32_58 = arith.constant 25 : i32
    %188 = vector.broadcast %c25_i32_58 : i32 to vector<8x128xi32>
    %189 = arith.cmpi slt, %15, %188 : vector<8x128xi32>
    %190 = arith.andi %187, %189 : vector<8x128xi1>
    %cst_59 = arith.constant -1.000000e+30 : f32
    %191 = vector.broadcast %cst_59 : f32 to vector<8x128xf32>
    %192 = arith.select %190, %13, %191 : vector<8x128xi1>, vector<8x128xf32>
    %193 = vector.extract_strided_slice %16 {offsets = [0, 3], sizes = [8, 1], strides = [1, 1]} : vector<8x8xi32> to vector<8x1xi32>
    %194 = vector.broadcast %193 : vector<8x1xi32> to vector<8x128xi32>
    %195 = arith.cmpi eq, %15, %194 : vector<8x128xi32>
    %cst_60 = arith.constant 0.000000e+00 : f32
    %196 = vector.broadcast %cst_60 : f32 to vector<8x128xf32>
    %197 = arith.select %195, %13, %196 : vector<8x128xi1>, vector<8x128xf32>
    %cst_61 = arith.constant dense<0.000000e+00> : vector<8xf32>
    %198 = vector.multi_reduction <add>, %197, %cst_61 [1] : vector<8x128xf32> to vector<8xf32>
    %199 = vector.shape_cast %198 : vector<8xf32> to vector<8x1xf32>
    %cst_62 = arith.constant dense<0xFF800000> : vector<8xf32>
    %200 = vector.multi_reduction <maximumf>, %192, %cst_62 [1] : vector<8x128xf32> to vector<8xf32>
    %201 = vector.shape_cast %200 : vector<8xf32> to vector<8x1xf32>
    %202 = vector.broadcast %201 : vector<8x1xf32> to vector<8x128xf32>
    %203 = arith.subf %192, %202 : vector<8x128xf32>
    %204 = math.exp %203 : vector<8x128xf32>
    %cst_63 = arith.constant dense<0.000000e+00> : vector<8xf32>
    %205 = vector.multi_reduction <add>, %204, %cst_63 [1] : vector<8x128xf32> to vector<8xf32>
    %206 = vector.shape_cast %205 : vector<8xf32> to vector<8x1xf32>
    %207 = math.log %206 : vector<8x1xf32>
    %208 = arith.addf %201, %207 : vector<8x1xf32>
    %209 = arith.subf %208, %199 : vector<8x1xf32>
    %cst_64 = arith.constant 0.000000e+00 : f32
    %210 = vector.broadcast %cst_64 : f32 to vector<8x1xf32>
    %211 = arith.select %23, %209, %210 : vector<8x1xi1>, vector<8x1xf32>
    %212 = arith.cmpf oge, %199, %201 : vector<8x1xf32>
    %213 = arith.andi %23, %212 : vector<8x1xi1>
    %cst_65 = arith.constant 1.000000e+00 : f32
    %cst_66 = arith.constant 0.000000e+00 : f32
    %214 = vector.broadcast %cst_65 : f32 to vector<8x1xf32>
    %215 = vector.broadcast %cst_66 : f32 to vector<8x1xf32>
    %216 = arith.select %213, %214, %215 : vector<8x1xi1>, vector<8x1xf32>
    %c0_i32_67 = arith.constant 0 : i32
    %217 = vector.broadcast %c0_i32_67 : i32 to vector<8x128xi32>
    %218 = arith.cmpi eq, %24, %217 : vector<8x128xi32>
    %c3_i32 = arith.constant 3 : i32
    %219 = vector.broadcast %c3_i32 : i32 to vector<8x128xi32>
    %220 = arith.cmpi eq, %25, %219 : vector<8x128xi32>
    %221 = arith.andi %218, %220 : vector<8x128xi1>
    %222 = vector.shape_cast %211 : vector<8x1xf32> to vector<1x8x1xf32>
    %cst_68 = arith.constant dense<0.000000e+00> : vector<1xf32>
    %223 = vector.multi_reduction <add>, %222, %cst_68 [1, 2] : vector<1x8x1xf32> to vector<1xf32>
    %224 = vector.shape_cast %223 : vector<1xf32> to vector<1x1x1xf32>
    %225 = vector.extract %224[0, 0, 0] : f32 from vector<1x1x1xf32>
    %226 = vector.broadcast %225 : f32 to vector<8x128xf32>
    %227 = arith.select %221, %226, %185 : vector<8x128xi1>, vector<8x128xf32>
    %c1_i32_69 = arith.constant 1 : i32
    %228 = vector.broadcast %c1_i32_69 : i32 to vector<8x128xi32>
    %229 = arith.cmpi eq, %24, %228 : vector<8x128xi32>
    %c3_i32_70 = arith.constant 3 : i32
    %230 = vector.broadcast %c3_i32_70 : i32 to vector<8x128xi32>
    %231 = arith.cmpi eq, %25, %230 : vector<8x128xi32>
    %232 = arith.andi %229, %231 : vector<8x128xi1>
    %233 = vector.shape_cast %216 : vector<8x1xf32> to vector<1x8x1xf32>
    %cst_71 = arith.constant dense<0.000000e+00> : vector<1xf32>
    %234 = vector.multi_reduction <add>, %233, %cst_71 [1, 2] : vector<1x8x1xf32> to vector<1xf32>
    %235 = vector.shape_cast %234 : vector<1xf32> to vector<1x1x1xf32>
    %236 = vector.extract %235[0, 0, 0] : f32 from vector<1x1x1xf32>
    %237 = vector.broadcast %236 : f32 to vector<8x128xf32>
    %238 = arith.select %232, %237, %227 : vector<8x128xi1>, vector<8x128xf32>
    %c0_i32_72 = arith.constant 0 : i32
    %239 = vector.broadcast %c0_i32_72 : i32 to vector<8x128xi32>
    %240 = arith.cmpi sge, %15, %239 : vector<8x128xi32>
    %c10_i32_73 = arith.constant 10 : i32
    %241 = vector.broadcast %c10_i32_73 : i32 to vector<8x128xi32>
    %242 = arith.cmpi slt, %15, %241 : vector<8x128xi32>
    %243 = arith.andi %240, %242 : vector<8x128xi1>
    %cst_74 = arith.constant -1.000000e+30 : f32
    %244 = vector.broadcast %cst_74 : f32 to vector<8x128xf32>
    %245 = arith.select %243, %13, %244 : vector<8x128xi1>, vector<8x128xf32>
    %246 = vector.extract_strided_slice %16 {offsets = [0, 4], sizes = [8, 1], strides = [1, 1]} : vector<8x8xi32> to vector<8x1xi32>
    %247 = vector.broadcast %246 : vector<8x1xi32> to vector<8x128xi32>
    %248 = arith.cmpi eq, %15, %247 : vector<8x128xi32>
    %cst_75 = arith.constant 0.000000e+00 : f32
    %249 = vector.broadcast %cst_75 : f32 to vector<8x128xf32>
    %250 = arith.select %248, %13, %249 : vector<8x128xi1>, vector<8x128xf32>
    %cst_76 = arith.constant dense<0.000000e+00> : vector<8xf32>
    %251 = vector.multi_reduction <add>, %250, %cst_76 [1] : vector<8x128xf32> to vector<8xf32>
    %252 = vector.shape_cast %251 : vector<8xf32> to vector<8x1xf32>
    %cst_77 = arith.constant dense<0xFF800000> : vector<8xf32>
    %253 = vector.multi_reduction <maximumf>, %245, %cst_77 [1] : vector<8x128xf32> to vector<8xf32>
    %254 = vector.shape_cast %253 : vector<8xf32> to vector<8x1xf32>
    %255 = vector.broadcast %254 : vector<8x1xf32> to vector<8x128xf32>
    %256 = arith.subf %245, %255 : vector<8x128xf32>
    %257 = math.exp %256 : vector<8x128xf32>
    %cst_78 = arith.constant dense<0.000000e+00> : vector<8xf32>
    %258 = vector.multi_reduction <add>, %257, %cst_78 [1] : vector<8x128xf32> to vector<8xf32>
    %259 = vector.shape_cast %258 : vector<8xf32> to vector<8x1xf32>
    %260 = math.log %259 : vector<8x1xf32>
    %261 = arith.addf %254, %260 : vector<8x1xf32>
    %262 = arith.subf %261, %252 : vector<8x1xf32>
    %cst_79 = arith.constant 0.000000e+00 : f32
    %263 = vector.broadcast %cst_79 : f32 to vector<8x1xf32>
    %264 = arith.select %23, %262, %263 : vector<8x1xi1>, vector<8x1xf32>
    %265 = arith.cmpf oge, %252, %254 : vector<8x1xf32>
    %266 = arith.andi %23, %265 : vector<8x1xi1>
    %cst_80 = arith.constant 1.000000e+00 : f32
    %cst_81 = arith.constant 0.000000e+00 : f32
    %267 = vector.broadcast %cst_80 : f32 to vector<8x1xf32>
    %268 = vector.broadcast %cst_81 : f32 to vector<8x1xf32>
    %269 = arith.select %266, %267, %268 : vector<8x1xi1>, vector<8x1xf32>
    %c0_i32_82 = arith.constant 0 : i32
    %270 = vector.broadcast %c0_i32_82 : i32 to vector<8x128xi32>
    %271 = arith.cmpi eq, %24, %270 : vector<8x128xi32>
    %c4_i32 = arith.constant 4 : i32
    %272 = vector.broadcast %c4_i32 : i32 to vector<8x128xi32>
    %273 = arith.cmpi eq, %25, %272 : vector<8x128xi32>
    %274 = arith.andi %271, %273 : vector<8x128xi1>
    %275 = vector.shape_cast %264 : vector<8x1xf32> to vector<1x8x1xf32>
    %cst_83 = arith.constant dense<0.000000e+00> : vector<1xf32>
    %276 = vector.multi_reduction <add>, %275, %cst_83 [1, 2] : vector<1x8x1xf32> to vector<1xf32>
    %277 = vector.shape_cast %276 : vector<1xf32> to vector<1x1x1xf32>
    %278 = vector.extract %277[0, 0, 0] : f32 from vector<1x1x1xf32>
    %279 = vector.broadcast %278 : f32 to vector<8x128xf32>
    %280 = arith.select %274, %279, %238 : vector<8x128xi1>, vector<8x128xf32>
    %c1_i32_84 = arith.constant 1 : i32
    %281 = vector.broadcast %c1_i32_84 : i32 to vector<8x128xi32>
    %282 = arith.cmpi eq, %24, %281 : vector<8x128xi32>
    %c4_i32_85 = arith.constant 4 : i32
    %283 = vector.broadcast %c4_i32_85 : i32 to vector<8x128xi32>
    %284 = arith.cmpi eq, %25, %283 : vector<8x128xi32>
    %285 = arith.andi %282, %284 : vector<8x128xi1>
    %286 = vector.shape_cast %269 : vector<8x1xf32> to vector<1x8x1xf32>
    %cst_86 = arith.constant dense<0.000000e+00> : vector<1xf32>
    %287 = vector.multi_reduction <add>, %286, %cst_86 [1, 2] : vector<1x8x1xf32> to vector<1xf32>
    %288 = vector.shape_cast %287 : vector<1xf32> to vector<1x1x1xf32>
    %289 = vector.extract %288[0, 0, 0] : f32 from vector<1x1x1xf32>
    %290 = vector.broadcast %289 : f32 to vector<8x128xf32>
    %291 = arith.select %285, %290, %280 : vector<8x128xi1>, vector<8x128xf32>
    %c0_87 = arith.constant 0 : index
    %c0_88 = arith.constant 0 : index
    %c0_89 = arith.constant 0 : index
    %292 = vector.load %arg9[%c0_87, %c0_88, %c0_89] : memref<1x8x128xf32, #tpu.memory_space<vmem>>, vector<1x8x128xf32>
    %293 = vector.shape_cast %292 : vector<1x8x128xf32> to vector<8x128xf32>
    %294 = vector.shape_cast %291 : vector<8x128xf32> to vector<1x8x128xf32>
    tpu.vector_store %arg9[%c0_87, %c0_88, %c0_89], %294 {strides = array<i32>} : memref<1x8x128xf32, #tpu.memory_space<vmem>>, vector<1x8x128xf32>,
    return
  }
  func.func @transform_0(%arg0: i32, %arg1: memref<1xi32, #tpu.memory_space<smem>>) -> (i32, i32) {
    %c0_i32 = arith.constant 0 : i32
    %c0_i32_0 = arith.constant 0 : i32
    return %arg0, %c0_i32 : i32, i32
  }
  func.func @transform_1(%arg0: i32, %arg1: memref<1xi32, #tpu.memory_space<smem>>) -> (i32, i32) {
    %c0_i32 = arith.constant 0 : i32
    %c0_i32_0 = arith.constant 0 : i32
    %c0_i32_1 = arith.constant 0 : i32
    return %c0_i32, %c0_i32_0 : i32, i32
  }
  func.func @transform_2(%arg0: i32, %arg1: memref<1xi32, #tpu.memory_space<smem>>) -> (i32, i32) {
    %c0_i32 = arith.constant 0 : i32
    %c0_i32_0 = arith.constant 0 : i32
    %c0_i32_1 = arith.constant 0 : i32
    return %c0_i32, %c0_i32_0 : i32, i32
  }
  func.func @transform_3(%arg0: i32, %arg1: memref<1xi32, #tpu.memory_space<smem>>) -> (i32, i32) {
    %c0_i32 = arith.constant 0 : i32
    %c0_i32_0 = arith.constant 0 : i32
    %c0_i32_1 = arith.constant 0 : i32
    return %c0_i32, %c0_i32_0 : i32, i32
  }
  func.func @transform_4(%arg0: i32, %arg1: memref<1xi32, #tpu.memory_space<smem>>) -> (i32, i32) {
    %c0_i32 = arith.constant 0 : i32
    %c0_i32_0 = arith.constant 0 : i32
    %c0_i32_1 = arith.constant 0 : i32
    return %c0_i32, %c0_i32_0 : i32, i32
  }
  func.func @transform_5(%arg0: i32, %arg1: memref<1xi32, #tpu.memory_space<smem>>) -> (i32, i32) {
    %c0_i32 = arith.constant 0 : i32
    %c0_i32_0 = arith.constant 0 : i32
    return %arg0, %c0_i32 : i32, i32
  }
  func.func @transform_6(%arg0: i32, %arg1: memref<1xi32, #tpu.memory_space<smem>>) -> (i32, i32) {
    %c0_i32 = arith.constant 0 : i32
    %c0_i32_0 = arith.constant 0 : i32
    return %arg0, %c0_i32 : i32, i32
  }
  func.func @transform_7(%arg0: i32, %arg1: memref<1xi32, #tpu.memory_space<smem>>) -> (i32, i32, i32) {
    %c0_i32 = arith.constant 0 : i32
    %c0_i32_0 = arith.constant 0 : i32
    %c0_i32_1 = arith.constant 0 : i32
    return %arg0, %c0_i32, %c0_i32_0 : i32, i32, i32
  }
}

</mosaic_0001>

<bundles_post_ra>
// kernel: tpu_custom_call.1
= control target key start
LH: loop header
LB: loop body
LE: loop exit
PB: predicated region body
PF: predicated region fallthrough
CT: control target
= control target key end

     0   :  { %15 = vsyncpa [#allocation5], 0  ;;  %s4705_s0 = inlined_call_operand.<no memory space> [shape: s32[1], index: 0, kind: input, shape index: {}]   ;;  %s4706_s1 = inlined_call_operand.hbm [shape: bf16[8,1024], index: 1, kind: input, shape index: {}]   ;;  %s4707_s2 = inlined_call_operand.hbm [shape: bf16[1024,512], index: 2, kind: input, shape index: {}]   ;;  %s4708_s3 = inlined_call_operand.hbm [shape: f32[1,512], index: 3, kind: input, shape index: {}]   ;;  %s4709_s4 = inlined_call_operand.hbm [shape: bf16[512,128], index: 4, kind: input, shape index: {}]   ;;  %s4710_s5 = inlined_call_operand.vmem [shape: f32[1,128], index: 5, kind: input, shape index: {}]   ;;  %s4711_s6 = inlined_call_operand.hbm [shape: s32[8,8], index: 6, kind: input, shape index: {}]   ;;  %s4712_s7 = inlined_call_operand.hbm [shape: f32[8,128], index: 7, kind: output, shape index: {0}]   ;;  %s4713_s8 = inlined_call_operand.hbm [shape: f32[1,8,128], index: 8, kind: output, shape index: {1}]  }
   0x1   :  { %16 = vsyncpa [#allocation8], 0 }
   0x2   :  { %17 = vsyncpa [#allocation11], 0 }
   0x3   :  { %18 = vsyncpa [#allocation6], 0  ;;  %s35_s29 = sshll.u32 %s4707_s2, 4  ;;  %s36_s29 = int_to_ptr.hbm [resolvable:$true] %s35_s29 }
   0x4   :  { %19 = vsyncpa [#allocation15], 0  ;;  %s4413_s30 = smov [#allocation7]   ;;  %s59_s12 = sshll.u32 %s4709_s4, 4  ;;  %s60_s12 = int_to_ptr.hbm [resolvable:$true] %s59_s12 }
   0x5   :  { %s37_s9 = sshll.u32 %s4413_s30, 4  ;;  %s4414_s13 = smov 256   ;;  %s38_s9 = int_to_ptr.vmem [resolvable:$true] %s37_s9 }
   0x6   :  { %s4415_s14 = smov 16   ;;  %s4416_s15 = smov [#allocation10]  }
   0x7   :  { %43 = dma.hbm_to_vmem [thread:$0]  %s36_s29, 32768, %s38_s9, [#allocation8], %s4414_s13, %s4414_s13, %s4415_s14  }
   0x8   :  { %s61_s16 = sshll.u32 %s4416_s15, 4  ;;  %s4417_s17 = smov 64   ;;  %s62_s16 = int_to_ptr.vmem [resolvable:$true] %s61_s16 }
   0x9   :  { %s4418_s18 = smov 4   ;;  %s25_s20 = sshll.u32 %s4706_s1, 4  ;;  %s26_s20 = int_to_ptr.hbm [resolvable:$true] %s25_s20 }
   0xa   :  { %67 = dma.hbm_to_vmem [thread:$0]  %s60_s12, 4096, %s62_s16, [#allocation11], %s4417_s17, %s4417_s17, %s4418_s18  }
   0xb   :  { %s4419_s21 = smov [#allocation4]   ;;  %s49_s24 = sshll.u32 %s4708_s3, 4  ;;  %s50_s24 = int_to_ptr.hbm [resolvable:$true] %s49_s24 }
   0xc   :  { %s27_s22 = sshll.u32 %s4419_s21, 4  ;;  %s4420_s25 = smov [#allocation9]   ;;  %s28_s22 = int_to_ptr.vmem [resolvable:$true] %s27_s22 }
   0xd   :  { %30 = dma.hbm_to_vmem [thread:$0]  %s26_s20, 512, %s28_s22, [#allocation5]  }
   0xe   :  { %s51_s26 = sshll.u32 %s4420_s25, 4  ;;  %s75_s29 = sshll.u32 %s4711_s6, 4  ;;  %s52_s26 = int_to_ptr.vmem [resolvable:$true] %s51_s26  ;;  %s76_s29 = int_to_ptr.hbm [resolvable:$true] %s75_s29 }
   0xf   :  { %54 = dma.hbm_to_vmem [thread:$0]  %s50_s24, 64, %s52_s26, [#allocation8]  }
  0x10   :  { %s4421_s1 = smov [#allocation12]  }
  0x11   :  { %s77_s30 = sshll.u32 %s4421_s1, 4  ;;  %s78_s30 = int_to_ptr.vmem [resolvable:$true] %s77_s30 }
  0x12   :  { %80 = dma.hbm_to_vmem [thread:$0]  %s76_s29, 128, %s78_s30, [#allocation11]  }
  0x13   :  { %4403 = dma.done.wait [#allocation5], 512  }
  0x14   :  { %4404 = vsyncadd [#allocation5], 4294966784 }
  0x15   :  { %4405 = dma.done.wait [#allocation8], 32832  }
  0x16   :  { %4406 = vsyncadd [#allocation8], 4294934464 }
  0x17   :  { %4407 = dma.done.wait [#allocation11], 4224  }
  0x18   :  { %4408 = vsyncadd [#allocation11], 4294963072  ;;  %v2845_v0 = vld [vmem:[#allocation7 + $0xe0] sm:$0xf]  ;;  %v3913_v1 = vld [vmem:[#allocation7 + $0xec] sm:$0xf0] }
  0x19   :  { %v2973_v2 = vld [vmem:[#allocation7 + $0x1e0] sm:$0xf]  ;;  %v2846_v3 = vor.u32 %v3913_v1, %v2845_v0  ;;  %v3945_v4 = vld [vmem:[#allocation7 + $0x1ec] sm:$0xf0]  ;;  %s2703_s11 = sshll.u32 %s4712_s7, 4  ;;  %s4428_s12 = smov [#allocation13]   ;;  %s2704_s11 = int_to_ptr.hbm [resolvable:$true] %s2703_s11 }
  0x1a   :  { %v3101_v5 = vld [vmem:[#allocation7 + $0x2e0] sm:$0xf]  ;;  %v3977_v6 = vld [vmem:[#allocation7 + $0x2ec] sm:$0xf0]  ;;  %v2974_v7 = vor.u32 %v3945_v4, %v2973_v2  ;;  %s2701_s13 = sshll.u32 %s4428_s12, 4  ;;  %s4429_s21 = smov [#allocation14]   ;;  %s2702_s13 = int_to_ptr.vmem [resolvable:$true] %s2701_s13 }
  0x1b   :  { %v3102_v8 = vor.u32 %v3977_v6, %v3101_v5  ;;  %v3229_v9 = vld [vmem:[#allocation7 + $0x3e0] sm:$0xf]  ;;  %v4009_v10 = vld [vmem:[#allocation7 + $0x3ec] sm:$0xf0]  ;;  %1679 = vmatpush.bf16.msra.mxu0 %v2846_v3  ;;  %s2712_s22 = sshll.u32 %s4429_s21, 4  ;;  %s2714_s24 = sshll.u32 %s4713_s8, 4  ;;  %s2713_s22 = int_to_ptr.vmem [resolvable:$true] %s2712_s22  ;;  %s2715_s24 = int_to_ptr.hbm [resolvable:$true] %s2714_s24 }
  0x1c   :  { %v2829_v11 = vld [vmem:[#allocation7 + $0xc0] sm:$0xf]  ;;  %v3230_v12 = vor.u32 %v4009_v10, %v3229_v9  ;;  %v3909_v13 = vld [vmem:[#allocation7 + $0xcc] sm:$0xf0]  ;;  %1692 = vmatpush.bf16.msra.mxu1 %v2974_v7 }
  0x1d   :  { %v2957_v14 = vld [vmem:[#allocation7 + $0x1c0] sm:$0xf]  ;;  %v3941_v15 = vld [vmem:[#allocation7 + $0x1cc] sm:$0xf0]  ;;  %1705 = vmatpush.bf16.msra.mxu2 %v3102_v8  ;;  %v2830_v16 = vor.u32 %v3909_v13, %v2829_v11 }
  0x1e   :  { %v2958_v17 = vor.u32 %v3941_v15, %v2957_v14  ;;  %v3085_v18 = vld [vmem:[#allocation7 + $0x2c0] sm:$0xf]  ;;  %v3973_v19 = vld [vmem:[#allocation7 + $0x2cc] sm:$0xf0]  ;;  %1718 = vmatpush.bf16.msra.mxu3 %v3230_v12 }
  0x1f   :  { %v3213_v20 = vld [vmem:[#allocation7 + $0x3c0] sm:$0xf]  ;;  %v3086_v21 = vor.u32 %v3973_v19, %v3085_v18  ;;  %v4005_v22 = vld [vmem:[#allocation7 + $0x3cc] sm:$0xf0]  ;;  %1680 = vmatpush.bf16.msra.mxu0 %v2830_v16 }
  0x20   :  { %v2813_v23 = vld [vmem:[#allocation7 + $0xa0] sm:$0xf]  ;;  %v3905_v24 = vld [vmem:[#allocation7 + $0xac] sm:$0xf0]  ;;  %v3214_v25 = vor.u32 %v4005_v22, %v3213_v20  ;;  %1693 = vmatpush.bf16.msra.mxu1 %v2958_v17 }
  0x21   :  { %v2941_v26 = vld [vmem:[#allocation7 + $0x1a0] sm:$0xf]  ;;  %v3937_v27 = vld [vmem:[#allocation7 + $0x1ac] sm:$0xf0]  ;;  %v2814_v29 = vor.u32 %v3905_v24, %v2813_v23  ;;  %1706 = vmatpush.bf16.msra.mxu2 %v3086_v21 }
  0x22   :  { %v3069_v28 = vld [vmem:[#allocation7 + $0x2a0] sm:$0xf]  ;;  %v3969_v30 = vld [vmem:[#allocation7 + $0x2ac] sm:$0xf0]  ;;  %v2942_v33 = vor.u32 %v3937_v27, %v2941_v26  ;;  %1719 = vmatpush.bf16.msra.mxu3 %v3214_v25 }
  0x23   :  { %v3197_v31 = vld [vmem:[#allocation7 + $0x3a0] sm:$0xf]  ;;  %v4001_v32 = vld [vmem:[#allocation7 + $0x3ac] sm:$0xf0]  ;;  %v3070_v34 = vor.u32 %v3969_v30, %v3069_v28  ;;  %1681 = vmatpush.bf16.msra.mxu0 %v2814_v29 }
  0x24   :  { %v2797_v35 = vld [vmem:[#allocation7 + $0x80] sm:$0xf]  ;;  %v3901_v36 = vld [vmem:[#allocation7 + $0x8c] sm:$0xf0]  ;;  %v3198_v38 = vor.u32 %v4001_v32, %v3197_v31  ;;  %1694 = vmatpush.bf16.msra.mxu1 %v2942_v33 }
  0x25   :  { %v2925_v37 = vld [vmem:[#allocation7 + $0x180] sm:$0xf]  ;;  %v3933_v39 = vld [vmem:[#allocation7 + $0x18c] sm:$0xf0]  ;;  %v2798_v44 = vor.u32 %v3901_v36, %v2797_v35  ;;  %1707 = vmatpush.bf16.msra.mxu2 %v3070_v34 }
  0x26   :  { %v3053_v40 = vld [vmem:[#allocation7 + $0x280] sm:$0xf]  ;;  %v3965_v41 = vld [vmem:[#allocation7 + $0x28c] sm:$0xf0]  ;;  %v2926_v45 = vor.u32 %v3933_v39, %v2925_v37  ;;  %1720 = vmatpush.bf16.msra.mxu3 %v3198_v38 }
  0x27   :  { %v3181_v42 = vld [vmem:[#allocation7 + $0x380] sm:$0xf]  ;;  %v3997_v43 = vld [vmem:[#allocation7 + $0x38c] sm:$0xf0]  ;;  %v3054_v46 = vor.u32 %v3965_v41, %v3053_v40  ;;  %1682 = vmatpush.bf16.msra.mxu0 %v2798_v44 }
  0x28   :  { %v2781_v47 = vld [vmem:[#allocation7 + $0x60] sm:$0xf]  ;;  %v3897_v48 = vld [vmem:[#allocation7 + $0x6c] sm:$0xf0]  ;;  %v3182_v50 = vor.u32 %v3997_v43, %v3181_v42  ;;  %1695 = vmatpush.bf16.msra.mxu1 %v2926_v45 }
  0x29   :  { %v2909_v49 = vld [vmem:[#allocation7 + $0x160] sm:$0xf]  ;;  %v3929_v51 = vld [vmem:[#allocation7 + $0x16c] sm:$0xf0]  ;;  %v2782_v56 = vor.u32 %v3897_v48, %v2781_v47  ;;  %1708 = vmatpush.bf16.msra.mxu2 %v3054_v46 }
  0x2a   :  { %v3037_v52 = vld [vmem:[#allocation7 + $0x260] sm:$0xf]  ;;  %v3961_v53 = vld [vmem:[#allocation7 + $0x26c] sm:$0xf0]  ;;  %v2910_v57 = vor.u32 %v3929_v51, %v2909_v49  ;;  %1721 = vmatpush.bf16.msra.mxu3 %v3182_v50 }
  0x2b   :  { %v3165_v54 = vld [vmem:[#allocation7 + $0x360] sm:$0xf]  ;;  %v3993_v55 = vld [vmem:[#allocation7 + $0x36c] sm:$0xf0]  ;;  %v3038_v58 = vor.u32 %v3961_v53, %v3037_v52  ;;  %1683 = vmatpush.bf16.msra.mxu0 %v2782_v56 }
  0x2c   :  { %v2765_v59 = vld [vmem:[#allocation7 + $0x40] sm:$0xf]  ;;  %v3893_v60 = vld [vmem:[#allocation7 + $0x4c] sm:$0xf0]  ;;  %v3166_v62 = vor.u32 %v3993_v55, %v3165_v54  ;;  %1696 = vmatpush.bf16.msra.mxu1 %v2910_v57 }
  0x2d   :  { %v2893_v61 = vld [vmem:[#allocation7 + $0x140] sm:$0xf]  ;;  %v3925_v63 = vld [vmem:[#allocation7 + $0x14c] sm:$0xf0]  ;;  %v2766_v4 = vor.u32 %v3893_v60, %v2765_v59  ;;  %1709 = vmatpush.bf16.msra.mxu2 %v3038_v58 }
  0x2e   :  { %v3021_v0 = vld [vmem:[#allocation7 + $0x240] sm:$0xf]  ;;  %v3957_v1 = vld [vmem:[#allocation7 + $0x24c] sm:$0xf0]  ;;  %v2894_v5 = vor.u32 %v3925_v63, %v2893_v61  ;;  %1722 = vmatpush.bf16.msra.mxu3 %v3166_v62 }
  0x2f   :  { %v3149_v2 = vld [vmem:[#allocation7 + $0x340] sm:$0xf]  ;;  %v3989_v3 = vld [vmem:[#allocation7 + $0x34c] sm:$0xf0]  ;;  %v3022_v6 = vor.u32 %v3957_v1, %v3021_v0  ;;  %1684 = vmatpush.bf16.msra.mxu0 %v2766_v4 }
  0x30   :  { %v2749_v7 = vld [vmem:[#allocation7 + $0x20] sm:$0xf]  ;;  %v3889_v8 = vld [vmem:[#allocation7 + $0x2c] sm:$0xf0]  ;;  %v3150_v10 = vor.u32 %v3989_v3, %v3149_v2  ;;  %1697 = vmatpush.bf16.msra.mxu1 %v2894_v5  ;;  %v102_v2 = vld [vmem:[#allocation4 + $0x8] sm:$0xff] }
  0x31   :  { %v2877_v9 = vld [vmem:[#allocation7 + $0x120] sm:$0xf]  ;;  %v3921_v11 = vld [vmem:[#allocation7 + $0x12c] sm:$0xf0]  ;;  %v2750_v16 = vor.u32 %v3889_v8, %v2749_v7  ;;  %1710 = vmatpush.bf16.msra.mxu2 %v3022_v6  ;;  %v377_v8 = vunpack.c.l.b16 %v102_v2 }
  0x32   :  { %v3005_v12 = vld [vmem:[#allocation7 + $0x220] sm:$0xf]  ;;  %v3953_v13 = vld [vmem:[#allocation7 + $0x22c] sm:$0xf0]  ;;  %v2878_v19 = vor.u32 %v3921_v11, %v2877_v9  ;;  %1723 = vmatpush.bf16.msra.mxu3 %v3150_v10  ;;  %v378_v10 = vunpack.c.h.b16 %v102_v2 }
  0x33   :  { %v3133_v14 = vld [vmem:[#allocation7 + $0x320] sm:$0xf]  ;;  %v3985_v15 = vld [vmem:[#allocation7 + $0x32c] sm:$0xf0]  ;;  %v3006_v20 = vor.u32 %v3953_v13, %v3005_v12  ;;  %1685 = vmatpush.bf16.msra.mxu0 %v2750_v16 }
  0x34   :  { %v2733_v17 = vld [vmem:[#allocation7] sm:$0xf]  ;;  %v3885_v18 = vld [vmem:[#allocation7 + $0xc] sm:$0xf0]  ;;  %v3134_v24 = vor.u32 %v3985_v15, %v3133_v14  ;;  %1698 = vmatpush.bf16.msra.mxu1 %v2878_v19 }
  0x35   :  { %v2861_v21 = vld [vmem:[#allocation7 + $0x100] sm:$0xf]  ;;  %v3917_v22 = vld [vmem:[#allocation7 + $0x10c] sm:$0xf0]  ;;  %v2734_v31 = vor.u32 %v3885_v18, %v2733_v17  ;;  %1711 = vmatpush.bf16.msra.mxu2 %v3006_v20  ;;  %v4490_v18 = vpack.c.b16 %v377_v8, %v377_v8  ;;  %v4494_v20 = vpack.c.b16 %v378_v10, %v378_v10  ;;  %v3911_v8 = vld [vmem:[#allocation7 + $0xe4] sm:$0xf] }
  0x36   :  { %v2989_v23 = vld [vmem:[#allocation7 + $0x200] sm:$0xf]  ;;  %v3949_v25 = vld [vmem:[#allocation7 + $0x20c] sm:$0xf0]  ;;  %v2862_v35 = vor.u32 %v3917_v22, %v2861_v21  ;;  %1724 = vmatpush.bf16.msra.mxu3 %v3134_v24  ;;  %v3943_v10 = vld [vmem:[#allocation7 + $0x1e4] sm:$0xf] }
  0x37   :  { %v3117_v26 = vld [vmem:[#allocation7 + $0x300] sm:$0xf]  ;;  %v3981_v27 = vld [vmem:[#allocation7 + $0x30c] sm:$0xf0]  ;;  %v2990_v36 = vor.u32 %v3949_v25, %v2989_v23  ;;  %1686 = vmatpush.bf16.msra.mxu0 %v2734_v31 }
  0x38   :  { %v3357_v28 = vld [vmem:[#allocation7 + $0x4e0] sm:$0xf]  ;;  %v4041_v29 = vld [vmem:[#allocation7 + $0x4ec] sm:$0xf0]  ;;  %v3118_v39 = vor.u32 %v3981_v27, %v3117_v26  ;;  %1699 = vmatpush.bf16.msra.mxu1 %v2862_v35 }
  0x39   :  { %v3485_v30 = vld [vmem:[#allocation7 + $0x5e0] sm:$0xf]  ;;  %v4073_v32 = vld [vmem:[#allocation7 + $0x5ec] sm:$0xf0]  ;;  %v3358_v40 = vor.u32 %v4041_v29, %v3357_v28  ;;  %1712 = vmatpush.bf16.msra.mxu2 %v2990_v36 }
  0x3a   :  { %v3613_v33 = vld [vmem:[#allocation7 + $0x6e0] sm:$0xf]  ;;  %v4105_v34 = vld [vmem:[#allocation7 + $0x6ec] sm:$0xf0]  ;;  %v3486_v41 = vor.u32 %v4073_v32, %v3485_v30  ;;  %1725 = vmatpush.bf16.msra.mxu3 %v3118_v39 }
  0x3b   :  { %v3741_v37 = vld [vmem:[#allocation7 + $0x7e0] sm:$0xf]  ;;  %v4137_v38 = vld [vmem:[#allocation7 + $0x7ec] sm:$0xf0]  ;;  %v3614_v42 = vor.u32 %v4105_v34, %v3613_v33  ;;  %1731 = vmatpush.bf16.msrb.mxu0 %v3358_v40 }
  0x3c   :  { %v3341_v43 = vld [vmem:[#allocation7 + $0x4c0] sm:$0xf]  ;;  %v4037_v44 = vld [vmem:[#allocation7 + $0x4cc] sm:$0xf0]  ;;  %v3742_v46 = vor.u32 %v4137_v38, %v3741_v37  ;;  %1744 = vmatpush.bf16.msrb.mxu1 %v3486_v41  ;;  %1713 = vmatmul.bf16.vlgmr.msra.gmra.mxu2 %v4490_v18 }
  0x3d   :  { %v3469_v45 = vld [vmem:[#allocation7 + $0x5c0] sm:$0xf]  ;;  %v4069_v47 = vld [vmem:[#allocation7 + $0x5cc] sm:$0xf0]  ;;  %v3342_v52 = vor.u32 %v4037_v44, %v3341_v43  ;;  %1757 = vmatpush.bf16.msrb.mxu2 %v3614_v42  ;;  %1726 = vmatmul.bf16.vlgmr.msra.gmra.mxu3 %v4494_v20 }
  0x3e   :  { %v3597_v48 = vld [vmem:[#allocation7 + $0x6c0] sm:$0xf]  ;;  %v4101_v49 = vld [vmem:[#allocation7 + $0x6cc] sm:$0xf0]  ;;  %v3470_v54 = vor.u32 %v4069_v47, %v3469_v45  ;;  %1770 = vmatpush.bf16.msrb.mxu3 %v3742_v46 }
  0x3f   :  { %v3725_v50 = vld [vmem:[#allocation7 + $0x7c0] sm:$0xf]  ;;  %v4133_v51 = vld [vmem:[#allocation7 + $0x7cc] sm:$0xf0]  ;;  %v3598_v55 = vor.u32 %v4101_v49, %v3597_v48  ;;  %1732 = vmatpush.bf16.msrb.mxu0 %v3342_v52 }
  0x40   :  { %v3325_v53 = vld [vmem:[#allocation7 + $0x4a0] sm:$0xf]  ;;  %v4033_v56 = vld [vmem:[#allocation7 + $0x4ac] sm:$0xf0]  ;;  %v3726_v59 = vor.u32 %v4133_v51, %v3725_v50  ;;  %1745 = vmatpush.bf16.msrb.mxu1 %v3470_v54 }
  0x41   :  { %v3453_v57 = vld [vmem:[#allocation7 + $0x5a0] sm:$0xf]  ;;  %v4065_v58 = vld [vmem:[#allocation7 + $0x5ac] sm:$0xf0]  ;;  %v3326_v0 = vor.u32 %v4033_v56, %v3325_v53  ;;  %1758 = vmatpush.bf16.msrb.mxu2 %v3598_v55 }
  0x42   :  { %v3581_v60 = vld [vmem:[#allocation7 + $0x6a0] sm:$0xf]  ;;  %v4097_v61 = vld [vmem:[#allocation7 + $0x6ac] sm:$0xf0]  ;;  %v3454_v1 = vor.u32 %v4065_v58, %v3453_v57  ;;  %1771 = vmatpush.bf16.msrb.mxu3 %v3726_v59 }
  0x43   :  { %v3709_v62 = vld [vmem:[#allocation7 + $0x7a0] sm:$0xf]  ;;  %v4129_v63 = vld [vmem:[#allocation7 + $0x7ac] sm:$0xf0]  ;;  %v3582_v4 = vor.u32 %v4097_v61, %v3581_v60  ;;  %1733 = vmatpush.bf16.msrb.mxu0 %v3326_v0 }
  0x44   :  { %v101_v3 = vld [vmem:[#allocation4] sm:$0xff]  ;;  %v4029_v6 = vld [vmem:[#allocation7 + $0x48c] sm:$0xf0]  ;;  %v3710_v11 = vor.u32 %v4129_v63, %v3709_v62  ;;  %1746 = vmatpush.bf16.msrb.mxu1 %v3454_v1 }
  0x45   :  { %v3309_v5 = vld [vmem:[#allocation7 + $0x480] sm:$0xf]  ;;  %v375_v9 = vunpack.c.l.b16 %v101_v3  ;;  %v4061_v12 = vld [vmem:[#allocation7 + $0x58c] sm:$0xf0]  ;;  %v376_v15 = vunpack.c.h.b16 %v101_v3  ;;  %1759 = vmatpush.bf16.msrb.mxu2 %v3582_v4  ;;  %v104_v3 = vld [vmem:[#allocation4 + $0x18] sm:$0xff] }
  0x46   :  { %v3437_v7 = vld [vmem:[#allocation7 + $0x580] sm:$0xf]  ;;  %v4093_v14 = vld [vmem:[#allocation7 + $0x68c] sm:$0xf0]  ;;  %v3310_v21 = vor.u32 %v4029_v6, %v3309_v5  ;;  %1772 = vmatpush.bf16.msrb.mxu3 %v3710_v11 }
  0x47   :  { %v3565_v13 = vld [vmem:[#allocation7 + $0x680] sm:$0xf]  ;;  %v4125_v17 = vld [vmem:[#allocation7 + $0x78c] sm:$0xf0]  ;;  %v4492_v19 = vpack.c.b16 %v375_v9, %v375_v9  ;;  %v4496_v22 = vpack.c.b16 %v376_v15, %v376_v15  ;;  %v3438_v23 = vor.u32 %v4061_v12, %v3437_v7  ;;  %v2847_v9 = vld [vmem:[#allocation7 + $0xf0] sm:$0xf0]  ;;  %v381_v15 = vunpack.c.l.b16 %v104_v3 }
  0x48   :  { %v3693_v16 = vld [vmem:[#allocation7 + $0x780] sm:$0xf]  ;;  %v3566_v24 = vor.u32 %v4093_v14, %v3565_v13  ;;  %v4025_v26 = vld [vmem:[#allocation7 + $0x46c] sm:$0xf0]  ;;  %1734 = vmatpush.bf16.msrb.mxu0 %v3310_v21  ;;  %v2975_v12 = vld [vmem:[#allocation7 + $0x1f0] sm:$0xf0] }
  0x49   :  { %v3293_v25 = vld [vmem:[#allocation7 + $0x460] sm:$0xf]  ;;  %v3694_v28 = vor.u32 %v4125_v17, %v3693_v16  ;;  %v4057_v29 = vld [vmem:[#allocation7 + $0x56c] sm:$0xf0]  ;;  %1687 = vmatmul.bf16.vlgmr.msra.gmra.mxu0 %v4492_v19  ;;  %1700 = vmatmul.bf16.vlgmr.msra.gmra.mxu1 %v4496_v22  ;;  %v3975_v13 = vld [vmem:[#allocation7 + $0x2e4] sm:$0xf] }
  0x4a   :  { %v3421_v27 = vld [vmem:[#allocation7 + $0x560] sm:$0xf]  ;;  %v4089_v31 = vld [vmem:[#allocation7 + $0x66c] sm:$0xf0]  ;;  %v3294_v34 = vor.u32 %v4025_v26, %v3293_v25  ;;  %1747 = vmatpush.bf16.msrb.mxu1 %v3438_v23  ;;  %1760 = vmatpush.bf16.msrb.mxu2 %v3566_v24  ;;  %v3103_v14 = vld [vmem:[#allocation7 + $0x2f0] sm:$0xf0]  ;;  %v382_v25 = vunpack.c.h.b16 %v104_v3 }
  0x4b   :  { %v3549_v30 = vld [vmem:[#allocation7 + $0x660] sm:$0xf]  ;;  %v4121_v33 = vld [vmem:[#allocation7 + $0x76c] sm:$0xf0]  ;;  %v3422_v35 = vor.u32 %v4057_v29, %v3421_v27  ;;  %1773 = vmatpush.bf16.msrb.mxu3 %v3694_v28  ;;  %v4007_v21 = vld [vmem:[#allocation7 + $0x3e4] sm:$0xf]  ;;  %v2850_v27 = vor.u32 %v3911_v8, %v2847_v9  ;;  %v2978_v29 = vor.u32 %v3943_v10, %v2975_v12 }
  0x4c   :  { %v3677_v32 = vld [vmem:[#allocation7 + $0x760] sm:$0xf]  ;;  %v3550_v36 = vor.u32 %v4089_v31, %v3549_v30  ;;  %v4021_v38 = vld [vmem:[#allocation7 + $0x44c] sm:$0xf0]  ;;  %1735 = vmatpush.bf16.msrb.mxu0 %v3294_v34  ;;  %v3231_v23 = vld [vmem:[#allocation7 + $0x3f0] sm:$0xf0]  ;;  %v3106_v30 = vor.u32 %v3975_v13, %v3103_v14 }
  0x4d   :  { %v3277_v37 = vld [vmem:[#allocation7 + $0x440] sm:$0xf]  ;;  %v3678_v40 = vor.u32 %v4121_v33, %v3677_v32  ;;  %v4053_v41 = vld [vmem:[#allocation7 + $0x54c] sm:$0xf0]  ;;  %v3907_v31 = vld [vmem:[#allocation7 + $0xc4] sm:$0xf]  ;;  %v3234_v34 = vor.u32 %v4007_v21, %v3231_v23 }
  0x4e   :  { %v3405_v39 = vld [vmem:[#allocation7 + $0x540] sm:$0xf]  ;;  %v4085_v43 = vld [vmem:[#allocation7 + $0x64c] sm:$0xf0]  ;;  %v3278_v46 = vor.u32 %v4021_v38, %v3277_v37  ;;  %1748 = vmatpush.bf16.msrb.mxu1 %v3422_v35  ;;  %1761 = vmatpush.bf16.msrb.mxu2 %v3550_v36  ;;  %v2831_v32 = vld [vmem:[#allocation7 + $0xd0] sm:$0xf0]  ;;  %v4502_v38 = vpack.c.b16 %v381_v15, %v381_v15 }
  0x4f   :  { %v3533_v42 = vld [vmem:[#allocation7 + $0x640] sm:$0xf]  ;;  %v4117_v45 = vld [vmem:[#allocation7 + $0x74c] sm:$0xf0]  ;;  %v3406_v47 = vor.u32 %v4053_v41, %v3405_v39  ;;  %1774 = vmatpush.bf16.msrb.mxu3 %v3678_v40  ;;  %v3939_v33 = vld [vmem:[#allocation7 + $0x1c4] sm:$0xf] }
  0x50   :  { %v3661_v44 = vld [vmem:[#allocation7 + $0x740] sm:$0xf]  ;;  %v3534_v48 = vor.u32 %v4085_v43, %v3533_v42  ;;  %v4017_v50 = vld [vmem:[#allocation7 + $0x42c] sm:$0xf0]  ;;  %1736 = vmatpush.bf16.msrb.mxu0 %v3278_v46  ;;  %v2959_v35 = vld [vmem:[#allocation7 + $0x1d0] sm:$0xf0]  ;;  %v4506_v42 = vpack.c.b16 %v382_v25, %v382_v25  ;;  %v2834_v43 = vor.u32 %v3907_v31, %v2831_v32 }
  0x51   :  { %v3261_v49 = vld [vmem:[#allocation7 + $0x420] sm:$0xf]  ;;  %v3662_v52 = vor.u32 %v4117_v45, %v3661_v44  ;;  %v4049_v53 = vld [vmem:[#allocation7 + $0x52c] sm:$0xf0]  ;;  %v3971_v36 = vld [vmem:[#allocation7 + $0x2c4] sm:$0xf]  ;;  %v2962_v45 = vor.u32 %v3939_v33, %v2959_v35 }
  0x52   :  { %v3389_v51 = vld [vmem:[#allocation7 + $0x520] sm:$0xf]  ;;  %v4081_v55 = vld [vmem:[#allocation7 + $0x62c] sm:$0xf0]  ;;  %v3262_v59 = vor.u32 %v4017_v50, %v3261_v49  ;;  %1749 = vmatpush.bf16.msrb.mxu1 %v3406_v47  ;;  %1762 = vmatpush.bf16.msrb.mxu2 %v3534_v48  ;;  %v3087_v37 = vld [vmem:[#allocation7 + $0x2d0] sm:$0xf0] }
  0x53   :  { %v3517_v54 = vld [vmem:[#allocation7 + $0x620] sm:$0xf]  ;;  %v4113_v57 = vld [vmem:[#allocation7 + $0x72c] sm:$0xf0]  ;;  %v3390_v63 = vor.u32 %v4049_v53, %v3389_v51  ;;  %1775 = vmatpush.bf16.msrb.mxu3 %v3662_v52  ;;  %v4003_v39 = vld [vmem:[#allocation7 + $0x3c4] sm:$0xf]  ;;  %v3090_v46 = vor.u32 %v3971_v36, %v3087_v37 }
  0x54   :  { %v3645_v56 = vld [vmem:[#allocation7 + $0x720] sm:$0xf]  ;;  %v4013_v60 = vld [vmem:[#allocation7 + $0x40c] sm:$0xf0]  ;;  %v3518_v0 = vor.u32 %v4081_v55, %v3517_v54  ;;  %1737 = vmatpush.bf16.msrb.mxu0 %v3262_v59  ;;  %v3215_v40 = vld [vmem:[#allocation7 + $0x3d0] sm:$0xf0] }
  0x55   :  { %v3245_v58 = vld [vmem:[#allocation7 + $0x400] sm:$0xf]  ;;  %v4045_v62 = vld [vmem:[#allocation7 + $0x50c] sm:$0xf0]  ;;  %v3646_v4 = vor.u32 %v4113_v57, %v3645_v56  ;;  %v3903_v47 = vld [vmem:[#allocation7 + $0xa4] sm:$0xf]  ;;  %v3218_v50 = vor.u32 %v4003_v39, %v3215_v40 }
  0x56   :  { %v3373_v61 = vld [vmem:[#allocation7 + $0x500] sm:$0xf]  ;;  %v4077_v2 = vld [vmem:[#allocation7 + $0x60c] sm:$0xf0]  ;;  %v3246_v11 = vor.u32 %v4013_v60, %v3245_v58  ;;  %1750 = vmatpush.bf16.msrb.mxu1 %v3390_v63  ;;  %1763 = vmatpush.bf16.msrb.mxu2 %v3518_v0  ;;  %v2815_v48 = vld [vmem:[#allocation7 + $0xb0] sm:$0xf0] }
  0x57   :  { %v3501_v1 = vld [vmem:[#allocation7 + $0x600] sm:$0xf]  ;;  %v4109_v6 = vld [vmem:[#allocation7 + $0x70c] sm:$0xf0]  ;;  %v3374_v16 = vor.u32 %v4045_v62, %v3373_v61  ;;  %1776 = vmatpush.bf16.msrb.mxu3 %v3646_v4  ;;  %v3935_v49 = vld [vmem:[#allocation7 + $0x1a4] sm:$0xf]  ;;  %v2818_v56 = vor.u32 %v3903_v47, %v2815_v48 }
  0x58   :  { %v3629_v5 = vld [vmem:[#allocation7 + $0x700] sm:$0xf]  ;;  %v103_v7 = vld [vmem:[#allocation4 + $0x10] sm:$0xff]  ;;  %v3502_v17 = vor.u32 %v4077_v2, %v3501_v1  ;;  %1738 = vmatpush.bf16.msrb.mxu0 %v3246_v11  ;;  %v3967_v52 = vld [vmem:[#allocation7 + $0x2a4] sm:$0xf] }
  0x59   :  { %v379_v24 = vunpack.c.l.b16 %v103_v7  ;;  %v3630_v26 = vor.u32 %v4109_v6, %v3629_v5  ;;  %v380_v28 = vunpack.c.h.b16 %v103_v7  ;;  %v2943_v51 = vld [vmem:[#allocation7 + $0x1b0] sm:$0xf0]  ;;  %v3999_v54 = vld [vmem:[#allocation7 + $0x3a4] sm:$0xf] }
  0x5a   :  { %1751 = vmatpush.bf16.msrb.mxu1 %v3374_v16  ;;  %1764 = vmatpush.bf16.msrb.mxu2 %v3502_v17  ;;  %v3071_v53 = vld [vmem:[#allocation7 + $0x2b0] sm:$0xf0]  ;;  %v2946_v57 = vor.u32 %v3935_v49, %v2943_v51  ;;  %v3899_v59 = vld [vmem:[#allocation7 + $0x84] sm:$0xf] }
  0x5b   :  { %v4504_v41 = vpack.c.b16 %v379_v24, %v379_v24  ;;  %1777 = vmatpush.bf16.msrb.mxu3 %v3630_v26  ;;  %v4508_v44 = vpack.c.b16 %v380_v28, %v380_v28  ;;  %v3199_v55 = vld [vmem:[#allocation7 + $0x3b0] sm:$0xf0]  ;;  %v3074_v58 = vor.u32 %v3967_v52, %v3071_v53  ;;  %v3931_v61 = vld [vmem:[#allocation7 + $0x184] sm:$0xf] }
  0x5c   :  { %1783 = vmatpush.bf16.msra.mxu0 %v2850_v27  ;;  %v2799_v60 = vld [vmem:[#allocation7 + $0x90] sm:$0xf0]  ;;  %v3202_v62 = vor.u32 %v3999_v54, %v3199_v55  ;;  %v3963_v0 = vld [vmem:[#allocation7 + $0x284] sm:$0xf] }
  0x5d   :  { %1765 = vmatmul.bf16.vlgmr.msrb.gmra.mxu2 %v4502_v38  ;;  %1739 = vmatmul.bf16.vlgmr.msrb.gmra.mxu0 %v4504_v41  ;;  %v2927_v63 = vld [vmem:[#allocation7 + $0x190] sm:$0xf0]  ;;  %v3995_v2 = vld [vmem:[#allocation7 + $0x384] sm:$0xf]  ;;  %v2802_v4 = vor.u32 %v3899_v59, %v2799_v60 }
  0x5e   :  { %1796 = vmatpush.bf16.msra.mxu1 %v2978_v29  ;;  %1809 = vmatpush.bf16.msra.mxu2 %v3106_v30  ;;  %v3055_v1 = vld [vmem:[#allocation7 + $0x290] sm:$0xf0]  ;;  %v2930_v5 = vor.u32 %v3931_v61, %v2927_v63  ;;  %v3895_v7 = vld [vmem:[#allocation7 + $0x64] sm:$0xf] }
  0x5f   :  { %1822 = vmatpush.bf16.msra.mxu3 %v3234_v34  ;;  %1752 = vmatmul.bf16.vlgmr.msrb.gmra.mxu1 %v4508_v44  ;;  %v3183_v3 = vld [vmem:[#allocation7 + $0x390] sm:$0xf0]  ;;  %v3058_v6 = vor.u32 %v3963_v0, %v3055_v1  ;;  %v3927_v9 = vld [vmem:[#allocation7 + $0x164] sm:$0xf] }
  0x60   :  { %1778 = vmatmul.bf16.vlgmr.msrb.gmra.mxu3 %v4506_v42  ;;  %1784 = vmatpush.bf16.msra.mxu0 %v2834_v43  ;;  %v2783_v8 = vld [vmem:[#allocation7 + $0x70] sm:$0xf0]  ;;  %v3186_v10 = vor.u32 %v3995_v2, %v3183_v3  ;;  %v3959_v12 = vld [vmem:[#allocation7 + $0x264] sm:$0xf] }
  0x61   :  { %v2911_v11 = vld [vmem:[#allocation7 + $0x170] sm:$0xf0]  ;;  %v3991_v14 = vld [vmem:[#allocation7 + $0x364] sm:$0xf]  ;;  %v2786_v16 = vor.u32 %v3895_v7, %v2783_v8 }
  0x62   :  { %1797 = vmatpush.bf16.msra.mxu1 %v2962_v45  ;;  %1810 = vmatpush.bf16.msra.mxu2 %v3090_v46  ;;  %v3039_v13 = vld [vmem:[#allocation7 + $0x270] sm:$0xf0]  ;;  %v2914_v17 = vor.u32 %v3927_v9, %v2911_v11  ;;  %v3891_v23 = vld [vmem:[#allocation7 + $0x44] sm:$0xf] }
  0x63   :  { %1823 = vmatpush.bf16.msra.mxu3 %v3218_v50  ;;  %v3167_v15 = vld [vmem:[#allocation7 + $0x370] sm:$0xf0]  ;;  %v3042_v21 = vor.u32 %v3959_v12, %v3039_v13  ;;  %v3923_v25 = vld [vmem:[#allocation7 + $0x144] sm:$0xf] }
  0x64   :  { %1785 = vmatpush.bf16.msra.mxu0 %v2818_v56  ;;  %v2767_v24 = vld [vmem:[#allocation7 + $0x50] sm:$0xf0]  ;;  %v3170_v26 = vor.u32 %v3991_v14, %v3167_v15  ;;  %v3955_v28 = vld [vmem:[#allocation7 + $0x244] sm:$0xf] }
  0x65   :  { %v2895_v27 = vld [vmem:[#allocation7 + $0x150] sm:$0xf0]  ;;  %v3987_v30 = vld [vmem:[#allocation7 + $0x344] sm:$0xf]  ;;  %v2770_v32 = vor.u32 %v3891_v23, %v2767_v24 }
  0x66   :  { %1798 = vmatpush.bf16.msra.mxu1 %v2946_v57  ;;  %1811 = vmatpush.bf16.msra.mxu2 %v3074_v58  ;;  %v3023_v29 = vld [vmem:[#allocation7 + $0x250] sm:$0xf0]  ;;  %v2898_v33 = vor.u32 %v3923_v25, %v2895_v27  ;;  %v3887_v35 = vld [vmem:[#allocation7 + $0x24] sm:$0xf] }
  0x67   :  { %1824 = vmatpush.bf16.msra.mxu3 %v3202_v62  ;;  %v3151_v31 = vld [vmem:[#allocation7 + $0x350] sm:$0xf0]  ;;  %v3026_v34 = vor.u32 %v3955_v28, %v3023_v29  ;;  %v3919_v37 = vld [vmem:[#allocation7 + $0x124] sm:$0xf] }
  0x68   :  { %1786 = vmatpush.bf16.msra.mxu0 %v2802_v4  ;;  %v2751_v36 = vld [vmem:[#allocation7 + $0x30] sm:$0xf0]  ;;  %v3154_v39 = vor.u32 %v3987_v30, %v3151_v31  ;;  %v3951_v43 = vld [vmem:[#allocation7 + $0x224] sm:$0xf] }
  0x69   :  { %v2879_v40 = vld [vmem:[#allocation7 + $0x130] sm:$0xf0]  ;;  %v3983_v46 = vld [vmem:[#allocation7 + $0x324] sm:$0xf]  ;;  %v2754_v48 = vor.u32 %v3887_v35, %v2751_v36 }
  0x6a   :  { %1799 = vmatpush.bf16.msra.mxu1 %v2930_v5  ;;  %1812 = vmatpush.bf16.msra.mxu2 %v3058_v6  ;;  %v3007_v45 = vld [vmem:[#allocation7 + $0x230] sm:$0xf0]  ;;  %v3883_v49 = vld [vmem:[#allocation7 + $0x4] sm:$0xf]  ;;  %v2882_v51 = vor.u32 %v3919_v37, %v2879_v40 }
  0x6b   :  { %1825 = vmatpush.bf16.msra.mxu3 %v3186_v10  ;;  %v3135_v47 = vld [vmem:[#allocation7 + $0x330] sm:$0xf0]  ;;  %v3010_v52 = vor.u32 %v3951_v43, %v3007_v45  ;;  %v3915_v53 = vld [vmem:[#allocation7 + $0x104] sm:$0xf] }
  0x6c   :  { %1787 = vmatpush.bf16.msra.mxu0 %v2786_v16  ;;  %v2735_v50 = vld [vmem:[#allocation7 + $0x10] sm:$0xf0]  ;;  %v3947_v55 = vld [vmem:[#allocation7 + $0x204] sm:$0xf]  ;;  %v3138_v56 = vor.u32 %v3983_v46, %v3135_v47 }
  0x6d   :  { %v2863_v54 = vld [vmem:[#allocation7 + $0x110] sm:$0xf0]  ;;  %v3979_v58 = vld [vmem:[#allocation7 + $0x304] sm:$0xf]  ;;  %v2738_v63 = vor.u32 %v3883_v49, %v2735_v50 }
  0x6e   :  { %1800 = vmatpush.bf16.msra.mxu1 %v2914_v17  ;;  %1813 = vmatpush.bf16.msra.mxu2 %v3042_v21  ;;  %v2991_v57 = vld [vmem:[#allocation7 + $0x210] sm:$0xf0]  ;;  %v4039_v60 = vld [vmem:[#allocation7 + $0x4e4] sm:$0xf]  ;;  %v2866_v3 = vor.u32 %v3915_v53, %v2863_v54 }
  0x6f   :  { %1826 = vmatpush.bf16.msra.mxu3 %v3170_v26  ;;  %v3119_v59 = vld [vmem:[#allocation7 + $0x310] sm:$0xf0]  ;;  %v4071_v62 = vld [vmem:[#allocation7 + $0x5e4] sm:$0xf]  ;;  %v2994_v4 = vor.u32 %v3947_v55, %v2991_v57 }
  0x70   :  { %1788 = vmatpush.bf16.msra.mxu0 %v2770_v32  ;;  %v3359_v61 = vld [vmem:[#allocation7 + $0x4f0] sm:$0xf0]  ;;  %v4103_v1 = vld [vmem:[#allocation7 + $0x6e4] sm:$0xf]  ;;  %v3122_v7 = vor.u32 %v3979_v58, %v3119_v59 }
  0x71   :  { %v3487_v0 = vld [vmem:[#allocation7 + $0x5f0] sm:$0xf0]  ;;  %v4135_v5 = vld [vmem:[#allocation7 + $0x7e4] sm:$0xf]  ;;  %v3362_v8 = vor.u32 %v4039_v60, %v3359_v61 }
  0x72   :  { %1801 = vmatpush.bf16.msra.mxu1 %v2898_v33  ;;  %1814 = vmatpush.bf16.msra.mxu2 %v3026_v34  ;;  %v3615_v2 = vld [vmem:[#allocation7 + $0x6f0] sm:$0xf0]  ;;  %v3490_v9 = vor.u32 %v4071_v62, %v3487_v0  ;;  %v4035_v11 = vld [vmem:[#allocation7 + $0x4c4] sm:$0xf] }
  0x73   :  { %1827 = vmatpush.bf16.msra.mxu3 %v3154_v39  ;;  %v3743_v6 = vld [vmem:[#allocation7 + $0x7f0] sm:$0xf0]  ;;  %v3618_v10 = vor.u32 %v4103_v1, %v3615_v2  ;;  %v4067_v13 = vld [vmem:[#allocation7 + $0x5c4] sm:$0xf] }
  0x74   :  { %1789 = vmatpush.bf16.msra.mxu0 %v2754_v48  ;;  %v3343_v12 = vld [vmem:[#allocation7 + $0x4d0] sm:$0xf0]  ;;  %v3746_v14 = vor.u32 %v4135_v5, %v3743_v6  ;;  %v4099_v16 = vld [vmem:[#allocation7 + $0x6c4] sm:$0xf] }
  0x75   :  { %v3471_v15 = vld [vmem:[#allocation7 + $0x5d0] sm:$0xf0]  ;;  %v4131_v21 = vld [vmem:[#allocation7 + $0x7c4] sm:$0xf]  ;;  %v3346_v24 = vor.u32 %v4035_v11, %v3343_v12 }
  0x76   :  { %1802 = vmatpush.bf16.msra.mxu1 %v2882_v51  ;;  %1815 = vmatpush.bf16.msra.mxu2 %v3010_v52  ;;  %v3599_v17 = vld [vmem:[#allocation7 + $0x6d0] sm:$0xf0]  ;;  %v3474_v25 = vor.u32 %v4067_v13, %v3471_v15  ;;  %v4031_v27 = vld [vmem:[#allocation7 + $0x4a4] sm:$0xf] }
  0x77   :  { %1828 = vmatpush.bf16.msra.mxu3 %v3138_v56  ;;  %v3727_v23 = vld [vmem:[#allocation7 + $0x7d0] sm:$0xf0]  ;;  %v3602_v26 = vor.u32 %v4099_v16, %v3599_v17  ;;  %v4063_v29 = vld [vmem:[#allocation7 + $0x5a4] sm:$0xf] }
  0x78   :  { %1790 = vmatpush.bf16.msra.mxu0 %v2738_v63  ;;  %v3327_v28 = vld [vmem:[#allocation7 + $0x4b0] sm:$0xf0]  ;;  %v3730_v30 = vor.u32 %v4131_v21, %v3727_v23  ;;  %v4095_v32 = vld [vmem:[#allocation7 + $0x6a4] sm:$0xf] }
  0x79   :  { %v3455_v31 = vld [vmem:[#allocation7 + $0x5b0] sm:$0xf0]  ;;  %v4127_v34 = vld [vmem:[#allocation7 + $0x7a4] sm:$0xf]  ;;  %v3330_v36 = vor.u32 %v4031_v27, %v3327_v28 }
  0x7a   :  { %1803 = vmatpush.bf16.msra.mxu1 %v2866_v3  ;;  %1816 = vmatpush.bf16.msra.mxu2 %v2994_v4  ;;  %v3583_v33 = vld [vmem:[#allocation7 + $0x6b0] sm:$0xf0]  ;;  %v3458_v37 = vor.u32 %v4063_v29, %v3455_v31  ;;  %v4027_v40 = vld [vmem:[#allocation7 + $0x484] sm:$0xf] }
  0x7b   :  { %1829 = vmatpush.bf16.msra.mxu3 %v3122_v7  ;;  %v3711_v35 = vld [vmem:[#allocation7 + $0x7b0] sm:$0xf0]  ;;  %1791 = vmatmul.bf16.vlgmr.msra.gmra.mxu0 %v4492_v19  ;;  %v3586_v39 = vor.u32 %v4095_v32, %v3583_v33  ;;  %v4059_v45 = vld [vmem:[#allocation7 + $0x584] sm:$0xf] }
  0x7c   :  { %1835 = vmatpush.bf16.msrb.mxu0 %v3362_v8  ;;  %v3311_v43 = vld [vmem:[#allocation7 + $0x490] sm:$0xf0]  ;;  %v3714_v46 = vor.u32 %v4127_v34, %v3711_v35  ;;  %v4091_v48 = vld [vmem:[#allocation7 + $0x684] sm:$0xf] }
  0x7d   :  { %1817 = vmatmul.bf16.vlgmr.msra.gmra.mxu2 %v4490_v18  ;;  %1804 = vmatmul.bf16.vlgmr.msra.gmra.mxu1 %v4496_v22  ;;  %v3439_v47 = vld [vmem:[#allocation7 + $0x590] sm:$0xf0]  ;;  %v4123_v50 = vld [vmem:[#allocation7 + $0x784] sm:$0xf]  ;;  %v3314_v52 = vor.u32 %v4027_v40, %v3311_v43  ;;  %v2853_v43 = vld [vmem:[#allocation7 + $0xe8] sm:$0xf] }
  0x7e   :  { %1848 = vmatpush.bf16.msrb.mxu1 %v3490_v9  ;;  %1861 = vmatpush.bf16.msrb.mxu2 %v3618_v10  ;;  %v3567_v49 = vld [vmem:[#allocation7 + $0x690] sm:$0xf0]  ;;  %v3442_v53 = vor.u32 %v4059_v45, %v3439_v47  ;;  %v4023_v55 = vld [vmem:[#allocation7 + $0x464] sm:$0xf]  ;;  %v3914_v45 = vld [vmem:[#allocation7 + $0xf4] sm:$0xf0] }
  0x7f   :  { %1874 = vmatpush.bf16.msrb.mxu3 %v3746_v14  ;;  %v3695_v51 = vld [vmem:[#allocation7 + $0x790] sm:$0xf0]  ;;  %v3570_v54 = vor.u32 %v4091_v48, %v3567_v49  ;;  %v4055_v57 = vld [vmem:[#allocation7 + $0x564] sm:$0xf]  ;;  %v3946_v48 = vld [vmem:[#allocation7 + $0x1f4] sm:$0xf0] }
  0x80   :  { %1830 = vmatmul.bf16.vlgmr.msra.gmra.mxu3 %v4494_v20  ;;  %1836 = vmatpush.bf16.msrb.mxu0 %v3346_v24  ;;  %v3295_v56 = vld [vmem:[#allocation7 + $0x470] sm:$0xf0]  ;;  %v3698_v58 = vor.u32 %v4123_v50, %v3695_v51  ;;  %v4087_v60 = vld [vmem:[#allocation7 + $0x664] sm:$0xf]  ;;  %v3109_v49 = vld [vmem:[#allocation7 + $0x2e8] sm:$0xf] }
  0x81   :  { %v3423_v59 = vld [vmem:[#allocation7 + $0x570] sm:$0xf0]  ;;  %v4119_v62 = vld [vmem:[#allocation7 + $0x764] sm:$0xf]  ;;  %v3298_v0 = vor.u32 %v4023_v55, %v3295_v56  ;;  %v3978_v50 = vld [vmem:[#allocation7 + $0x2f4] sm:$0xf0]  ;;  %v2854_v56 = vor.u32 %v3914_v45, %v2853_v43 }
  0x82   :  { %1849 = vmatpush.bf16.msrb.mxu1 %v3474_v25  ;;  %1862 = vmatpush.bf16.msrb.mxu2 %v3602_v26  ;;  %v3551_v61 = vld [vmem:[#allocation7 + $0x670] sm:$0xf0]  ;;  %v3426_v1 = vor.u32 %v4055_v57, %v3423_v59  ;;  %v4019_v3 = vld [vmem:[#allocation7 + $0x444] sm:$0xf]  ;;  %v2837_v59 = vld [vmem:[#allocation7 + $0xc8] sm:$0xf] }
  0x83   :  { %1875 = vmatpush.bf16.msrb.mxu3 %v3730_v30  ;;  %v3679_v63 = vld [vmem:[#allocation7 + $0x770] sm:$0xf0]  ;;  %v3554_v2 = vor.u32 %v4087_v60, %v3551_v61  ;;  %v4051_v5 = vld [vmem:[#allocation7 + $0x544] sm:$0xf]  ;;  %v3910_v60 = vld [vmem:[#allocation7 + $0xd4] sm:$0xf0] }
  0x84   :  { %1837 = vmatpush.bf16.msrb.mxu0 %v3330_v36  ;;  %v3279_v4 = vld [vmem:[#allocation7 + $0x450] sm:$0xf0]  ;;  %v3682_v6 = vor.u32 %v4119_v62, %v3679_v63  ;;  %v4083_v8 = vld [vmem:[#allocation7 + $0x644] sm:$0xf]  ;;  %v2965_v61 = vld [vmem:[#allocation7 + $0x1c8] sm:$0xf] }
  0x85   :  { %v3407_v7 = vld [vmem:[#allocation7 + $0x550] sm:$0xf0]  ;;  %v4115_v10 = vld [vmem:[#allocation7 + $0x744] sm:$0xf]  ;;  %v3282_v12 = vor.u32 %v4019_v3, %v3279_v4  ;;  %v3942_v63 = vld [vmem:[#allocation7 + $0x1d4] sm:$0xf0]  ;;  %v2838_v4 = vor.u32 %v3910_v60, %v2837_v59 }
  0x86   :  { %1850 = vmatpush.bf16.msrb.mxu1 %v3458_v37  ;;  %1863 = vmatpush.bf16.msrb.mxu2 %v3586_v39  ;;  %v3535_v9 = vld [vmem:[#allocation7 + $0x650] sm:$0xf0]  ;;  %v3410_v13 = vor.u32 %v4051_v5, %v3407_v7  ;;  %v4015_v15 = vld [vmem:[#allocation7 + $0x424] sm:$0xf]  ;;  %v4006_v3 = vld [vmem:[#allocation7 + $0x3d4] sm:$0xf0]  ;;  %v2966_v5 = vor.u32 %v3942_v63, %v2965_v61 }
  0x87   :  { %1876 = vmatpush.bf16.msrb.mxu3 %v3714_v46  ;;  %v3663_v11 = vld [vmem:[#allocation7 + $0x750] sm:$0xf0]  ;;  %v3538_v14 = vor.u32 %v4083_v8, %v3535_v9  ;;  %v4047_v17 = vld [vmem:[#allocation7 + $0x524] sm:$0xf]  ;;  %v2981_v46 = vld [vmem:[#allocation7 + $0x1e8] sm:$0xf] }
  0x88   :  { %1838 = vmatpush.bf16.msrb.mxu0 %v3314_v52  ;;  %v3263_v16 = vld [vmem:[#allocation7 + $0x430] sm:$0xf0]  ;;  %v3666_v21 = vor.u32 %v4115_v10, %v3663_v11  ;;  %v4079_v24 = vld [vmem:[#allocation7 + $0x624] sm:$0xf]  ;;  %v2982_v57 = vor.u32 %v3946_v48, %v2981_v46  ;;  %v2821_v7 = vld [vmem:[#allocation7 + $0xa8] sm:$0xf] }
  0x89   :  { %v3391_v23 = vld [vmem:[#allocation7 + $0x530] sm:$0xf0]  ;;  %v4111_v26 = vld [vmem:[#allocation7 + $0x724] sm:$0xf]  ;;  %v3266_v28 = vor.u32 %v4015_v15, %v3263_v16  ;;  %v3906_v8 = vld [vmem:[#allocation7 + $0xb4] sm:$0xf0] }
  0x8a   :  { %1851 = vmatpush.bf16.msrb.mxu1 %v3442_v53  ;;  %1864 = vmatpush.bf16.msrb.mxu2 %v3570_v54  ;;  %v3519_v25 = vld [vmem:[#allocation7 + $0x630] sm:$0xf0]  ;;  %v4011_v29 = vld [vmem:[#allocation7 + $0x404] sm:$0xf]  ;;  %v3394_v31 = vor.u32 %v4047_v17, %v3391_v23  ;;  %v3237_v53 = vld [vmem:[#allocation7 + $0x3e8] sm:$0xf]  ;;  %v2822_v16 = vor.u32 %v3906_v8, %v2821_v7 }
  0x8b   :  { %1877 = vmatpush.bf16.msrb.mxu3 %v3698_v58  ;;  %v3647_v27 = vld [vmem:[#allocation7 + $0x730] sm:$0xf0]  ;;  %v3522_v32 = vor.u32 %v4079_v24, %v3519_v25  ;;  %v4043_v33 = vld [vmem:[#allocation7 + $0x504] sm:$0xf]  ;;  %v4010_v54 = vld [vmem:[#allocation7 + $0x3f4] sm:$0xf0]  ;;  %v3110_v58 = vor.u32 %v3978_v50, %v3109_v49 }
  0x8c   :  { %1839 = vmatpush.bf16.msrb.mxu0 %v3298_v0  ;;  %v3247_v30 = vld [vmem:[#allocation7 + $0x410] sm:$0xf0]  ;;  %v4075_v35 = vld [vmem:[#allocation7 + $0x604] sm:$0xf]  ;;  %v3650_v36 = vor.u32 %v4111_v26, %v3647_v27  ;;  %v3238_v62 = vor.u32 %v4010_v54, %v3237_v53  ;;  %v3093_v0 = vld [vmem:[#allocation7 + $0x2c8] sm:$0xf] }
  0x8d   :  { %v3375_v34 = vld [vmem:[#allocation7 + $0x510] sm:$0xf0]  ;;  %v4107_v39 = vld [vmem:[#allocation7 + $0x704] sm:$0xf]  ;;  %v3250_v47 = vor.u32 %v4011_v29, %v3247_v30  ;;  %v2949_v9 = vld [vmem:[#allocation7 + $0x1a8] sm:$0xf] }
  0x8e   :  { %1852 = vmatpush.bf16.msrb.mxu1 %v3426_v1  ;;  %1865 = vmatpush.bf16.msrb.mxu2 %v3554_v2  ;;  %v3503_v37 = vld [vmem:[#allocation7 + $0x610] sm:$0xf0]  ;;  %v3378_v51 = vor.u32 %v4043_v33, %v3375_v34  ;;  %v3974_v1 = vld [vmem:[#allocation7 + $0x2d4] sm:$0xf0]  ;;  %v3221_v2 = vld [vmem:[#allocation7 + $0x3c8] sm:$0xf] }
  0x8f   :  { %1878 = vmatpush.bf16.msrb.mxu3 %v3682_v6  ;;  %v3631_v40 = vld [vmem:[#allocation7 + $0x710] sm:$0xf0]  ;;  %v3506_v52 = vor.u32 %v4075_v35, %v3503_v37  ;;  %v3094_v6 = vor.u32 %v3974_v1, %v3093_v0  ;;  %v3222_v10 = vor.u32 %v4006_v3, %v3221_v2  ;;  %v3938_v11 = vld [vmem:[#allocation7 + $0x1b4] sm:$0xf0]  ;;  %v2805_v23 = vld [vmem:[#allocation7 + $0x88] sm:$0xf] }
  0x90   :  { %1840 = vmatpush.bf16.msrb.mxu0 %v3282_v12  ;;  %v3634_v55 = vor.u32 %v4107_v39, %v3631_v40  ;;  %v3077_v12 = vld [vmem:[#allocation7 + $0x2a8] sm:$0xf]  ;;  %v4002_v15 = vld [vmem:[#allocation7 + $0x3b4] sm:$0xf0]  ;;  %v2950_v17 = vor.u32 %v3938_v11, %v2949_v9 }
  0x91   :  { %v3902_v24 = vld [vmem:[#allocation7 + $0x94] sm:$0xf0]  ;;  %v2933_v25 = vld [vmem:[#allocation7 + $0x188] sm:$0xf] }
  0x92   :  { %1853 = vmatpush.bf16.msrb.mxu1 %v3410_v13  ;;  %1866 = vmatpush.bf16.msrb.mxu2 %v3538_v14  ;;  %v3970_v13 = vld [vmem:[#allocation7 + $0x2b4] sm:$0xf0]  ;;  %v3205_v14 = vld [vmem:[#allocation7 + $0x3a8] sm:$0xf] }
  0x93   :  { %1879 = vmatpush.bf16.msrb.mxu3 %v3666_v21  ;;  %v3078_v21 = vor.u32 %v3970_v13, %v3077_v12  ;;  %v3206_v26 = vor.u32 %v4002_v15, %v3205_v14  ;;  %v3934_v27 = vld [vmem:[#allocation7 + $0x194] sm:$0xf0]  ;;  %v3189_v30 = vld [vmem:[#allocation7 + $0x388] sm:$0xf] }
  0x94   :  { %1841 = vmatpush.bf16.msrb.mxu0 %v3266_v28  ;;  %v3061_v28 = vld [vmem:[#allocation7 + $0x288] sm:$0xf]  ;;  %v3966_v29 = vld [vmem:[#allocation7 + $0x294] sm:$0xf0]  ;;  %v2934_v33 = vor.u32 %v3934_v27, %v2933_v25 }
  0x95   :  { %v3062_v34 = vor.u32 %v3966_v29, %v3061_v28  ;;  %v2789_v35 = vld [vmem:[#allocation7 + $0x68] sm:$0xf]  ;;  %v3930_v40 = vld [vmem:[#allocation7 + $0x174] sm:$0xf0] }
  0x96   :  { %1854 = vmatpush.bf16.msrb.mxu1 %v3394_v31  ;;  %1867 = vmatpush.bf16.msrb.mxu2 %v3522_v32  ;;  %v3998_v31 = vld [vmem:[#allocation7 + $0x394] sm:$0xf0]  ;;  %v2806_v32 = vor.u32 %v3902_v24, %v2805_v23  ;;  %v2917_v37 = vld [vmem:[#allocation7 + $0x168] sm:$0xf] }
  0x97   :  { %1880 = vmatpush.bf16.msrb.mxu3 %v3650_v36  ;;  %v3898_v36 = vld [vmem:[#allocation7 + $0x74] sm:$0xf0]  ;;  %v3190_v39 = vor.u32 %v3998_v31, %v3189_v30  ;;  %v3045_v43 = vld [vmem:[#allocation7 + $0x268] sm:$0xf]  ;;  %v2918_v49 = vor.u32 %v3930_v40, %v2917_v37 }
  0x98   :  { %1842 = vmatpush.bf16.msrb.mxu0 %v3250_v47  ;;  %v3962_v45 = vld [vmem:[#allocation7 + $0x274] sm:$0xf0]  ;;  %v3173_v46 = vld [vmem:[#allocation7 + $0x368] sm:$0xf]  ;;  %v2790_v48 = vor.u32 %v3898_v36, %v2789_v35 }
  0x99   :  { %v3994_v47 = vld [vmem:[#allocation7 + $0x374] sm:$0xf0]  ;;  %v3046_v50 = vor.u32 %v3962_v45, %v3045_v43  ;;  %v2901_v53 = vld [vmem:[#allocation7 + $0x148] sm:$0xf] }
  0x9a   :  { %1855 = vmatpush.bf16.msrb.mxu1 %v3378_v51  ;;  %1868 = vmatpush.bf16.msrb.mxu2 %v3506_v52  ;;  %v2773_v51 = vld [vmem:[#allocation7 + $0x48] sm:$0xf]  ;;  %v3894_v52 = vld [vmem:[#allocation7 + $0x54] sm:$0xf0]  ;;  %v3174_v54 = vor.u32 %v3994_v47, %v3173_v46 }
  0x9b   :  { %1881 = vmatpush.bf16.msrb.mxu3 %v3634_v55  ;;  %1843 = vmatmul.bf16.vlgmr.msrb.gmra.mxu0 %v4504_v41  ;;  %v3926_v55 = vld [vmem:[#allocation7 + $0x154] sm:$0xf0]  ;;  %v2774_v60 = vor.u32 %v3894_v52, %v2773_v51  ;;  %v2757_v63 = vld [vmem:[#allocation7 + $0x28] sm:$0xf] }
  0x9c   :  { %1887 = vmatpush.bf16.msra.mxu0 %v2854_v56  ;;  %v3029_v56 = vld [vmem:[#allocation7 + $0x248] sm:$0xf]  ;;  %v3990_v59 = vld [vmem:[#allocation7 + $0x354] sm:$0xf0]  ;;  %v2902_v61 = vor.u32 %v3926_v55, %v2901_v53 }
  0x9d   :  { %1869 = vmatmul.bf16.vlgmr.msrb.gmra.mxu2 %v4502_v38  ;;  %1856 = vmatmul.bf16.vlgmr.msrb.gmra.mxu1 %v4508_v44  ;;  %v3890_v0 = vld [vmem:[#allocation7 + $0x34] sm:$0xf0]  ;;  %v2885_v1 = vld [vmem:[#allocation7 + $0x128] sm:$0xf] }
  0x9e   :  { %1900 = vmatpush.bf16.msra.mxu1 %v2982_v57  ;;  %1913 = vmatpush.bf16.msra.mxu2 %v3110_v58  ;;  %v3958_v57 = vld [vmem:[#allocation7 + $0x254] sm:$0xf0]  ;;  %v3157_v58 = vld [vmem:[#allocation7 + $0x348] sm:$0xf]  ;;  %v2758_v8 = vor.u32 %v3890_v0, %v2757_v63 }
  0x9f   :  { %1926 = vmatpush.bf16.msra.mxu3 %v3238_v62  ;;  %v3030_v62 = vor.u32 %v3958_v57, %v3029_v56  ;;  %v3158_v2 = vor.u32 %v3990_v59, %v3157_v58  ;;  %v3922_v3 = vld [vmem:[#allocation7 + $0x134] sm:$0xf0]  ;;  %v2741_v9 = vld [vmem:[#allocation7 + $0x8] sm:$0xf] }
  0xa0   :  { %1882 = vmatmul.bf16.vlgmr.msrb.gmra.mxu3 %v4506_v42  ;;  %1888 = vmatpush.bf16.msra.mxu0 %v2838_v4  ;;  %v3013_v4 = vld [vmem:[#allocation7 + $0x228] sm:$0xf]  ;;  %v3986_v7 = vld [vmem:[#allocation7 + $0x334] sm:$0xf0]  ;;  %v2886_v11 = vor.u32 %v3922_v3, %v2885_v1 }
  0xa1   :  { %v2869_v13 = vld [vmem:[#allocation7 + $0x108] sm:$0xf]  ;;  %v3918_v14 = vld [vmem:[#allocation7 + $0x114] sm:$0xf0] }
  0xa2   :  { %1901 = vmatpush.bf16.msra.mxu1 %v2966_v5  ;;  %1914 = vmatpush.bf16.msra.mxu2 %v3094_v6  ;;  %v3954_v5 = vld [vmem:[#allocation7 + $0x234] sm:$0xf0]  ;;  %v3141_v6 = vld [vmem:[#allocation7 + $0x328] sm:$0xf]  ;;  %v2870_v31 = vor.u32 %v3918_v14, %v2869_v13 }
  0xa3   :  { %1927 = vmatpush.bf16.msra.mxu3 %v3222_v10  ;;  %v3886_v10 = vld [vmem:[#allocation7 + $0x14] sm:$0xf0]  ;;  %v3014_v12 = vor.u32 %v3954_v5, %v3013_v4  ;;  %v2997_v15 = vld [vmem:[#allocation7 + $0x208] sm:$0xf] }
  0xa4   :  { %1889 = vmatpush.bf16.msra.mxu0 %v2822_v16  ;;  %v3142_v16 = vor.u32 %v3986_v7, %v3141_v6  ;;  %v3982_v23 = vld [vmem:[#allocation7 + $0x314] sm:$0xf0]  ;;  %v3365_v24 = vld [vmem:[#allocation7 + $0x4e8] sm:$0xf]  ;;  %v2742_v27 = vor.u32 %v3886_v10, %v2741_v9 }
  0xa5   :  { %v4042_v25 = vld [vmem:[#allocation7 + $0x4f4] sm:$0xf0]  ;;  %v3621_v29 = vld [vmem:[#allocation7 + $0x6e8] sm:$0xf] }
  0xa6   :  { %1902 = vmatpush.bf16.msra.mxu1 %v2950_v17  ;;  %1915 = vmatpush.bf16.msra.mxu2 %v3078_v21  ;;  %v3950_v17 = vld [vmem:[#allocation7 + $0x214] sm:$0xf0]  ;;  %v3125_v21 = vld [vmem:[#allocation7 + $0x308] sm:$0xf]  ;;  %v3366_v36 = vor.u32 %v4042_v25, %v3365_v24 }
  0xa7   :  { %1928 = vmatpush.bf16.msra.mxu3 %v3206_v26  ;;  %v3493_v26 = vld [vmem:[#allocation7 + $0x5e8] sm:$0xf]  ;;  %v4074_v28 = vld [vmem:[#allocation7 + $0x5f4] sm:$0xf0]  ;;  %v3126_v35 = vor.u32 %v3982_v23, %v3125_v21 }
  0xa8   :  { %1890 = vmatpush.bf16.msra.mxu0 %v2806_v32  ;;  %v4106_v30 = vld [vmem:[#allocation7 + $0x6f4] sm:$0xf0]  ;;  %v2998_v32 = vor.u32 %v3950_v17, %v2997_v15  ;;  %v3494_v37 = vor.u32 %v4074_v28, %v3493_v26  ;;  %v3349_v40 = vld [vmem:[#allocation7 + $0x4c8] sm:$0xf]  ;;  %v4526_v26 = vld [vmem:[#allocation9] sm:$0xf] }
  0xa9   :  { %v4038_v43 = vld [vmem:[#allocation7 + $0x4d4] sm:$0xf0]  ;;  %v3477_v45 = vld [vmem:[#allocation7 + $0x5c8] sm:$0xf] }
  0xaa   :  { %1903 = vmatpush.bf16.msra.mxu1 %v2934_v33  ;;  %1916 = vmatpush.bf16.msra.mxu2 %v3062_v34  ;;  %v3749_v33 = vld [vmem:[#allocation7 + $0x7e8] sm:$0xf]  ;;  %v4138_v34 = vld [vmem:[#allocation7 + $0x7f4] sm:$0xf0]  ;;  %v3350_v52 = vor.u32 %v4038_v43, %v3349_v40 }
  0xab   :  { %1929 = vmatpush.bf16.msra.mxu3 %v3190_v39  ;;  %v3622_v39 = vor.u32 %v4106_v30, %v3621_v29  ;;  %v3750_v46 = vor.u32 %v4138_v34, %v3749_v33  ;;  %v4070_v47 = vld [vmem:[#allocation7 + $0x5d4] sm:$0xf0]  ;;  %v3333_v55 = vld [vmem:[#allocation7 + $0x4a8] sm:$0xf] }
  0xac   :  { %1891 = vmatpush.bf16.msra.mxu0 %v2790_v48  ;;  %v3605_v48 = vld [vmem:[#allocation7 + $0x6c8] sm:$0xf]  ;;  %v4134_v51 = vld [vmem:[#allocation7 + $0x7d4] sm:$0xf0]  ;;  %v3478_v53 = vor.u32 %v4070_v47, %v3477_v45 }
  0xad   :  { %v4034_v56 = vld [vmem:[#allocation7 + $0x4b4] sm:$0xf0]  ;;  %v3461_v57 = vld [vmem:[#allocation7 + $0x5a8] sm:$0xf] }
  0xae   :  { %1904 = vmatpush.bf16.msra.mxu1 %v2918_v49  ;;  %1917 = vmatpush.bf16.msra.mxu2 %v3046_v50  ;;  %v4102_v49 = vld [vmem:[#allocation7 + $0x6d4] sm:$0xf0]  ;;  %v3733_v50 = vld [vmem:[#allocation7 + $0x7c8] sm:$0xf]  ;;  %v3334_v0 = vor.u32 %v4034_v56, %v3333_v55 }
  0xaf   :  { %1930 = vmatpush.bf16.msra.mxu3 %v3174_v54  ;;  %v3606_v54 = vor.u32 %v4102_v49, %v3605_v48  ;;  %v3734_v58 = vor.u32 %v4134_v51, %v3733_v50  ;;  %v4066_v59 = vld [vmem:[#allocation7 + $0x5b4] sm:$0xf0]  ;;  %v3317_v3 = vld [vmem:[#allocation7 + $0x488] sm:$0xf] }
  0xb0   :  { %1892 = vmatpush.bf16.msra.mxu0 %v2774_v60  ;;  %v3589_v60 = vld [vmem:[#allocation7 + $0x6a8] sm:$0xf]  ;;  %v4130_v63 = vld [vmem:[#allocation7 + $0x7b4] sm:$0xf0]  ;;  %v3462_v1 = vor.u32 %v4066_v59, %v3461_v57 }
  0xb1   :  { %v4030_v4 = vld [vmem:[#allocation7 + $0x494] sm:$0xf0]  ;;  %v3445_v5 = vld [vmem:[#allocation7 + $0x588] sm:$0xf] }
  0xb2   :  { %1905 = vmatpush.bf16.msra.mxu1 %v2902_v61  ;;  %1918 = vmatpush.bf16.msra.mxu2 %v3030_v62  ;;  %v4098_v61 = vld [vmem:[#allocation7 + $0x6b4] sm:$0xf0]  ;;  %v3717_v62 = vld [vmem:[#allocation7 + $0x7a8] sm:$0xf] }
  0xb3   :  { %1931 = vmatpush.bf16.msra.mxu3 %v3158_v2  ;;  %v3590_v2 = vor.u32 %v4098_v61, %v3589_v60  ;;  %v3718_v6 = vor.u32 %v4130_v63, %v3717_v62  ;;  %v4062_v7 = vld [vmem:[#allocation7 + $0x594] sm:$0xf0]  ;;  %v3701_v10 = vld [vmem:[#allocation7 + $0x788] sm:$0xf] }
  0xb4   :  { %1893 = vmatpush.bf16.msra.mxu0 %v2758_v8  ;;  %v3573_v8 = vld [vmem:[#allocation7 + $0x688] sm:$0xf]  ;;  %v4094_v9 = vld [vmem:[#allocation7 + $0x694] sm:$0xf0]  ;;  %v3446_v14 = vor.u32 %v4062_v7, %v3445_v5 }
  0xb5   :  { %v3301_v13 = vld [vmem:[#allocation7 + $0x468] sm:$0xf]  ;;  %v3574_v15 = vor.u32 %v4094_v9, %v3573_v8  ;;  %v4058_v21 = vld [vmem:[#allocation7 + $0x574] sm:$0xf0] }
  0xb6   :  { %1906 = vmatpush.bf16.msra.mxu1 %v2886_v11  ;;  %1919 = vmatpush.bf16.msra.mxu2 %v3014_v12  ;;  %v4126_v11 = vld [vmem:[#allocation7 + $0x794] sm:$0xf0]  ;;  %v3318_v12 = vor.u32 %v4030_v4, %v3317_v3  ;;  %v3429_v17 = vld [vmem:[#allocation7 + $0x568] sm:$0xf] }
  0xb7   :  { %1932 = vmatpush.bf16.msra.mxu3 %v3142_v16  ;;  %v4026_v16 = vld [vmem:[#allocation7 + $0x474] sm:$0xf0]  ;;  %v3702_v23 = vor.u32 %v4126_v11, %v3701_v10  ;;  %v3557_v24 = vld [vmem:[#allocation7 + $0x668] sm:$0xf] }
  0xb8   :  { %1894 = vmatpush.bf16.msra.mxu0 %v2742_v27  ;;  %v4090_v25 = vld [vmem:[#allocation7 + $0x674] sm:$0xf0]  ;;  %v3685_v27 = vld [vmem:[#allocation7 + $0x768] sm:$0xf]  ;;  %v3302_v29 = vor.u32 %v4026_v16, %v3301_v13  ;;  %v3912_v13 = vld [vmem:[#allocation7 + $0xec] sm:$0xf] }
  0xb9   :  { %v4122_v28 = vld [vmem:[#allocation7 + $0x774] sm:$0xf0]  ;;  %v3285_v30 = vld [vmem:[#allocation7 + $0x448] sm:$0xf] }
  0xba   :  { %1907 = vmatpush.bf16.msra.mxu1 %v2870_v31  ;;  %1920 = vmatpush.bf16.msra.mxu2 %v2998_v32  ;;  %v3430_v31 = vor.u32 %v4058_v21, %v3429_v17  ;;  %v3558_v32 = vor.u32 %v4090_v25, %v3557_v24  ;;  %v4022_v33 = vld [vmem:[#allocation7 + $0x454] sm:$0xf0]  ;;  %v3413_v34 = vld [vmem:[#allocation7 + $0x548] sm:$0xf]  ;;  %v2983_v17 = vld [vmem:[#allocation7 + $0x1f8] sm:$0xf0] }
  0xbb   :  { %1933 = vmatpush.bf16.msra.mxu3 %v3126_v35  ;;  %1895 = vmatmul.bf16.vlgmr.msra.gmra.mxu0 %v4492_v19  ;;  %v363_v35 = vperm.slane %v4526_v26, 0  ;;  %v4086_v40 = vld [vmem:[#allocation7 + $0x654] sm:$0xf0]  ;;  %v3669_v43 = vld [vmem:[#allocation7 + $0x748] sm:$0xf] }
  0xbc   :  { %1939 = vmatpush.bf16.msrb.mxu0 %v3366_v36  ;;  %v3686_v36 = vor.u32 %v4122_v28, %v3685_v27  ;;  %v4118_v45 = vld [vmem:[#allocation7 + $0x754] sm:$0xf0]  ;;  %v3269_v50 = vld [vmem:[#allocation7 + $0x428] sm:$0xf]  ;;  %v3976_v21 = vld [vmem:[#allocation7 + $0x2ec] sm:$0xf] }
  0xbd   :  { %1921 = vmatmul.bf16.vlgmr.msra.gmra.mxu2 %v4490_v18  ;;  %1908 = vmatmul.bf16.vlgmr.msra.gmra.mxu1 %v4496_v22  ;;  %v4018_v51 = vld [vmem:[#allocation7 + $0x434] sm:$0xf0]  ;;  %v3670_v55 = vor.u32 %v4118_v45, %v3669_v43  ;;  %v3525_v57 = vld [vmem:[#allocation7 + $0x628] sm:$0xf]  ;;  %v2967_v43 = vld [vmem:[#allocation7 + $0x1d8] sm:$0xf0] }
  0xbe   :  { %1952 = vmatpush.bf16.msrb.mxu1 %v3494_v37  ;;  %1965 = vmatpush.bf16.msrb.mxu2 %v3622_v39  ;;  %v4054_v37 = vld [vmem:[#allocation7 + $0x554] sm:$0xf0]  ;;  %v3541_v39 = vld [vmem:[#allocation7 + $0x648] sm:$0xf]  ;;  %v3270_v62 = vor.u32 %v4018_v51, %v3269_v50  ;;  %v3972_v45 = vld [vmem:[#allocation7 + $0x2cc] sm:$0xf] }
  0xbf   :  { %1978 = vmatpush.bf16.msrb.mxu3 %v3750_v46  ;;  %v3286_v46 = vor.u32 %v4022_v33, %v3285_v30  ;;  %v3414_v48 = vor.u32 %v4054_v37, %v3413_v34  ;;  %v3542_v49 = vor.u32 %v4086_v40, %v3541_v39  ;;  %v4050_v56 = vld [vmem:[#allocation7 + $0x534] sm:$0xf0]  ;;  %v3653_v59 = vld [vmem:[#allocation7 + $0x728] sm:$0xf]  ;;  %v3239_v30 = vld [vmem:[#allocation7 + $0x3f8] sm:$0xf0] }
  0xc0   :  { %1934 = vmatmul.bf16.vlgmr.msra.gmra.mxu3 %v4494_v20  ;;  %1940 = vmatpush.bf16.msrb.mxu0 %v3350_v52  ;;  %v3397_v52 = vld [vmem:[#allocation7 + $0x528] sm:$0xf]  ;;  %v4114_v60 = vld [vmem:[#allocation7 + $0x734] sm:$0xf0]  ;;  %v2839_v37 = vld [vmem:[#allocation7 + $0xd8] sm:$0xf0] }
  0xc1   :  { %v3253_v63 = vld [vmem:[#allocation7 + $0x408] sm:$0xf]  ;;  %v4046_v4 = vld [vmem:[#allocation7 + $0x514] sm:$0xf0]  ;;  %v3654_v7 = vor.u32 %v4114_v60, %v3653_v59  ;;  %v3940_v39 = vld [vmem:[#allocation7 + $0x1cc] sm:$0xf] }
  0xc2   :  { %1953 = vmatpush.bf16.msrb.mxu1 %v3478_v53  ;;  %1966 = vmatpush.bf16.msrb.mxu2 %v3606_v54  ;;  %v3381_v3 = vld [vmem:[#allocation7 + $0x508] sm:$0xf]  ;;  %v4078_v8 = vld [vmem:[#allocation7 + $0x614] sm:$0xf0]  ;;  %v3968_v59 = vld [vmem:[#allocation7 + $0x2ac] sm:$0xf] }
  0xc3   :  { %1979 = vmatpush.bf16.msrb.mxu3 %v3734_v58  ;;  %v4082_v58 = vld [vmem:[#allocation7 + $0x634] sm:$0xf0]  ;;  %v3509_v5 = vld [vmem:[#allocation7 + $0x608] sm:$0xf]  ;;  %v3382_v27 = vor.u32 %v4046_v4, %v3381_v3  ;;  %v3079_v60 = vld [vmem:[#allocation7 + $0x2b8] sm:$0xf0] }
  0xc4   :  { %1941 = vmatpush.bf16.msrb.mxu0 %v3334_v0  ;;  %v4014_v0 = vld [vmem:[#allocation7 + $0x414] sm:$0xf0]  ;;  %v3637_v9 = vld [vmem:[#allocation7 + $0x708] sm:$0xf]  ;;  %v3510_v28 = vor.u32 %v4078_v8, %v3509_v5  ;;  %v2807_v3 = vld [vmem:[#allocation7 + $0x98] sm:$0xf0] }
  0xc5   :  { %v4110_v10 = vld [vmem:[#allocation7 + $0x714] sm:$0xf0]  ;;  %v3254_v16 = vor.u32 %v4014_v0, %v3253_v63  ;;  %v3932_v4 = vld [vmem:[#allocation7 + $0x18c] sm:$0xf]  ;;  %v3063_v8 = vld [vmem:[#allocation7 + $0x298] sm:$0xf0] }
  0xc6   :  { %1954 = vmatpush.bf16.msrb.mxu1 %v3462_v1  ;;  %1967 = vmatpush.bf16.msrb.mxu2 %v3590_v2  ;;  %v1688_v47 = vpop.f32.mrf.mxu0  ;;  %v1701_v54 = vpop.f32.mrf.mxu1  ;;  %v3398_v1 = vor.u32 %v4050_v56, %v3397_v52  ;;  %v3526_v2 = vor.u32 %v4082_v58, %v3525_v57  ;;  %v2970_v52 = vor.u32 %v3940_v39, %v2967_v43  ;;  %v3936_v56 = vld [vmem:[#allocation7 + $0x1ac] sm:$0xf]  ;;  %v2951_v58 = vld [vmem:[#allocation7 + $0x1b8] sm:$0xf0] }
  0xc7   :  { %1980 = vmatpush.bf16.msrb.mxu3 %v3718_v6  ;;  %v1689_v53 = vadd.f32 %v1688_v47, %v363_v35  ;;  %v1714_v6 = vpop.f32.mrf.mxu2  ;;  %v4004_v47 = vld [vmem:[#allocation7 + $0x3cc] sm:$0xf]  ;;  %v2954_v0 = vor.u32 %v3936_v56, %v2951_v58  ;;  %v2903_v43 = vld [vmem:[#allocation7 + $0x158] sm:$0xf0] }
  0xc8   :  { %1942 = vmatpush.bf16.msrb.mxu0 %v3318_v12  ;;  %v1727_v12 = vpop.f32.mrf.mxu3  ;;  %v3924_v39 = vld [vmem:[#allocation7 + $0x14c] sm:$0xf] }
  0xc9   :  { %v1702_v61 = vadd.f32 %v1701_v54, %v1689_v53  ;;  %v3904_v54 = vld [vmem:[#allocation7 + $0xac] sm:$0xf] }
  0xca   :  { %1955 = vmatpush.bf16.msrb.mxu1 %v3446_v14  ;;  %1968 = vmatpush.bf16.msrb.mxu2 %v3574_v15  ;;  %v2855_v14 = vld [vmem:[#allocation7 + $0xf8] sm:$0xf0]  ;;  %v3944_v15 = vld [vmem:[#allocation7 + $0x1ec] sm:$0xf] }
  0xcb   :  { %1981 = vmatpush.bf16.msrb.mxu3 %v3702_v23  ;;  %v1715_v11 = vadd.f32 %v1714_v6, %v1702_v61  ;;  %v3111_v23 = vld [vmem:[#allocation7 + $0x2f8] sm:$0xf0]  ;;  %v2858_v33 = vor.u32 %v3912_v13, %v2855_v14  ;;  %v2986_v34 = vor.u32 %v3944_v15, %v2983_v17  ;;  %v4000_v61 = vld [vmem:[#allocation7 + $0x3ac] sm:$0xf] }
  0xcc   :  { %1943 = vmatpush.bf16.msrb.mxu0 %v3302_v29  ;;  %v4008_v29 = vld [vmem:[#allocation7 + $0x3ec] sm:$0xf]  ;;  %v3114_v35 = vor.u32 %v3976_v21, %v3111_v23  ;;  %v2935_v6 = vld [vmem:[#allocation7 + $0x198] sm:$0xf0] }
  0xcd   :  { %v4529_v24 = vadd.f32 %v1727_v12, %v1715_v11  ;;  %v3242_v40 = vor.u32 %v4008_v29, %v3239_v30  ;;  %v2938_v13 = vor.u32 %v3932_v4, %v2935_v6  ;;  %v3896_v15 = vld [vmem:[#allocation7 + $0x6c] sm:$0xf]  ;;  %v3047_v29 = vld [vmem:[#allocation7 + $0x278] sm:$0xf0] }
  0xce   :  { %1956 = vmatpush.bf16.msrb.mxu1 %v3430_v31  ;;  %1969 = vmatpush.bf16.msrb.mxu2 %v3558_v32  ;;  %v1690_v25 = vpop.f32.mrf.mxu0  ;;  %v1703_v31 = vpop.f32.mrf.mxu1  ;;  %v3638_v32 = vor.u32 %v4110_v10, %v3637_v9  ;;  %v3996_v9 = vld [vmem:[#allocation7 + $0x38c] sm:$0xf]  ;;  %v3191_v10 = vld [vmem:[#allocation7 + $0x398] sm:$0xf0] }
  0xcf   :  { %1982 = vmatpush.bf16.msrb.mxu3 %v3686_v36  ;;  %v3908_v36 = vld [vmem:[#allocation7 + $0xcc] sm:$0xf]  ;;  %v3194_v25 = vor.u32 %v3996_v9, %v3191_v10  ;;  %v3175_v31 = vld [vmem:[#allocation7 + $0x378] sm:$0xf0] }
  0xd0   :  { %1944 = vmatpush.bf16.msrb.mxu0 %v3286_v46  ;;  %v3095_v46 = vld [vmem:[#allocation7 + $0x2d8] sm:$0xf0]  ;;  %v2842_v50 = vor.u32 %v3908_v36, %v2839_v37  ;;  %v1729_v51 = vpop.f32.mrf.mxu3  ;;  %v3928_v17 = vld [vmem:[#allocation7 + $0x16c] sm:$0xf] }
  0xd1   :  { %v3098_v53 = vor.u32 %v3972_v45, %v3095_v46  ;;  %v3992_v30 = vld [vmem:[#allocation7 + $0x36c] sm:$0xf]  ;;  %v2775_v37 = vld [vmem:[#allocation7 + $0x58] sm:$0xf0] }
  0xd2   :  { %1957 = vmatpush.bf16.msrb.mxu1 %v3414_v48  ;;  %1970 = vmatpush.bf16.msrb.mxu2 %v3542_v49  ;;  %v3223_v48 = vld [vmem:[#allocation7 + $0x3d8] sm:$0xf0]  ;;  %v1716_v49 = vpop.f32.mrf.mxu2  ;;  %v3892_v36 = vld [vmem:[#allocation7 + $0x4c] sm:$0xf] }
  0xd3   :  { %1983 = vmatpush.bf16.msrb.mxu3 %v3670_v55  ;;  %v2823_v55 = vld [vmem:[#allocation7 + $0xb8] sm:$0xf0]  ;;  %v3226_v57 = vor.u32 %v4004_v47, %v3223_v48  ;;  %v3956_v45 = vld [vmem:[#allocation7 + $0x24c] sm:$0xf]  ;;  %v2778_v51 = vor.u32 %v3892_v36, %v2775_v37 }
  0xd4   :  { %1945 = vmatpush.bf16.msrb.mxu0 %v3270_v62  ;;  %v3207_v62 = vld [vmem:[#allocation7 + $0x3b8] sm:$0xf0]  ;;  %v2826_v63 = vor.u32 %v3904_v54, %v2823_v55  ;;  %v3988_v49 = vld [vmem:[#allocation7 + $0x34c] sm:$0xf]  ;;  %v2906_v54 = vor.u32 %v3924_v39, %v2903_v43 }
  0xd5   :  { %v3210_v5 = vor.u32 %v4000_v61, %v3207_v62  ;;  %v3031_v46 = vld [vmem:[#allocation7 + $0x258] sm:$0xf0]  ;;  %v3888_v56 = vld [vmem:[#allocation7 + $0x2c] sm:$0xf] }
  0xd6   :  { %1958 = vmatpush.bf16.msrb.mxu1 %v3398_v1  ;;  %1971 = vmatpush.bf16.msrb.mxu2 %v3526_v2  ;;  %v3082_v1 = vor.u32 %v3968_v59, %v3079_v60  ;;  %v3900_v2 = vld [vmem:[#allocation7 + $0x8c] sm:$0xf]  ;;  %v3034_v55 = vor.u32 %v3956_v45, %v3031_v46  ;;  %v2887_v61 = vld [vmem:[#allocation7 + $0x138] sm:$0xf0] }
  0xd7   :  { %1984 = vmatpush.bf16.msrb.mxu3 %v3654_v7  ;;  %v3964_v7 = vld [vmem:[#allocation7 + $0x28c] sm:$0xf]  ;;  %v2810_v11 = vor.u32 %v3900_v2, %v2807_v3  ;;  %v2743_v4 = vld [vmem:[#allocation7 + $0x18] sm:$0xf0] }
  0xd8   :  { %1946 = vmatpush.bf16.msrb.mxu0 %v3254_v16  ;;  %v3066_v14 = vor.u32 %v3964_v7, %v3063_v8  ;;  %v2791_v16 = vld [vmem:[#allocation7 + $0x78] sm:$0xf0]  ;;  %v3920_v58 = vld [vmem:[#allocation7 + $0x12c] sm:$0xf] }
  0xd9   :  { %v3952_v62 = vld [vmem:[#allocation7 + $0x22c] sm:$0xf]  ;;  %v2871_v8 = vld [vmem:[#allocation7 + $0x118] sm:$0xf0] }
  0xda   :  { %1959 = vmatpush.bf16.msrb.mxu1 %v3382_v27  ;;  %1972 = vmatpush.bf16.msrb.mxu2 %v3510_v28  ;;  %v1740_v12 = vpop.f32.mrf.mxu0  ;;  %v2919_v27 = vld [vmem:[#allocation7 + $0x178] sm:$0xf0]  ;;  %v3960_v28 = vld [vmem:[#allocation7 + $0x26c] sm:$0xf] }
  0xdb   :  { %1985 = vmatpush.bf16.msrb.mxu3 %v3638_v32  ;;  %1947 = vmatmul.bf16.vlgmr.msrb.gmra.mxu0 %v4504_v41  ;;  %v1741_v21 = vadd.f32 %v1740_v12, %v4529_v24  ;;  %v3178_v24 = vor.u32 %v3992_v30, %v3175_v31  ;;  %v3884_v3 = vld [vmem:[#allocation7 + $0xc] sm:$0xf]  ;;  %v2999_v12 = vld [vmem:[#allocation7 + $0x218] sm:$0xf0] }
  0xdc   :  { %1991 = vmatpush.bf16.msra.mxu0 %v2858_v33  ;;  %v1753_v23 = vpop.f32.mrf.mxu1  ;;  %v2794_v33 = vor.u32 %v3896_v15, %v2791_v16  ;;  %v3916_v7 = vld [vmem:[#allocation7 + $0x10c] sm:$0xf]  ;;  %v3351_v39 = vld [vmem:[#allocation7 + $0x4d8] sm:$0xf0] }
  0xdd   :  { %1973 = vmatmul.bf16.vlgmr.msrb.gmra.mxu2 %v4502_v38  ;;  %1960 = vmatmul.bf16.vlgmr.msrb.gmra.mxu1 %v4508_v44  ;;  %v1754_v32 = vadd.f32 %v1753_v23, %v1741_v21  ;;  %v3948_v9 = vld [vmem:[#allocation7 + $0x20c] sm:$0xf]  ;;  %v2746_v23 = vor.u32 %v3884_v3, %v2743_v4  ;;  %v3479_v43 = vld [vmem:[#allocation7 + $0x5d8] sm:$0xf0] }
  0xde   :  { %2004 = vmatpush.bf16.msra.mxu1 %v2986_v34  ;;  %2017 = vmatpush.bf16.msra.mxu2 %v3114_v35  ;;  %v2922_v34 = vor.u32 %v3928_v17, %v2919_v27  ;;  %v3050_v35 = vor.u32 %v3960_v28, %v3047_v29  ;;  %v4040_v16 = vld [vmem:[#allocation7 + $0x4ec] sm:$0xf]  ;;  %v3367_v17 = vld [vmem:[#allocation7 + $0x4f8] sm:$0xf0]  ;;  %v2874_v29 = vor.u32 %v3916_v7, %v2871_v8 }
  0xdf   :  { %2030 = vmatpush.bf16.msra.mxu3 %v3242_v40  ;;  %v4072_v21 = vld [vmem:[#allocation7 + $0x5ec] sm:$0xf]  ;;  %v3623_v28 = vld [vmem:[#allocation7 + $0x6f8] sm:$0xf0]  ;;  %v3002_v30 = vor.u32 %v3948_v9, %v2999_v12 }
  0xe0   :  { %1986 = vmatmul.bf16.vlgmr.msrb.gmra.mxu3 %v4506_v42  ;;  %1992 = vmatpush.bf16.msra.mxu0 %v2842_v50  ;;  %v1766_v40 = vpop.f32.mrf.mxu2  ;;  %v3159_v50 = vld [vmem:[#allocation7 + $0x358] sm:$0xf0]  ;;  %v4104_v27 = vld [vmem:[#allocation7 + $0x6ec] sm:$0xf] }
  0xe1   :  { %v1767_v47 = vadd.f32 %v1766_v40, %v1754_v32  ;;  %v3162_v60 = vor.u32 %v3988_v49, %v3159_v50  ;;  %v4136_v31 = vld [vmem:[#allocation7 + $0x7ec] sm:$0xf]  ;;  %v3751_v32 = vld [vmem:[#allocation7 + $0x7f8] sm:$0xf0]  ;;  %v3626_v36 = vor.u32 %v4104_v27, %v3623_v28 }
  0xe2   :  { %2005 = vmatpush.bf16.msra.mxu1 %v2970_v52  ;;  %2018 = vmatpush.bf16.msra.mxu2 %v3098_v53  ;;  %v1742_v53 = vpop.f32.mrf.mxu0  ;;  %v4036_v37 = vld [vmem:[#allocation7 + $0x4cc] sm:$0xf]  ;;  %v3607_v46 = vld [vmem:[#allocation7 + $0x6d8] sm:$0xf0] }
  0xe3   :  { %2031 = vmatpush.bf16.msra.mxu3 %v3226_v57  ;;  %v1779_v48 = vpop.f32.mrf.mxu3  ;;  %v2759_v57 = vld [vmem:[#allocation7 + $0x38] sm:$0xf0]  ;;  %v4068_v40 = vld [vmem:[#allocation7 + $0x5cc] sm:$0xf]  ;;  %v3354_v49 = vor.u32 %v4036_v37, %v3351_v39 }
  0xe4   :  { %1993 = vmatpush.bf16.msra.mxu0 %v2826_v63  ;;  %v4536_v52 = vadd.f32 %v1779_v48, %v1767_v47  ;;  %v1755_v59 = vpop.f32.mrf.mxu1  ;;  %v3015_v63 = vld [vmem:[#allocation7 + $0x238] sm:$0xf0]  ;;  %v2762_v2 = vor.u32 %v3888_v56, %v2759_v57  ;;  %v4100_v45 = vld [vmem:[#allocation7 + $0x6cc] sm:$0xf]  ;;  %v3482_v50 = vor.u32 %v4068_v40, %v3479_v43 }
  0xe5   :  { %v3018_v6 = vor.u32 %v3952_v62, %v3015_v63  ;;  %v4132_v47 = vld [vmem:[#allocation7 + $0x7cc] sm:$0xf]  ;;  %v3735_v48 = vld [vmem:[#allocation7 + $0x7d8] sm:$0xf0] }
  0xe6   :  { %2006 = vmatpush.bf16.msra.mxu1 %v2954_v0  ;;  %2019 = vmatpush.bf16.msra.mxu2 %v3082_v1  ;;  %v3984_v0 = vld [vmem:[#allocation7 + $0x32c] sm:$0xf]  ;;  %v3143_v1 = vld [vmem:[#allocation7 + $0x338] sm:$0xf0]  ;;  %v3738_v56 = vor.u32 %v4132_v47, %v3735_v48 }
  0xe7   :  { %2032 = vmatpush.bf16.msra.mxu3 %v3210_v5  ;;  %v2890_v5 = vor.u32 %v3920_v58, %v2887_v61  ;;  %v4032_v53 = vld [vmem:[#allocation7 + $0x4ac] sm:$0xf]  ;;  %v3463_v57 = vld [vmem:[#allocation7 + $0x5b8] sm:$0xf0] }
  0xe8   :  { %1994 = vmatpush.bf16.msra.mxu0 %v2810_v11  ;;  %v1768_v10 = vpop.f32.mrf.mxu2  ;;  %v3146_v11 = vor.u32 %v3984_v0, %v3143_v1  ;;  %v4096_v58 = vld [vmem:[#allocation7 + $0x6ac] sm:$0xf]  ;;  %v3591_v59 = vld [vmem:[#allocation7 + $0x6b8] sm:$0xf0] }
  0xe9   :  { %v3719_v61 = vld [vmem:[#allocation7 + $0x7b8] sm:$0xf0]  ;;  %v3594_v0 = vor.u32 %v4096_v58, %v3591_v59  ;;  %v4028_v1 = vld [vmem:[#allocation7 + $0x48c] sm:$0xf]  ;;  %v364_v58 = vperm.slane %v4526_v26, 1 }
  0xea   :  { %2007 = vmatpush.bf16.msra.mxu1 %v2938_v13  ;;  %2020 = vmatpush.bf16.msra.mxu2 %v3066_v14  ;;  %v3980_v13 = vld [vmem:[#allocation7 + $0x30c] sm:$0xf]  ;;  %v3127_v14 = vld [vmem:[#allocation7 + $0x318] sm:$0xf0] }
  0xeb   :  { %2033 = vmatpush.bf16.msra.mxu3 %v3194_v25  ;;  %v1781_v15 = vpop.f32.mrf.mxu3  ;;  %v3495_v25 = vld [vmem:[#allocation7 + $0x5f8] sm:$0xf0]  ;;  %v4124_v7 = vld [vmem:[#allocation7 + $0x78c] sm:$0xf] }
  0xec   :  { %1995 = vmatpush.bf16.msra.mxu0 %v2794_v33  ;;  %v3130_v33 = vor.u32 %v3980_v13, %v3127_v14  ;;  %v3447_v4 = vld [vmem:[#allocation7 + $0x598] sm:$0xf0]  ;;  %v4024_v10 = vld [vmem:[#allocation7 + $0x46c] sm:$0xf] }
  0xed   :  { %v4056_v12 = vld [vmem:[#allocation7 + $0x56c] sm:$0xf]  ;;  %v3431_v15 = vld [vmem:[#allocation7 + $0x578] sm:$0xf0] }
  0xee   :  { %2008 = vmatpush.bf16.msra.mxu1 %v2922_v34  ;;  %2021 = vmatpush.bf16.msra.mxu2 %v3050_v35  ;;  %v3370_v34 = vor.u32 %v4040_v16, %v3367_v17  ;;  %v3498_v35 = vor.u32 %v4072_v21, %v3495_v25  ;;  %v4088_v16 = vld [vmem:[#allocation7 + $0x66c] sm:$0xf]  ;;  %v3559_v17 = vld [vmem:[#allocation7 + $0x678] sm:$0xf0]  ;;  %v3434_v27 = vor.u32 %v4056_v12, %v3431_v15  ;;  %v4145_v15 = vld [vmem:[#allocation10 + $0x30] sm:$0xff] }
  0xef   :  { %2034 = vmatpush.bf16.msra.mxu3 %v3178_v24  ;;  %v3754_v24 = vor.u32 %v4136_v31, %v3751_v32  ;;  %v4120_v21 = vld [vmem:[#allocation7 + $0x76c] sm:$0xf]  ;;  %v3562_v28 = vor.u32 %v4088_v16, %v3559_v17  ;;  %v3671_v40 = vld [vmem:[#allocation7 + $0x758] sm:$0xf0] }
  0xf0   :  { %1996 = vmatpush.bf16.msra.mxu0 %v2778_v51  ;;  %v3610_v51 = vor.u32 %v4100_v45, %v3607_v46  ;;  %v4052_v31 = vld [vmem:[#allocation7 + $0x54c] sm:$0xf]  ;;  %v3271_v48 = vld [vmem:[#allocation7 + $0x438] sm:$0xf0] }
  0xf1   :  { %v4116_v39 = vld [vmem:[#allocation7 + $0x74c] sm:$0xf]  ;;  %v4154_v12 = vld [vmem:[#allocation10 + $0x78] sm:$0xff] }
  0xf2   :  { %2009 = vmatpush.bf16.msra.mxu1 %v2906_v54  ;;  %2022 = vmatpush.bf16.msra.mxu2 %v3034_v55  ;;  %v3335_v54 = vld [vmem:[#allocation7 + $0x4b8] sm:$0xf0]  ;;  %v4064_v55 = vld [vmem:[#allocation7 + $0x5ac] sm:$0xf] }
  0xf3   :  { %2035 = vmatpush.bf16.msra.mxu3 %v3162_v60  ;;  %v4128_v60 = vld [vmem:[#allocation7 + $0x7ac] sm:$0xf]  ;;  %v3338_v62 = vor.u32 %v4032_v53, %v3335_v54  ;;  %v3466_v63 = vor.u32 %v4064_v55, %v3463_v57  ;;  %v3399_v53 = vld [vmem:[#allocation7 + $0x538] sm:$0xf0] }
  0xf4   :  { %1997 = vmatpush.bf16.msra.mxu0 %v2762_v2  ;;  %v3319_v2 = vld [vmem:[#allocation7 + $0x498] sm:$0xf0]  ;;  %v3722_v3 = vor.u32 %v4128_v60, %v3719_v61  ;;  %v4016_v47 = vld [vmem:[#allocation7 + $0x42c] sm:$0xf] }
  0xf5   :  { %v4080_v54 = vld [vmem:[#allocation7 + $0x62c] sm:$0xf]  ;;  %v3527_v55 = vld [vmem:[#allocation7 + $0x638] sm:$0xf0]  ;;  %v3274_v59 = vor.u32 %v4016_v47, %v3271_v48 }
  0xf6   :  { %2010 = vmatpush.bf16.msra.mxu1 %v2890_v5  ;;  %2023 = vmatpush.bf16.msra.mxu2 %v3018_v6  ;;  %v4092_v5 = vld [vmem:[#allocation7 + $0x68c] sm:$0xf]  ;;  %v3575_v6 = vld [vmem:[#allocation7 + $0x698] sm:$0xf0]  ;;  %v3530_v61 = vor.u32 %v4080_v54, %v3527_v55 }
  0xf7   :  { %2036 = vmatpush.bf16.msra.mxu3 %v3146_v11  ;;  %v3578_v9 = vor.u32 %v4092_v5, %v3575_v6  ;;  %v3303_v11 = vld [vmem:[#allocation7 + $0x478] sm:$0xf0]  ;;  %v4108_v6 = vld [vmem:[#allocation7 + $0x70c] sm:$0xf] }
  0xf8   :  { %1998 = vmatpush.bf16.msra.mxu0 %v2746_v23  ;;  %v4542_v8 = vpop.f32.mrf.mxu0  ;;  %v3687_v23 = vld [vmem:[#allocation7 + $0x778] sm:$0xf0]  ;;  %v3306_v25 = vor.u32 %v4024_v10, %v3303_v11 }
  0xf9   :  { %v3655_v57 = vld [vmem:[#allocation7 + $0x738] sm:$0xf0] }
  0xfa   :  { %2011 = vmatpush.bf16.msra.mxu1 %v2874_v29  ;;  %2024 = vmatpush.bf16.msra.mxu2 %v3002_v30  ;;  %v4544_v13 = vpop.f32.mrf.mxu1  ;;  %v4020_v29 = vld [vmem:[#allocation7 + $0x44c] sm:$0xf]  ;;  %v3287_v30 = vld [vmem:[#allocation7 + $0x458] sm:$0xf0] }
  0xfb   :  { %2037 = vmatpush.bf16.msra.mxu3 %v3130_v33  ;;  %1999 = vmatmul.bf16.vlgmr.msra.gmra.mxu0 %v4492_v19  ;;  %v3703_v19 = vld [vmem:[#allocation7 + $0x798] sm:$0xf0]  ;;  %v3690_v33 = vor.u32 %v4120_v21, %v3687_v23  ;;  %v4152_v23 = vld [vmem:[#allocation10 + $0x68] sm:$0xff] }
  0xfc   :  { %2043 = vmatpush.bf16.msrb.mxu0 %v3370_v34  ;;  %v3706_v14 = vor.u32 %v4124_v7, %v3703_v19  ;;  %v3415_v34 = vld [vmem:[#allocation7 + $0x558] sm:$0xf0]  ;;  %v1793_v19 = vadd.f32 %v4542_v8, %v364_v58  ;;  %v4153_v8 = vld [vmem:[#allocation10 + $0x70] sm:$0xff] }
  0xfd   :  { %2025 = vmatmul.bf16.vlgmr.msra.gmra.mxu2 %v4490_v18  ;;  %2012 = vmatmul.bf16.vlgmr.msra.gmra.mxu1 %v4496_v22  ;;  %v4060_v18 = vld [vmem:[#allocation7 + $0x58c] sm:$0xf]  ;;  %v3418_v45 = vor.u32 %v4052_v31, %v3415_v34  ;;  %v3639_v7 = vld [vmem:[#allocation7 + $0x718] sm:$0xf0]  ;;  %v4141_v34 = vld [vmem:[#allocation10 + $0x10] sm:$0xff] }
  0xfe   :  { %2056 = vmatpush.bf16.msrb.mxu1 %v3498_v35  ;;  %2069 = vmatpush.bf16.msrb.mxu2 %v3626_v36  ;;  %v3450_v22 = vor.u32 %v4060_v18, %v3447_v4  ;;  %v4084_v35 = vld [vmem:[#allocation7 + $0x64c] sm:$0xf]  ;;  %v3543_v36 = vld [vmem:[#allocation7 + $0x658] sm:$0xf0]  ;;  %v3642_v10 = vor.u32 %v4108_v6, %v3639_v7  ;;  %v4157_v58 = vld [vmem:[#allocation10 + $0x90] sm:$0xff] }
  0xff   :  { %2082 = vmatpush.bf16.msrb.mxu3 %v3754_v24  ;;  %v3290_v24 = vor.u32 %v4020_v29, %v3287_v30  ;;  %v3546_v46 = vor.u32 %v4084_v35, %v3543_v36  ;;  %v3383_v18 = vld [vmem:[#allocation7 + $0x518] sm:$0xf0]  ;;  %v4161_v30 = vld [vmem:[#allocation10 + $0xb0] sm:$0xff] }
 0x100   :  { %2038 = vmatmul.bf16.vlgmr.msra.gmra.mxu3 %v4494_v20  ;;  %2044 = vmatpush.bf16.msrb.mxu0 %v3354_v49  ;;  %v3322_v20 = vor.u32 %v4028_v1, %v3319_v2  ;;  %v4546_v32 = vpop.f32.mrf.mxu2  ;;  %v1794_v43 = vpop.f32.mrf.mxu0  ;;  %v4048_v49 = vld [vmem:[#allocation7 + $0x52c] sm:$0xf]  ;;  %v3511_v4 = vld [vmem:[#allocation7 + $0x618] sm:$0xf0] }
 0x101   :  { %v3402_v60 = vor.u32 %v4048_v49, %v3399_v53  ;;  %v4146_v11 = vld [vmem:[#allocation10 + $0x38] sm:$0xff]  ;;  %v4140_v43 = vld [vmem:[#allocation10 + $0x8] sm:$0xff]  ;;  %v4147_v53 = vld [vmem:[#allocation10 + $0x40] sm:$0xff] }
 0x102   :  { %2057 = vmatpush.bf16.msrb.mxu1 %v3482_v50  ;;  %2070 = vmatpush.bf16.msrb.mxu2 %v3610_v51  ;;  %v1807_v50 = vpop.f32.mrf.mxu1  ;;  %v3674_v51 = vor.u32 %v4116_v39, %v3671_v40  ;;  %v4162_v16 = vld [vmem:[#allocation10 + $0xb8] sm:$0xff]  ;;  %v4149_v39 = vld [vmem:[#allocation10 + $0x50] sm:$0xff] }
 0x103   :  { %2083 = vmatpush.bf16.msrb.mxu3 %v3738_v56  ;;  %v4548_v37 = vpop.f32.mrf.mxu3  ;;  %v4112_v56 = vld [vmem:[#allocation7 + $0x72c] sm:$0xf]  ;;  %v4139_v50 = vld [vmem:[#allocation10] sm:$0xff] }
 0x104   :  { %2045 = vmatpush.bf16.msrb.mxu0 %v3338_v62  ;;  %v4012_v62 = vld [vmem:[#allocation7 + $0x40c] sm:$0xf]  ;;  %v3658_v2 = vor.u32 %v4112_v56, %v3655_v57 }
 0x106   :  { %2058 = vmatpush.bf16.msrb.mxu1 %v3466_v63  ;;  %2071 = vmatpush.bf16.msrb.mxu2 %v3594_v0  ;;  %v3255_v63 = vld [vmem:[#allocation7 + $0x418] sm:$0xf0]  ;;  %v4044_v0 = vld [vmem:[#allocation7 + $0x50c] sm:$0xf] }
 0x107   :  { %2084 = vmatpush.bf16.msrb.mxu3 %v3722_v3  ;;  %v4076_v3 = vld [vmem:[#allocation7 + $0x60c] sm:$0xf] }
 0x108   :  { %2046 = vmatpush.bf16.msrb.mxu0 %v3322_v20  ;;  %v1820_v1 = vpop.f32.mrf.mxu2  ;;  %v3258_v20 = vor.u32 %v4012_v62, %v3255_v63 }
 0x10a   :  { %2059 = vmatpush.bf16.msrb.mxu1 %v3450_v22  ;;  %2072 = vmatpush.bf16.msrb.mxu2 %v3578_v9  ;;  %v3386_v22 = vor.u32 %v4044_v0, %v3383_v18  ;;  %v3514_v9 = vor.u32 %v4076_v3, %v3511_v4  ;;  %v4155_v0 = vld [vmem:[#allocation10 + $0x80] sm:$0xff] }
 0x10b   :  { %2085 = vmatpush.bf16.msrb.mxu3 %v3706_v14  ;;  %v1833_v5 = vpop.f32.mrf.mxu3  ;;  %v1806_v14 = vadd.f32 %v4544_v13, %v1793_v19  ;;  %v4144_v13 = vld [vmem:[#allocation10 + $0x28] sm:$0xff] }
 0x10c   :  { %2047 = vmatpush.bf16.msrb.mxu0 %v3306_v25  ;;  %v4143_v25 = vld [vmem:[#allocation10 + $0x20] sm:$0xff] }
 0x10d   :  { %v1819_v17 = vadd.f32 %v4546_v32, %v1806_v14 }
 0x10e   :  { %2060 = vmatpush.bf16.msrb.mxu1 %v3434_v27  ;;  %2073 = vmatpush.bf16.msrb.mxu2 %v3562_v28 }
 0x10f   :  { %2086 = vmatpush.bf16.msrb.mxu3 %v3690_v33  ;;  %v1832_v21 = vadd.f32 %v4548_v37, %v1819_v17  ;;  %v4160_v33 = vld [vmem:[#allocation10 + $0xa8] sm:$0xff]  ;;  %v4159_v37 = vld [vmem:[#allocation10 + $0xa0] sm:$0xff] }
 0x110   :  { %2048 = vmatpush.bf16.msrb.mxu0 %v3290_v24 }
 0x112   :  { %2061 = vmatpush.bf16.msrb.mxu1 %v3418_v45  ;;  %2074 = vmatpush.bf16.msrb.mxu2 %v3546_v46  ;;  %v4158_v45 = vld [vmem:[#allocation10 + $0x98] sm:$0xff]  ;;  %v4148_v46 = vld [vmem:[#allocation10 + $0x48] sm:$0xff] }
 0x113   :  { %2087 = vmatpush.bf16.msrb.mxu3 %v3674_v51  ;;  %v2095_v51 = vmax.f32 %v4536_v52, 0.0  ;;  %v365_v52 = vperm.slane %v4526_v26, 2 }
 0x114   :  { %2049 = vmatpush.bf16.msrb.mxu0 %v3274_v59 }
 0x115   :  { %v2099_v55 = vpack.c.bf16 %v2095_v51, %v2095_v51 }
 0x116   :  { %2062 = vmatpush.bf16.msrb.mxu1 %v3402_v60  ;;  %2075 = vmatpush.bf16.msrb.mxu2 %v3530_v61  ;;  %v4156_v61 = vld [vmem:[#allocation10 + $0x88] sm:$0xff] }
 0x117   :  { %2088 = vmatpush.bf16.msrb.mxu3 %v3658_v2 }
 0x118   :  { %2050 = vmatpush.bf16.msrb.mxu0 %v3258_v20  ;;  %v1844_v27 = vpop.f32.mrf.mxu0 }
 0x119   :  { %v1845_v28 = vadd.f32 %v1844_v27, %v1832_v21  ;;  %v4166_v27 = vld [vmem:[#allocation10 + $0xd8] sm:$0xff] }
 0x11a   :  { %2063 = vmatpush.bf16.msrb.mxu1 %v3386_v22  ;;  %2076 = vmatpush.bf16.msrb.mxu2 %v3514_v9  ;;  %v1857_v29 = vpop.f32.mrf.mxu1 }
 0x11b   :  { %2089 = vmatpush.bf16.msrb.mxu3 %v3642_v10  ;;  %2051 = vmatmul.bf16.vlgmr.msrb.gmra.mxu0 %v4504_v41  ;;  %v4151_v41 = vld [vmem:[#allocation10 + $0x60] sm:$0xff] }
 0x11c   :  { %2363 = vmatpush.bf16.msra.mxu0 %v4146_v11  ;;  %v4170_v11 = vld [vmem:[#allocation10 + $0xf8] sm:$0xff] }
 0x11d   :  { %2064 = vmatmul.bf16.vlgmr.msrb.gmra.mxu1 %v4508_v44  ;;  %2077 = vmatmul.bf16.vlgmr.msrb.gmra.mxu2 %v4502_v38  ;;  %v4142_v38 = vld [vmem:[#allocation10 + $0x18] sm:$0xff]  ;;  %v1858_v44 = vadd.f32 %v1857_v29, %v1845_v28 }
 0x11e   :  { %2376 = vmatpush.bf16.msra.mxu1 %v4154_v12  ;;  %2090 = vmatmul.bf16.vlgmr.msrb.gmra.mxu3 %v4506_v42  ;;  %v4150_v42 = vld [vmem:[#allocation10 + $0x58] sm:$0xff] }
 0x11f   :  { %2389 = vmatpush.bf16.msra.mxu2 %v4162_v16  ;;  %2402 = vmatpush.bf16.msra.mxu3 %v4170_v11 }
 0x120   :  { %2364 = vmatpush.bf16.msra.mxu0 %v4145_v15  ;;  %v1870_v31 = vpop.f32.mrf.mxu2  ;;  %v1846_v36 = vpop.f32.mrf.mxu0  ;;  %v4169_v15 = vld [vmem:[#allocation10 + $0xf0] sm:$0xff] }
 0x121   :  { %v1871_v35 = vadd.f32 %v1870_v31, %v1858_v44  ;;  %v4163_v31 = vld [vmem:[#allocation10 + $0xc0] sm:$0xff] }
 0x122   :  { %2377 = vmatpush.bf16.msra.mxu1 %v4153_v8  ;;  %v1859_v40 = vpop.f32.mrf.mxu1 }
 0x123   :  { %2390 = vmatpush.bf16.msra.mxu2 %v4161_v30  ;;  %v1883_v32 = vpop.f32.mrf.mxu3  ;;  %2403 = vmatpush.bf16.msra.mxu3 %v4169_v15  ;;  %v4164_v30 = vld [vmem:[#allocation10 + $0xc8] sm:$0xff] }
 0x124   :  { %2365 = vmatpush.bf16.msra.mxu0 %v4144_v13  ;;  %v1884_v24 = vadd.f32 %v1883_v32, %v1871_v35  ;;  %v4168_v13 = vld [vmem:[#allocation10 + $0xe8] sm:$0xff] }
 0x126   :  { %2378 = vmatpush.bf16.msra.mxu1 %v4152_v23  ;;  %v2096_v49 = vmax.f32 %v1884_v24, 0.0 }
 0x127   :  { %2391 = vmatpush.bf16.msra.mxu2 %v4160_v33  ;;  %2404 = vmatpush.bf16.msra.mxu3 %v4168_v13  ;;  %v366_v33 = vperm.slane %v4526_v26, 3 }
 0x128   :  { %2366 = vmatpush.bf16.msra.mxu0 %v4143_v25  ;;  %v1872_v47 = vpop.f32.mrf.mxu2  ;;  %v2100_v54 = vpack.c.bf16 %v2096_v49, %v2096_v49  ;;  %v4167_v25 = vld [vmem:[#allocation10 + $0xe0] sm:$0xff] }
 0x12a   :  { %2379 = vmatpush.bf16.msra.mxu1 %v4151_v41  ;;  %v4165_v41 = vld [vmem:[#allocation10 + $0xd0] sm:$0xff] }
 0x12b   :  { %2392 = vmatpush.bf16.msra.mxu2 %v4159_v37  ;;  %v1885_v48 = vpop.f32.mrf.mxu3  ;;  %2405 = vmatpush.bf16.msra.mxu3 %v4167_v25 }
 0x12c   :  { %2367 = vmatpush.bf16.msra.mxu0 %v4142_v38  ;;  %v4562_v48 = vld [vmem:[#allocation12] sm:$0xff] }
 0x12e   :  { %2380 = vmatpush.bf16.msra.mxu1 %v4150_v42 }
 0x12f   :  { %2393 = vmatpush.bf16.msra.mxu2 %v4158_v45  ;;  %2406 = vmatpush.bf16.msra.mxu3 %v4166_v27 }
 0x130   :  { %2368 = vmatpush.bf16.msra.mxu0 %v4141_v34 }
 0x132   :  { %2381 = vmatpush.bf16.msra.mxu1 %v4149_v39 }
 0x133   :  { %2394 = vmatpush.bf16.msra.mxu2 %v4157_v58  ;;  %2407 = vmatpush.bf16.msra.mxu3 %v4165_v41 }
 0x134   :  { %2369 = vmatpush.bf16.msra.mxu0 %v4140_v43 }
 0x136   :  { %2382 = vmatpush.bf16.msra.mxu1 %v4148_v46 }
 0x137   :  { %2395 = vmatpush.bf16.msra.mxu2 %v4156_v61  ;;  %2408 = vmatpush.bf16.msra.mxu3 %v4164_v30 }
 0x138   :  { %2370 = vmatpush.bf16.msra.mxu0 %v4139_v50  ;;  %v1896_v56 = vpop.f32.mrf.mxu0 }
 0x139   :  { %v1897_v18 = vadd.f32 %v1896_v56, %v365_v52 }
 0x13a   :  { %2383 = vmatpush.bf16.msra.mxu1 %v4147_v53  ;;  %v1909_v57 = vpop.f32.mrf.mxu1  ;;  %v4422_v53 = vmov 0  }
 0x13b   :  { %2371 = vmatmul.bf16.vlgmr.msra.gmra.mxu0 %v2099_v55  ;;  %2396 = vmatpush.bf16.msra.mxu2 %v4155_v0  ;;  %v1910_v3 = vadd.f32 %v1909_v57, %v1897_v18 }
 0x13c   :  { %2409 = vmatpush.bf16.msra.mxu3 %v4163_v31  ;;  %4208 = vset.pattern.permute.xlu2 %v4422_v53 }
 0x13d   :  { %2384 = vmatmul.bf16.vlgmr.msra.gmra.mxu1 %v2100_v54  ;;  %2432 = vperm.xlu2 %4208, %v4562_v48  }
 0x140   :  { %v1922_v59 = vpop.f32.mrf.mxu2  ;;  %v1898_v62 = vpop.f32.mrf.mxu0 }
 0x141   :  { %v1923_v4 = vadd.f32 %v1922_v59, %v1910_v3  ;;  %v4423_v59 = vmov 3   ;;  %v4424_v3 = vmov 1  }
 0x142   :  { %v1911_v63 = vpop.f32.mrf.mxu1  ;;  %4209 = vset.pattern.permute.xlu0 %v4424_v3 }
 0x143   :  { %v1935_v60 = vpop.f32.mrf.mxu3 }
 0x144   :  { %v1936_v5 = vadd.f32 %v1935_v60, %v1923_v4  ;;  %v4214_v60 = vld [vmem:[%s4710_s5] ss:$0 sm:$0xff]  ;;  %v2416_v4 = vlaneseq }
 0x145   :  { %4211 = vset.pattern.permute.xlu2 %v4423_v59 }
 0x146   :  { %2594 = vperm.xlu2 %4211, %v4562_v48  }
 0x148   :  { %v1924_v1 = vpop.f32.mrf.mxu2 }
 0x14b   :  { %v1937_v2 = vpop.f32.mrf.mxu3 }
 0x158   :  { %v1948_v6 = vpop.f32.mrf.mxu0 }
 0x159   :  { %v1949_v7 = vadd.f32 %v1948_v6, %v1936_v5  ;;  %v4570_v5 = vand.u32 127, %v2416_v4 }
 0x15a   :  { %v1961_v19 = vpop.f32.mrf.mxu1 }
 0x15b   :  { %v1962_v20 = vadd.f32 %v1961_v19, %v1949_v7  ;;  %vm2536_vm0 = vcmp.ge.s32.totalorder %v4570_v5, 25  ;;  %vm2537_vm1 = vcmp.lt.s32.totalorder %v4570_v5, 45  ;;  %vm2427_vm2 = vcmp.ge.s32.totalorder %v4570_v5, 70 }
 0x15c   :  { %vm2428_vm3 = vcmp.lt.s32.totalorder %v4570_v5, 100  ;;  %vm2643_vm4 = vcmp.lt.s32.totalorder %v4570_v5, 10  ;;  %vm2538_vm5 = vmand %vm2536_vm0, %vm2537_vm1  ;;  %vm2589_vm7 = vcmp.ge.s32.totalorder %v4570_v5, 10  ;;  %vm2590_vm8 = vcmp.lt.s32.totalorder %v4570_v5, 25 }
 0x15d   :  { %vm2429_vm6 = vmand %vm2427_vm2, %vm2428_vm3  ;;  %vm2483_vm9 = vcmp.ge.s32.totalorder %v4570_v5, 45  ;;  %vm2484_vm10 = vcmp.lt.s32.totalorder %v4570_v5, 70 }
 0x15e   :  { %vm2591_vm11 = vmand %vm2589_vm7, %vm2590_vm8 }
 0x15f   :  { %vm2485_vm12 = vmand %vm2483_vm9, %vm2484_vm10 }
 0x160   :  { %v1974_v22 = vpop.f32.mrf.mxu2  ;;  %v1950_v14 = vpop.f32.mrf.mxu0 }
 0x161   :  { %v1975_v9 = vadd.f32 %v1974_v22, %v1962_v20  ;;  %v4425_v20 = vmov 2   ;;  %v4426_v22 = vmov 4  }
 0x162   :  { %v1963_v16 = vpop.f32.mrf.mxu1  ;;  %4210 = vset.pattern.permute.xlu1 %v4425_v20  ;;  %4212 = vset.pattern.permute.xlu2 %v4426_v22 }
 0x163   :  { %v1987_v10 = vpop.f32.mrf.mxu3 }
 0x164   :  { %v1988_v12 = vadd.f32 %v1987_v10, %v1975_v9 }
 0x166   :  { %v2097_v8 = vmax.f32 %v1988_v12, 0.0 }
 0x168   :  { %v2101_v17 = vpack.c.bf16 %v2097_v8, %v2097_v8  ;;  %v1976_v21 = vpop.f32.mrf.mxu2 }
 0x16a   :  { %2397 = vmatmul.bf16.vlgmr.msra.gmra.mxu2 %v2101_v17 }
 0x16b   :  { %v1989_v23 = vpop.f32.mrf.mxu3 }
 0x178   :  { %v2000_v28 = vpop.f32.mrf.mxu0 }
 0x179   :  { %v2001_v36 = vadd.f32 %v2000_v28, %v366_v33 }
 0x17a   :  { %v2013_v29 = vpop.f32.mrf.mxu1 }
 0x17b   :  { %v2014_v37 = vadd.f32 %v2013_v29, %v2001_v36 }
 0x180   :  { %v2026_v38 = vpop.f32.mrf.mxu2  ;;  %v2002_v42 = vpop.f32.mrf.mxu0 }
 0x181   :  { %v2027_v39 = vadd.f32 %v2026_v38, %v2014_v37 }
 0x182   :  { %v2015_v32 = vpop.f32.mrf.mxu1 }
 0x183   :  { %v2039_v44 = vpop.f32.mrf.mxu3 }
 0x184   :  { %v2040_v40 = vadd.f32 %v2039_v44, %v2027_v39 }
 0x188   :  { %v2028_v34 = vpop.f32.mrf.mxu2 }
 0x18b   :  { %v2041_v35 = vpop.f32.mrf.mxu3 }
 0x197   :  { %v2433_v16 = vpop.permute.xlu2 %2432 }
 0x198   :  { %v2052_v24 = vpop.f32.mrf.mxu0  ;;  %vm2434_vm13 = vcmp.eq.s32.totalorder %v4570_v5, %v2433_v16 }
 0x199   :  { %v2053_v45 = vadd.f32 %v2052_v24, %v2040_v40 }
 0x19a   :  { %v2065_v43 = vpop.f32.mrf.mxu1 }
 0x19b   :  { %v2066_v46 = vadd.f32 %v2065_v43, %v2053_v45 }
 0x1a0   :  { %v2078_v47 = vpop.f32.mrf.mxu2  ;;  %v2054_v51 = vpop.f32.mrf.mxu0 }
 0x1a1   :  { %v2079_v49 = vadd.f32 %v2078_v47, %v2066_v46  ;;  %v2091_v50 = vpop.f32.mrf.mxu3  ;;  %v2595_v23 = vpop.permute.xlu2 %2594 }
 0x1a2   :  { %v2067_v54 = vpop.f32.mrf.mxu1  ;;  %vm2596_vm0 = vcmp.eq.s32.totalorder %v4570_v5, %v2595_v23 }
 0x1a3   :  { %v2092_v26 = vadd.f32 %v2091_v50, %v2079_v49  ;;  %v4618_v54 = vshrl.u32 %v2416_v4, 7 }
 0x1a5   :  { %v2098_v55 = vmax.f32 %v2092_v26, 0.0  ;;  %v2425_v26 = vstv %s4705_s0 }
 0x1a6   :  { %vm4624_vm2 = vcmp.lt.s32.totalorder %v4618_v54, %v2425_v26 }
 0x1a7   :  { %v2102_v56 = vpack.c.bf16 %v2098_v55, %v2098_v55 }
 0x1a8   :  { %v2080_v57 = vpop.f32.mrf.mxu2 }
 0x1a9   :  { %v2093_v58 = vpop.f32.mrf.mxu3  ;;  %2410 = vmatmul.bf16.vlgmr.msra.gmra.mxu3 %v2102_v56 }
 0x1b8   :  { %v2372_v61 = vpop.f32.mrf.mxu0 }
 0x1b9   :  { %v2373_v62 = vadd.f32 %v4214_v60, %v2372_v61 }
 0x1ba   :  { %v2385_v63 = vpop.f32.mrf.mxu1 }
 0x1bb   :  { %v2386_v0 = vadd.f32 %v2385_v63, %v2373_v62  ;;  %v4427_v62 = vmov 0.0  }
 0x1c0   :  { %v2374_v52 = vpop.f32.mrf.mxu0 }
 0x1c2   :  { %v2387_v1 = vpop.f32.mrf.mxu1 }
 0x1ed   :  { %v2398_v2 = vpop.f32.mrf.mxu2 }
 0x1ee   :  { %v2399_v6 = vadd.f32 %v2398_v2, %v2386_v0 }
 0x1f5   :  { %v2400_v18 = vpop.f32.mrf.mxu2 }
 0x22c   :  { %v2411_v7 = vpop.f32.mrf.mxu3 }
 0x22d   :  { %v4577_v19 = vadd.f32 %v2411_v7, %v2399_v6 }
 0x22f   :  { %2415 = vst [vmem:[#allocation13] sm:$0xff] %v4577_v19  ;;  %v2645_v9 = vsel %vm2643_vm4, %v4577_v19, -1e+30  ;;  %v2539_v10 = vsel %vm2538_vm5, %v4577_v19, -1e+30  ;;  %v2435_v39 = vsel %vm2434_vm13, %v4577_v19, 0.0 }
 0x230   :  { %2653 = vmax.xlane.f32.xlu2 %v2645_v9  ;;  %2547 = vmax.xlane.f32.xlu1 %v2539_v10  ;;  %v2430_v11 = vsel %vm2429_vm6, %v4577_v19, -1e+30  ;;  %v2592_v14 = vsel %vm2591_vm11, %v4577_v19, -1e+30  ;;  %v2486_v15 = vsel %vm2485_vm12, %v4577_v19, -1e+30 }
 0x231   :  { %2438 = vmax.xlane.f32.xlu0 %v2430_v11  ;;  %v2597_v46 = vsel %vm2596_vm0, %v4577_v19, 0.0  ;;  %vm2456_vm4 = vcmask 7168   ;;  %2706 = dma.vmem_to_hbm [thread:$0]  %s2702_s13, 128, %s2704_s11, [#allocation6]   ;;  %vm2469_vm0 = vcmp.eq.s32.totalorder %v4618_v54, 1 }
 0x234   :  { %v2413_v12 = vpop.f32.mrf.mxu3 }
 0x238   :  { %2600 = vmax.xlane.f32.xlu1 %v2592_v14 }
 0x239   :  { %2494 = vmax.xlane.f32.xlu0 %v2486_v15 }
 0x248   :  { %2647 = vperm.xlu2 %4212, %v4562_v48  }
 0x24d   :  { %2488 = vperm.xlu0 %4209, %v4562_v48  }
 0x251   :  { %2541 = vperm.xlu1 %4210, %v4562_v48  }
 0x255   :  { %4213 = vset.pattern.permute.xlu0 %v4426_v22 }
 0x2a3   :  { %v4592_v8 = vpop.xlane.xlu1 %2547  ;;  %v4604_v38 = vpop.xlane.xlu2 %2653 }
 0x2a4   :  { %v2549_v17 = vsub.f32 %v2539_v10, %v4592_v8  ;;  %v4595_v13 = vpop.xlane.xlu0 %2438  ;;  %v2655_v33 = vsub.f32 %v2645_v9, %v4604_v38 }
 0x2a5   :  { %v2440_v21 = vsub.f32 %v2430_v11, %v4595_v13 }
 0x2a6   :  { %v2550_v25 = vmul.f32 1.442695, %v2549_v17  ;;  %v2656_v34 = vmul.f32 1.442695, %v2655_v33 }
 0x2a7   :  { %v2441_v27 = vmul.f32 1.442695, %v2440_v21 }
 0x2a8   :  { %4215 = vpow2.f32 %v2550_v25 }
 0x2a9   :  { %4217 = vpow2.f32 %v2441_v27 }
 0x2ab   :  { %v4598_v41 = vpop.xlane.xlu1 %2600  ;;  %v2648_v47 = vpop.permute.xlu2 %2647 }
 0x2ac   :  { %v2602_v28 = vsub.f32 %v2592_v14, %v4598_v41  ;;  %v4601_v29 = vpop.xlane.xlu0 %2494  ;;  %vm2649_vm1 = vcmp.eq.s32.totalorder %v4570_v5, %v2648_v47 }
 0x2ad   :  { %v2496_v30 = vsub.f32 %v2486_v15, %v4601_v29  ;;  %v2650_v48 = vsel %vm2649_vm1, %v4577_v19, 0.0  ;;  %vm2509_vm1 = vcmp.eq.s32.totalorder %v4570_v5, 1 }
 0x2ae   :  { %v2603_v44 = vmul.f32 1.442695, %v2602_v28  ;;  %v4216_v42 = vpop.eup %4215 }
 0x2af   :  { %v2497_v31 = vmul.f32 1.442695, %v2496_v30  ;;  %v4218_v32 = vpop.eup %4217  ;;  %2552 = vadd.xlane.f32.xlu0 %v4216_v42 }
 0x2b0   :  { %4219 = vpow2.f32 %v2603_v44  ;;  %2443 = vadd.xlane.f32.xlu1 %v4218_v32 }
 0x2b1   :  { %4221 = vpow2.f32 %v2497_v31 }
 0x2b2   :  { %4223 = vpow2.f32 %v2656_v34 }
 0x2b6   :  { %v4220_v35 = vpop.eup %4219 }
 0x2b7   :  { %v4222_v36 = vpop.eup %4221 }
 0x2b8   :  { %2499 = vadd.xlane.f32.xlu2 %v4222_v36  ;;  %2605 = vadd.xlane.f32.xlu1 %v4220_v35  ;;  %v4224_v37 = vpop.eup %4223 }
 0x2bf   :  { %v2489_v40 = vpop.permute.xlu0 %2488 }
 0x2c0   :  { %2658 = vadd.xlane.f32.xlu2 %v4224_v37  ;;  %2436 = vadd.xlane.f32.xlu1 %v2435_v39  ;;  %vm2490_vm14 = vcmp.eq.s32.totalorder %v4570_v5, %v2489_v40 }
 0x2c1   :  { %v2491_v45 = vsel %vm2490_vm14, %v4577_v19, 0.0  ;;  %vm2453_vm14 = vcmp.eq.s32.totalorder %v4618_v54, 0 }
 0x2c3   :  { %v2542_v24 = vpop.permute.xlu1 %2541 }
 0x2c4   :  { %vm2543_vm15 = vcmp.eq.s32.totalorder %v4570_v5, %v2542_v24 }
 0x2c5   :  { %v2544_v43 = vsel %vm2543_vm15, %v4577_v19, 0.0  ;;  %vm2454_vm15 = vcmp.eq.s32.totalorder %v4570_v5, 0 }
 0x2c6   :  { %2545 = vadd.xlane.f32.xlu0 %v2544_v43 }
 0x2c8   :  { %2492 = vadd.xlane.f32.xlu2 %v2491_v45  ;;  %2598 = vadd.xlane.f32.xlu1 %v2597_v46 }
 0x2d0   :  { %2651 = vadd.xlane.f32.xlu2 %v2650_v48 }
 0x322   :  { %v2553_v50 = vpop.xlane.xlu0 %2552 }
 0x323   :  { %v2444_v49 = vpop.xlane.xlu1 %2443  ;;  %4225 = vlog2.f32 %v2553_v50 }
 0x329   :  { %v4226_v55 = vpop.eup %4225 }
 0x32a   :  { %v2555_v58 = vmul.f32 0.6931472, %v4226_v55 }
 0x32b   :  { %v2500_v51 = vpop.xlane.xlu2 %2499  ;;  %v2606_v53 = vpop.xlane.xlu1 %2605 }
 0x32c   :  { %4227 = vlog2.f32 %v2500_v51  ;;  %v2556_v1 = vadd.f32 %v2555_v58, %v4592_v8 }
 0x32d   :  { %4229 = vlog2.f32 %v2444_v49 }
 0x332   :  { %v4228_v60 = vpop.eup %4227 }
 0x333   :  { %v2659_v56 = vpop.xlane.xlu2 %2658  ;;  %v2437_v59 = vpop.xlane.xlu1 %2436  ;;  %v2502_v0 = vmul.f32 0.6931472, %v4228_v60 }
 0x334   :  { %vm2450_vm3 = vcmp.ge.f32.partialorder %v2437_v59, %v4595_v13  ;;  %v4230_v61 = vpop.eup %4229  ;;  %4231 = vlog2.f32 %v2659_v56 }
 0x335   :  { %vm2451_vm5 = vmand %vm4624_vm2, %vm2450_vm3  ;;  %4233 = vlog2.f32 %v2606_v53  ;;  %v2446_v18 = vmul.f32 0.6931472, %v4230_v61  ;;  %v2503_v7 = vadd.f32 %v2502_v0, %v4601_v29 }
 0x336   :  { %v2452_v63 = vsel %vm2451_vm5, 1.0, %v4427_v62  ;;  %vm2470_vm3 = vmand %vm2469_vm0, %vm2454_vm15  ;;  %vm2562_vm5 = vcmp.eq.s32.totalorder %v4570_v5, 2 }
 0x337   :  { %v2471_v52 = vsel %vm2456_vm4, %v2452_v63, 0.0  ;;  %v2447_v10 = vadd.f32 %v2446_v18, %v4595_v13 }
 0x338   :  { %2472 = vadd.xlane.f32.xlu1 %v2471_v52 }
 0x339   :  { %v2546_v2 = vpop.xlane.xlu0 %2545 }
 0x33a   :  { %v2557_v3 = vsub.f32 %v2556_v1, %v2546_v2  ;;  %vm2559_vm6 = vcmp.ge.f32.partialorder %v2546_v2, %v4592_v8  ;;  %v4232_v22 = vpop.eup %4231  ;;  %v2448_v8 = vsub.f32 %v2447_v10, %v2437_v59 }
 0x33b   :  { %v2493_v4 = vpop.xlane.xlu2 %2492  ;;  %vm2560_vm7 = vmand %vm4624_vm2, %vm2559_vm6  ;;  %v2599_v6 = vpop.xlane.xlu1 %2598  ;;  %v2661_v17 = vmul.f32 0.6931472, %v4232_v22 }
 0x33c   :  { %vm2506_vm8 = vcmp.ge.f32.partialorder %v2493_v4, %v4601_v29  ;;  %v2561_v19 = vsel %vm2560_vm7, 1.0, %v4427_v62  ;;  %v2558_v20 = vsel %vm4624_vm2, %v2557_v3, 0.0  ;;  %v2504_v11 = vsub.f32 %v2503_v7, %v2493_v4  ;;  %v4234_v15 = vpop.eup %4233  ;;  %vm2523_vm6 = vmand %vm2469_vm0, %vm2509_vm1 }
 0x33d   :  { %v2577_v9 = vsel %vm2456_vm4, %v2561_v19, 0.0  ;;  %vm2507_vm9 = vmand %vm4624_vm2, %vm2506_vm8  ;;  %v2564_v14 = vsel %vm2456_vm4, %v2558_v20, 0.0  ;;  %vm2612_vm10 = vcmp.ge.f32.partialorder %v2599_v6, %v4598_v41  ;;  %v2608_v21 = vmul.f32 0.6931472, %v4234_v15 }
 0x33e   :  { %2578 = vadd.xlane.f32.xlu2 %v2577_v9  ;;  %v2508_v12 = vsel %vm2507_vm9, 1.0, %v4427_v62  ;;  %v2505_v23 = vsel %vm4624_vm2, %v2504_v11, 0.0  ;;  %vm2613_vm11 = vmand %vm4624_vm2, %vm2612_vm10  ;;  %v2662_v25 = vadd.f32 %v2661_v17, %v4604_v38  ;;  %v2449_v27 = vsel %vm4624_vm2, %v2448_v8, 0.0 }
 0x33f   :  { %v2524_v16 = vsel %vm2456_vm4, %v2508_v12, 0.0  ;;  %v2511_v28 = vsel %vm2456_vm4, %v2505_v23, 0.0  ;;  %v2614_v29 = vsel %vm2613_vm11, 1.0, %v4427_v62  ;;  %v2609_v30 = vadd.f32 %v2608_v21, %v4598_v41  ;;  %vm2563_vm7 = vmand %vm2453_vm14, %vm2562_vm5 }
 0x340   :  { %2525 = vadd.xlane.f32.xlu0 %v2524_v16  ;;  %2565 = vadd.xlane.f32.xlu1 %v2564_v14  ;;  %v2457_v42 = vsel %vm2456_vm4, %v2449_v27, 0.0  ;;  %v2630_v32 = vsel %vm2456_vm4, %v2614_v29, 0.0  ;;  %vm2615_vm8 = vcmp.eq.s32.totalorder %v4570_v5, 3  ;;  %vm2576_vm9 = vmand %vm2469_vm0, %vm2562_vm5 }
 0x341   :  { %v2610_v31 = vsub.f32 %v2609_v30, %v2599_v6  ;;  %vm2616_vm10 = vmand %vm2453_vm14, %vm2615_vm8 }
 0x342   :  { %vm2629_vm11 = vmand %vm2469_vm0, %vm2615_vm8 }
 0x343   :  { %v2652_v13 = vpop.xlane.xlu2 %2651  ;;  %v2611_v34 = vsel %vm4624_vm2, %v2610_v31, 0.0 }
 0x344   :  { %v2663_v44 = vsub.f32 %v2662_v25, %v2652_v13  ;;  %vm2665_vm12 = vcmp.ge.f32.partialorder %v2652_v13, %v4604_v38  ;;  %v2617_v41 = vsel %vm2456_vm4, %v2611_v34, 0.0 }
 0x345   :  { %vm2666_vm13 = vmand %vm4624_vm2, %vm2665_vm12  ;;  %vm2668_vm12 = vcmp.eq.s32.totalorder %v4570_v5, 4 }
 0x346   :  { %2512 = vadd.xlane.f32.xlu2 %v2511_v28  ;;  %v2664_v33 = vsel %vm4624_vm2, %v2663_v44, 0.0  ;;  %v2667_v36 = vsel %vm2666_vm13, 1.0, %v4427_v62  ;;  %vm2455_vm2 = vmand %vm2453_vm14, %vm2454_vm15 }
 0x347   :  { %v2670_v35 = vsel %vm2456_vm4, %v2664_v33, 0.0  ;;  %v2683_v37 = vsel %vm2456_vm4, %v2667_v36, 0.0  ;;  %vm2510_vm4 = vmand %vm2453_vm14, %vm2509_vm1 }
 0x348   :  { %2458 = vadd.xlane.f32.xlu0 %v2457_v42  ;;  %2631 = vadd.xlane.f32.xlu1 %v2630_v32  ;;  %vm2669_vm13 = vmand %vm2453_vm14, %vm2668_vm12 }
 0x349   :  { %vm2682_vm15 = vmand %vm2469_vm0, %vm2668_vm12 }
 0x34e   :  { %2671 = vadd.xlane.f32.xlu2 %v2670_v35 }
 0x350   :  { %2618 = vadd.xlane.f32.xlu0 %v2617_v41 }
 0x358   :  { %2684 = vadd.xlane.f32.xlu0 %v2683_v37 }
 0x3ab   :  { %v2473_v38 = vpop.xlane.xlu1 %2472 }
 0x3ac   :  { %v2474_v40 = vrot.slane %v2473_v38, 4 }
 0x3ae   :  { %v2475_v47 = vadd.f32 %v2474_v40, %v2473_v38 }
 0x3b0   :  { %v2476_v26 = vrot.slane %v2475_v47, 2 }
 0x3b1   :  { %v2579_v39 = vpop.xlane.xlu2 %2578 }
 0x3b2   :  { %v2580_v48 = vrot.slane %v2579_v39, 4  ;;  %v2477_v2 = vadd.f32 %v2476_v26, %v2475_v47 }
 0x3b3   :  { %v2526_v24 = vpop.xlane.xlu0 %2525  ;;  %v2566_v43 = vpop.xlane.xlu1 %2565 }
 0x3b4   :  { %v2567_v45 = vrot.slane %v2566_v43, 4  ;;  %v2527_v46 = vrot.slane %v2526_v24, 4  ;;  %v2581_v55 = vadd.f32 %v2580_v48, %v2579_v39  ;;  %v2478_v11 = vrot.slane %v2477_v2, 1 }
 0x3b6   :  { %v2568_v49 = vadd.f32 %v2567_v45, %v2566_v43  ;;  %v2528_v50 = vadd.f32 %v2527_v46, %v2526_v24  ;;  %v2582_v52 = vrot.slane %v2581_v55, 2  ;;  %v2479_v28 = vadd.f32 %v2478_v11, %v2477_v2 }
 0x3b8   :  { %v2569_v60 = vrot.slane %v2568_v49, 2  ;;  %v2529_v61 = vrot.slane %v2528_v50, 2  ;;  %v2583_v12 = vadd.f32 %v2582_v52, %v2581_v55 }
 0x3b9   :  { %v2513_v51 = vpop.xlane.xlu2 %2512 }
 0x3ba   :  { %v2514_v53 = vrot.slane %v2513_v51, 4  ;;  %v2530_v6 = vadd.f32 %v2529_v61, %v2528_v50  ;;  %v2570_v7 = vadd.f32 %v2569_v60, %v2568_v49  ;;  %v2584_v29 = vrot.slane %v2583_v12, 1 }
 0x3bb   :  { %v2459_v56 = vpop.xlane.xlu0 %2458  ;;  %v2632_v58 = vpop.xlane.xlu1 %2631 }
 0x3bc   :  { %v2515_v57 = vadd.f32 %v2514_v53, %v2513_v51  ;;  %v2460_v59 = vrot.slane %v2459_v56, 4  ;;  %v2633_v62 = vrot.slane %v2632_v58, 4  ;;  %v2531_v8 = vrot.slane %v2530_v6, 1 }
 0x3bd   :  { %v2571_v17 = vrot.slane %v2570_v7, 1  ;;  %v2585_v34 = vadd.f32 %v2584_v29, %v2583_v12 }
 0x3be   :  { %v2516_v63 = vrot.slane %v2515_v57, 2  ;;  %v2461_v0 = vadd.f32 %v2460_v59, %v2459_v56  ;;  %v2634_v1 = vadd.f32 %v2633_v62, %v2632_v58  ;;  %v2532_v42 = vadd.f32 %v2531_v8, %v2530_v6 }
 0x3bf   :  { %v2572_v31 = vadd.f32 %v2571_v17, %v2570_v7 }
 0x3c0   :  { %v2462_v18 = vrot.slane %v2461_v0, 2  ;;  %v2517_v3 = vadd.f32 %v2516_v63, %v2515_v57  ;;  %v2635_v9 = vrot.slane %v2634_v1, 2 }
 0x3c1   :  { %v2672_v4 = vpop.xlane.xlu2 %2671 }
 0x3c2   :  { %v2673_v19 = vrot.slane %v2672_v4, 4  ;;  %v2463_v20 = vadd.f32 %v2462_v18, %v2461_v0  ;;  %v2518_v22 = vrot.slane %v2517_v3, 1  ;;  %v2636_v27 = vadd.f32 %v2635_v9, %v2634_v1 }
 0x3c3   :  { %v2619_v10 = vpop.xlane.xlu0 %2618 }
 0x3c4   :  { %v2674_v14 = vadd.f32 %v2673_v19, %v2672_v4  ;;  %v2620_v15 = vrot.slane %v2619_v10, 4  ;;  %v2464_v16 = vrot.slane %v2463_v20, 1  ;;  %v2519_v25 = vadd.f32 %v2518_v22, %v2517_v3 }
 0x3c5   :  { %v2637_v41 = vrot.slane %v2636_v27, 1 }
 0x3c6   :  { %v2675_v21 = vrot.slane %v2674_v14, 2  ;;  %v2621_v23 = vadd.f32 %v2620_v15, %v2619_v10  ;;  %v2465_v13 = vadd.f32 %v2464_v16, %v2463_v20 }
 0x3c7   :  { %v2638_v24 = vadd.f32 %v2637_v41, %v2636_v27 }
 0x3c8   :  { %v2676_v30 = vadd.f32 %v2675_v21, %v2674_v14  ;;  %v2622_v44 = vrot.slane %v2621_v23, 2  ;;  %4171 = vpush %v2465_v13 }
 0x3c9   :  { %4173 = vpush %v2479_v28 }
 0x3ca   :  { %4175 = vpush %v2519_v25  ;;  %v2623_v32 = vadd.f32 %v2622_v44, %v2621_v23  ;;  %v2677_v33 = vrot.slane %v2676_v30, 1 }
 0x3cb   :  { %4177 = vpush %v2532_v42  ;;  %v2685_v35 = vpop.xlane.xlu0 %2684 }
 0x3cc   :  { %4179 = vpush %v2572_v31  ;;  %v2686_v36 = vrot.slane %v2685_v35, 4  ;;  %v2624_v37 = vrot.slane %v2623_v32, 1  ;;  %v2678_v40 = vadd.f32 %v2677_v33, %v2676_v30 }
 0x3cd   :  { %4181 = vpush %v2585_v34 }
 0x3ce   :  { %v2687_v38 = vadd.f32 %v2686_v36, %v2685_v35  ;;  %v2625_v39 = vadd.f32 %v2624_v37, %v2623_v32 }
 0x3d0   :  { %v2688_v43 = vrot.slane %v2687_v38, 2  ;;  %4183 = vpush %v2625_v39 }
 0x3d1   :  { %4185 = vpush %v2638_v24 }
 0x3d2   :  { %v2689_v45 = vadd.f32 %v2688_v43, %v2687_v38  ;;  %4187 = vpush %v2678_v40 }
 0x3d4   :  { %v2690_v46 = vrot.slane %v2689_v45, 1 }
 0x3d6   :  { %v2691_v47 = vadd.f32 %v2690_v46, %v2689_v45 }
 0x3d8   :  { %4189 = vpush %v2691_v47 }
 0x3f9   :  { %s4172_s7 = spop %4171 }
 0x3fa   :  { %v2467_v48 = vstv %s4172_s7  ;;  %s4174_s14 = spop %4173 }
 0x3fb   :  { %v2468_v49 = vsel %vm2455_vm2, %v2467_v48, 0.0  ;;  %v2481_v50 = vstv %s4174_s14  ;;  %s4176_s15 = spop %4175 }
 0x3fc   :  { %v2482_v51 = vsel %vm2470_vm3, %v2481_v50, %v2468_v49  ;;  %v2521_v53 = vstv %s4176_s15  ;;  %s4178_s16 = spop %4177 }
 0x3fd   :  { %v2522_v26 = vsel %vm2510_vm4, %v2521_v53, %v2482_v51  ;;  %v2534_v55 = vstv %s4178_s16  ;;  %s4180_s17 = spop %4179 }
 0x3fe   :  { %v2535_v56 = vsel %vm2523_vm6, %v2534_v55, %v2522_v26  ;;  %v2574_v57 = vstv %s4180_s17  ;;  %s4182_s18 = spop %4181 }
 0x3ff   :  { %v2575_v58 = vsel %vm2563_vm7, %v2574_v57, %v2535_v56  ;;  %v2587_v59 = vstv %s4182_s18 }
 0x400   :  { %v2588_v61 = vsel %vm2576_vm9, %v2587_v59, %v2575_v58 }
 0x401   :  { %s4184_s2 = spop %4183 }
 0x402   :  { %v2627_v60 = vstv %s4184_s2  ;;  %s4186_s19 = spop %4185 }
 0x403   :  { %v2628_v62 = vsel %vm2616_vm10, %v2627_v60, %v2588_v61  ;;  %v2640_v63 = vstv %s4186_s19  ;;  %s4188_s20 = spop %4187 }
 0x404   :  { %v2641_v0 = vsel %vm2629_vm11, %v2640_v63, %v2628_v62  ;;  %v2680_v52 = vstv %s4188_s20 }
 0x405   :  { %v2681_v1 = vsel %vm2669_vm13, %v2680_v52, %v2641_v0 }
 0x409   :  { %s4190_s25 = spop %4189 }
 0x40a   :  { %v2693_v2 = vstv %s4190_s25 }
 0x40b   :  { %v2694_v5 = vsel %vm2682_vm15, %v2693_v2, %v2681_v1 }
 0x40c   :  { %2695 = vst [vmem:[#allocation14] sm:$0xff] %v2694_v5 }
 0x40d   :  { %2717 = dma.vmem_to_hbm [thread:$0]  %s2713_s22, 128, %s2715_s24, [#allocation15]  }
 0x40e   :  { %4409 = dma.done.wait [#allocation6], 128  }
 0x40f   :  { %4410 = vsyncadd [#allocation6], 4294967168 }
 0x410   :  { %4411 = dma.done.wait [#allocation15], 128  }
 0x411   :  { %4412 = vsyncadd [#allocation15], 4294967168 }
 0x412   :  { %2726 = vsyncpa [#allocation5], 1 }
 0x413   :  { %2727 = vsyncpa [#allocation8], 1 }
 0x414   :  { %2728 = vsyncpa [#allocation11], 1 }
 0x415   :  { %2729 = vsyncpa [#allocation6], 1 }
 0x416   :  { %2730 = vsyncpa [#allocation15], 1 }

</bundles_post_ra>
